<compile_context>
chip_gen: v6e
topology: v6e:2x2x1
jax: 0.10.0
libtpu: 0.0.40
codegen_flags: <defaults>
</compile_context>

<pallas_src>
import functools

import jax
import jax.numpy as jnp
from jax.experimental import pallas as pl
from jax.experimental.pallas import tpu as pltpu

BN_EPS = 1e-5


# --------------------------------------------------------------------------
# Wrapper-side weight preprocessing (pure JAX, runs once outside the kernel)
# --------------------------------------------------------------------------
def _toeplitz_conv_weights(w, width, split_gates=False):
    """Expand a 3x3 HWIO conv weight into 3 row-band Toeplitz matmul weights
    with the horizontal 'same' zero padding folded into the weights.

    w: (3, 3, Cin, Cout) -> (3, W*Cin, W*Cout)
      row index = w_in*Cin + ci,  col index = w_out*Cout + co
      (or gate*W*gl + w_out*gl + l when split_gates=True).
    With activations laid out as (B, H+2, W*Cin) (zero top/bottom border rows,
    NO horizontal pad columns), a 'same' 3x3 conv is
        sum_dy  act[:, dy:dy+H, :].reshape(B*H, W*Cin) @ T[dy].
    """
    _, _, cin, cout = w.shape
    mats = []
    for dy in range(3):
        m = jnp.zeros((width, cin, width, cout), jnp.float32)
        for dx in range(3):
            # shift[w_in, w_out] = 1  iff  w_in == w_out + dx - 1  (borders drop)
            shift = jnp.eye(width, width, k=1 - dx, dtype=jnp.float32)
            m = m + jnp.einsum("pw,io->piwo", shift, w[dy, dx])
        if split_gates:
            gl = cout // 4
            m = m.reshape(width, cin, width, 4, gl)
            m = jnp.transpose(m, (0, 1, 3, 2, 4))            # (W, Cin, 4, W, gl)
            m = m.reshape(width * cin, 4 * width * gl)
        else:
            m = m.reshape(width * cin, width * cout)
        mats.append(m)
    return jnp.stack(mats)                                    # (3, W*Cin, N)


def _bn_channel_avg_matrix(channels, width, n):
    """(W*C, W*C) matrix M with M[j, j'] = [j % C == j' % C] / n.

    rowsums(., W*C) @ M == per-channel mean, broadcast back onto every lane of
    that channel in the folded (w*C + c) layout."""
    j = jnp.arange(width * channels)
    same = (j[:, None] % channels) == (j[None, :] % channels)
    return same.astype(jnp.float32) / float(n)


# --------------------------------------------------------------------------
# Fused Pallas kernel: one grid step == `unroll` time steps of the recurrence
# --------------------------------------------------------------------------
def _make_fused_kernel(B, H, W, L, mid, dt, unroll):
    WL = W * L
    n_rows = B * H

    def conv3x3(pad_ref, t_ref):
        """3x3 'same' conv: padded (B, H+2, W*Cin) f32 scratch -> (B*H, W*Cout) f32.

        bf16 MXU operands, f32 accumulation.  Horizontal padding is already
        folded into the Toeplitz weights; vertical padding = the zero border
        rows of the scratch buffer."""
        xb = pad_ref[...].astype(jnp.bfloat16)                # one cast per conv
        k = xb.shape[2]
        nout = t_ref.shape[2]
        acc = jnp.zeros((n_rows, nout), jnp.float32)
        for dy in range(3):
            band = xb[:, dy:dy + H, :].reshape(n_rows, k)
            acc = acc + jnp.dot(band, t_ref[dy],
                                preferred_element_type=jnp.float32)
        return acc

    def bn_relu(y, avg_mat):
        """Training-mode BatchNorm2d (gamma=1, beta=0, eps=1e-5) + ReLU.

        Per-channel stats over the full (B, H, W) extent.  Mean and E[y^2] come
        from a single fused stats matmul (2-row lhs) so there is no serial
        mean -> var dependency; var = E[y^2] - mean^2 (biased, as in training)."""
        s = jnp.concatenate([jnp.sum(y, axis=0, keepdims=True),
                             jnp.sum(y * y, axis=0, keepdims=True)], axis=0)
        stats = jnp.dot(s, avg_mat, preferred_element_type=jnp.float32)
        mean = stats[0:1]
        var = stats[1:2] - mean * mean
        return jnp.maximum((y - mean) * jax.lax.rsqrt(var + BN_EPS), 0.0)

    def sigmoid_t(x):
        # sigmoid(x) == 0.5*(1 + tanh(x/2)): one EUP op instead of exp + recip.
        return 0.5 * (1.0 + jnp.tanh(0.5 * x))

    def store_interior(pad_ref, val, c):
        # Write the H interior rows; the zero border rows are never touched.
        pad_ref[:, pl.ds(1, H), :] = val.reshape(B, H, W * c)

    def kernel(gx_ref, t1_ref, t2_ref, t3_ref, t4_ref, tgh_ref,
               bnl_ref, bnm_ref, out_ref, h_s, c_s, padl, padm):
        # hidden / cell / padded-hidden start at zero and stay VMEM-resident for
        # all T steps; padl/padm borders are zeroed once and never rewritten.
        @pl.when(pl.program_id(0) == 0)
        def _():
            h_s[...] = jnp.zeros_like(h_s)
            c_s[...] = jnp.zeros_like(c_s)
            padl[...] = jnp.zeros_like(padl)    # borders + interior (h0 == 0)
            padm[...] = jnp.zeros_like(padm)    # borders (interior rewritten)

        bn_l = bnl_ref[...]
        bn_m = bnm_ref[...]

        for s in range(unroll):                 # static unroll over time steps
            h = h_s[...]                        # (B*H, W*L) f32 state

            # --- ODEFunc: 4 x (conv3x3 no-bias -> BN(batch stats) -> ReLU)
            y = bn_relu(conv3x3(padl, t1_ref), bn_l)   # padl holds padded h
            store_interior(padl, y, L)
            y = bn_relu(conv3x3(padl, t2_ref), bn_m)
            store_interior(padm, y, mid)
            y = bn_relu(conv3x3(padm, t3_ref), bn_m)
            store_interior(padm, y, mid)
            y = bn_relu(conv3x3(padm, t4_ref), bn_l)

            # --- one explicit Euler step of the latent ODE (torchdiffeq 'euler')
            h_ode = h + dt * y

            # --- ConvLSTM gates: conv(cat(x, h_ode)) ==
            #     [precomputed conv_x(x_t) + bias]  +  conv_h(h_ode)
            store_interior(padl, h_ode, L)
            gates = conv3x3(padl, tgh_ref) + gx_ref[s]       # (B*H, 4*W*L)

            i_g = sigmoid_t(gates[:, 0 * WL:1 * WL])         # in_gate
            f_g = sigmoid_t(gates[:, 1 * WL:2 * WL])         # remember_gate
            o_g = sigmoid_t(gates[:, 2 * WL:3 * WL])         # out_gate
            c_g = jnp.tanh(gates[:, 3 * WL:4 * WL])          # cell_gate

            c_new = f_g * c_s[...] + i_g * c_g
            h_new = o_g * jnp.tanh(c_new)

            c_s[...] = c_new
            h_s[...] = h_new
            store_interior(padl, h_new, L)       # padded hidden for next step
            out_ref[s] = h_new                   # dense 128-lane store

    return kernel


# --------------------------------------------------------------------------
# Parameters + forward
# --------------------------------------------------------------------------
def make_params(key, in_channels, latent_channels):
    mid = latent_channels // 2
    k = jax.random.split(key, 6)

    # ConvLSTMCell gate conv: xavier_normal_ gain 0.02, default PyTorch bias init.
    cin = in_channels + latent_channels
    cout = 4 * latent_channels
    fan_in = cin * 9
    fan_out = cout * 9
    std = 0.02 * (2.0 / (fan_in + fan_out)) ** 0.5
    gates_w = std * jax.random.normal(k[0], (3, 3, cin, cout), jnp.float32)
    bound = 1.0 / (fan_in ** 0.5)
    gates_b = jax.random.uniform(k[1], (1, cout), jnp.float32,
                                 minval=-bound, maxval=bound)

    # ODEFunc convs: normal(0, 0.01), no bias (HWIO layout).
    w1 = 0.01 * jax.random.normal(k[2], (3, 3, latent_channels, latent_channels), jnp.float32)
    w2 = 0.01 * jax.random.normal(k[3], (3, 3, latent_channels, mid), jnp.float32)
    w3 = 0.01 * jax.random.normal(k[4], (3, 3, mid, mid), jnp.float32)
    w4 = 0.01 * jax.random.normal(k[5], (3, 3, mid, latent_channels), jnp.float32)

    return {"gates_w": gates_w, "gates_b": gates_b,
            "ode_w1": w1, "ode_w2": w2, "ode_w3": w3, "ode_w4": w4}


@functools.partial(jax.jit, static_argnames=("latent_channels",))
def convlstm_ode_forward(data, params, latent_channels):
    """data: (B, T, C_in, H, W) NCHW -> (B, T, latent, H, W), as in the PyTorch module."""
    B, T, C, H, W = data.shape
    L = latent_channels
    mid = L // 2
    # time_steps = linspace(0, 1, T+1) => dt = 1/T > 0, so only the single
    # fixed-step Euler odeint branch of the reference module ever executes.
    # TODO(synk): the adaptive / negative-dt branches of the reference forward
    # are unreachable with this time grid and are not implemented.
    dt = 1.0 / T

    # ---- hoisted out of the recurrence: input-gate conv + bias ---------------
    # gx[t] = conv_x(x_t) + b for all T at once (full MXU M-utilisation),
    # laid out gate-blocked [gate][w][l] to match the in-kernel gate slices.
    x = jnp.transpose(data, (0, 1, 3, 4, 2)).astype(jnp.float32)      # (B,T,H,W,C)
    wg = params["gates_w"]                                            # (3,3,C+L,4L)
    gx = jax.lax.conv_general_dilated(
        x.reshape(B * T, H, W, C), wg[:, :, :C, :],
        window_strides=(1, 1), padding="SAME",
        dimension_numbers=("NHWC", "HWIO", "NHWC"),
        precision=jax.lax.Precision.HIGHEST)                          # (B*T,H,W,4L)
    gx = gx + params["gates_b"].reshape(1, 1, 1, -1)
    gx = gx.reshape(B, T, H, W, 4, L)
    gx = jnp.transpose(gx, (1, 0, 2, 4, 3, 5)).reshape(T, B * H, 4 * W * L)

    # ---- Toeplitz-expanded conv weights (lane-dense matmul form), bf16 -------
    bf16 = jnp.bfloat16
    t1 = _toeplitz_conv_weights(params["ode_w1"], W).astype(bf16)     # (3, W*L,  W*L)
    t2 = _toeplitz_conv_weights(params["ode_w2"], W).astype(bf16)     # (3, W*L,  W*mid)
    t3 = _toeplitz_conv_weights(params["ode_w3"], W).astype(bf16)     # (3, W*mid,W*mid)
    t4 = _toeplitz_conv_weights(params["ode_w4"], W).astype(bf16)     # (3, W*mid,W*L)
    tgh = _toeplitz_conv_weights(wg[:, :, C:, :], W,
                                 split_gates=True).astype(bf16)       # (3, W*L, 4*W*L)

    bn_l = _bn_channel_avg_matrix(L, W, B * H * W)                    # (W*L,   W*L)
    bn_m = _bn_channel_avg_matrix(mid, W, B * H * W)                  # (W*mid, W*mid)

    unroll = 2 if T % 2 == 0 else 1       # amortize per-grid-step overhead
    kernel = _make_fused_kernel(B, H, W, L, mid, dt, unroll)

    def resident(arr):   # weight stays VMEM-resident: block index never changes
        nd = arr.ndim
        # TODO(synk): pipeline_mode=pl.Buffered(1) would halve resident-weight
        # VMEM (relevant on v7x's 64 MiB at larger W/L/B); unnecessary here.
        return pl.BlockSpec(arr.shape, lambda t: (0,) * nd)

    grid_spec = pltpu.PrefetchScalarGridSpec(
        num_scalar_prefetch=0,
        grid=(T // unroll,),
        in_specs=[
            # precomputed conv_x(x)+bias for `unroll` time steps, gate-blocked
            pl.BlockSpec((unroll, B * H, 4 * W * L), lambda t: (t, 0, 0)),
            resident(t1), resident(t2), resident(t3), resident(t4),
            resident(tgh), resident(bn_l), resident(bn_m),
        ],
        out_specs=pl.BlockSpec((unroll, B * H, W * L), lambda t: (t, 0, 0)),
        scratch_shapes=[
            pltpu.VMEM((B * H, W * L), jnp.float32),        # hidden (f32 state)
            pltpu.VMEM((B * H, W * L), jnp.float32),        # cell
            pltpu.VMEM((B, H + 2, W * L), jnp.float32),     # padded latent-width buf
            pltpu.VMEM((B, H + 2, W * mid), jnp.float32),   # padded mid-width buf
        ],
    )

    out = pl.pallas_call(
        kernel,
        out_shape=jax.ShapeDtypeStruct((T, B * H, W * L), jnp.float32),
        grid_spec=grid_spec,
        compiler_params=pltpu.CompilerParams(
            # T is a carried recurrence -> must run in order on one core.
            # TODO(synk): batch-sharding across v7x's 2nd TensorCore needs a
            # cross-core BN-stats exchange; not worth it at B*H=32.
            dimension_semantics=("arbitrary",),
            vmem_limit_bytes=32 * 1024 * 1024),
    )(gx, t1, t2, t3, t4, tgh, bn_l, bn_m)

    # (T, B*H, W*L) -> (B, T, L, H, W)
    out = out.reshape(T, B, H, W, L)
    return jnp.transpose(out, (1, 0, 4, 2, 3))


# --------------------------------------------------------------------------
# Pure-JAX reference (same math, XLA ops) for a numerical cross-check
# --------------------------------------------------------------------------
def _reference_forward(data, params, latent_channels):
    B, T, C, H, W = data.shape
    L = latent_channels
    dt = 1.0 / T
    x_seq = jnp.transpose(data, (0, 1, 3, 4, 2)).astype(jnp.float32)  # (B,T,H,W,C)

    def conv(x, w, b=None):
        y = jax.lax.conv_general_dilated(
            x, w, window_strides=(1, 1), padding="SAME",
            dimension_numbers=("NHWC", "HWIO", "NHWC"),
            precision=jax.lax.Precision.HIGHEST)
        if b is not None:
            y = y + b.reshape(1, 1, 1, -1)
        return y

    def bn_relu(x):
        mean = jnp.mean(x, axis=(0, 1, 2), keepdims=True)
        var = jnp.mean((x - mean) ** 2, axis=(0, 1, 2), keepdims=True)
        return jnp.maximum((x - mean) * jax.lax.rsqrt(var + BN_EPS), 0.0)

    def ode_func(h):
        y = bn_relu(conv(h, params["ode_w1"]))
        y = bn_relu(conv(y, params["ode_w2"]))
        y = bn_relu(conv(y, params["ode_w3"]))
        y = bn_relu(conv(y, params["ode_w4"]))
        return y

    hidden = jnp.zeros((B, H, W, L), jnp.float32)
    cell = jnp.zeros((B, H, W, L), jnp.float32)
    outs = []
    for i in range(T):
        h_ode = hidden + dt * ode_func(hidden)
        stacked = jnp.concatenate([x_seq[:, i], h_ode], axis=-1)
        g = conv(stacked, params["gates_w"], params["gates_b"].reshape(-1))
        i_g, f_g, o_g, c_g = jnp.split(g, 4, axis=-1)
        cell = jax.nn.sigmoid(f_g) * cell + jax.nn.sigmoid(i_g) * jnp.tanh(c_g)
        hidden = jax.nn.sigmoid(o_g) * jnp.tanh(cell)
        outs.append(hidden)
    out = jnp.stack(outs, axis=1)                          # (B,T,H,W,L)
    return jnp.transpose(out, (0, 1, 4, 2, 3))             # (B,T,L,H,W)


# --------------------------------------------------------------------------
# Demo
# --------------------------------------------------------------------------
if __name__ == "__main__":
    B, T, C_IN, H, W = 2, 4, 4, 16, 16
    LATENT = 8

    key = jax.random.PRNGKey(0)
    k_data, k_params = jax.random.split(key)
    data = jax.random.normal(k_data, (B, T, C_IN, H, W), jnp.float32)
    params = make_params(k_params, C_IN, LATENT)

    out = convlstm_ode_forward(data, params, LATENT)
    out = jax.block_until_ready(out)

    assert out.shape == (B, T, LATENT, H, W), out.shape
    assert bool(jnp.all(jnp.isfinite(out)))

    # Cross-check the fused kernel against the plain-XLA (f32 HIGHEST) reference.
    # Tolerance is deliberately loosened to cover bf16 MXU operands in-kernel;
    # observed error is well below this bound.
    ref = _reference_forward(data, params, LATENT)
    max_err = float(jnp.max(jnp.abs(out - ref)))
    assert max_err < 2e-2, max_err

    print("KERNEL_OK")
</pallas_src>

<mosaic_0001>
module attributes {stable_mosaic.version = 11 : i64} {
  func.func @kernel(%arg0: i32, %arg1: memref<2x32x512xf32, #tpu.memory_space<vmem>>, %arg2: memref<3x128x128xbf16, #tpu.memory_space<vmem>>, %arg3: memref<3x128x64xbf16, #tpu.memory_space<vmem>>, %arg4: memref<3x64x64xbf16, #tpu.memory_space<vmem>>, %arg5: memref<3x64x128xbf16, #tpu.memory_space<vmem>>, %arg6: memref<3x128x512xbf16, #tpu.memory_space<vmem>>, %arg7: memref<128x128xf32, #tpu.memory_space<vmem>>, %arg8: memref<64x64xf32, #tpu.memory_space<vmem>>, %arg9: memref<2x32x128xf32, #tpu.memory_space<vmem>>, %arg10: memref<32x128xf32, #tpu.memory_space<vmem>>, %arg11: memref<32x128xf32, #tpu.memory_space<vmem>>, %arg12: memref<2x18x128xf32, #tpu.memory_space<vmem>>, %arg13: memref<2x18x64xf32, #tpu.memory_space<vmem>>) attributes {dimension_semantics = [#tpu.dimension_semantics<arbitrary>], iteration_bounds = array<i64: 2>, scalar_prefetch = 0 : i64, scratch_operands = 4 : i64, tpu.core_type = #tpu.core_type<tc>, window_params = [{transform_indices = @transform_0, window_bounds = array<i64: 2, 32, 512>}, {pipeline_mode = #tpu.pipeline_mode<synchronous>, transform_indices = @transform_1, window_bounds = array<i64: 3, 128, 128>}, {pipeline_mode = #tpu.pipeline_mode<synchronous>, transform_indices = @transform_2, window_bounds = array<i64: 3, 128, 64>}, {pipeline_mode = #tpu.pipeline_mode<synchronous>, transform_indices = @transform_3, window_bounds = array<i64: 3, 64, 64>}, {pipeline_mode = #tpu.pipeline_mode<synchronous>, transform_indices = @transform_4, window_bounds = array<i64: 3, 64, 128>}, {pipeline_mode = #tpu.pipeline_mode<synchronous>, transform_indices = @transform_5, window_bounds = array<i64: 3, 128, 512>}, {pipeline_mode = #tpu.pipeline_mode<synchronous>, transform_indices = @transform_6, window_bounds = array<i64: 128, 128>}, {pipeline_mode = #tpu.pipeline_mode<synchronous>, transform_indices = @transform_7, window_bounds = array<i64: 64, 64>}, {transform_indices = @transform_8, window_bounds = array<i64: 2, 32, 128>}]} {
    %c0_i32 = arith.constant 0 : i32
    %0 = arith.cmpi eq, %arg0, %c0_i32 : i32
    %1 = arith.extui %0 : i1 to i32
    %c0_i32_0 = arith.constant 0 : i32
    %2 = arith.cmpi ne, %1, %c0_i32_0 : i32
    scf.if %2 {
      %cst_279 = arith.constant 0.000000e+00 : f32
      %483 = vector.broadcast %cst_279 : f32 to vector<32x128xf32>
      %c0_280 = arith.constant 0 : index
      %c0_281 = arith.constant 0 : index
      %484 = vector.load %arg10[%c0_280, %c0_281] : memref<32x128xf32, #tpu.memory_space<vmem>>, vector<32x128xf32>
      tpu.vector_store %arg10[%c0_280, %c0_281], %483 {strides = array<i32>} : memref<32x128xf32, #tpu.memory_space<vmem>>, vector<32x128xf32>,
      %cst_282 = arith.constant 0.000000e+00 : f32
      %485 = vector.broadcast %cst_282 : f32 to vector<32x128xf32>
      %c0_283 = arith.constant 0 : index
      %c0_284 = arith.constant 0 : index
      %486 = vector.load %arg11[%c0_283, %c0_284] : memref<32x128xf32, #tpu.memory_space<vmem>>, vector<32x128xf32>
      tpu.vector_store %arg11[%c0_283, %c0_284], %485 {strides = array<i32>} : memref<32x128xf32, #tpu.memory_space<vmem>>, vector<32x128xf32>,
      %cst_285 = arith.constant 0.000000e+00 : f32
      %487 = vector.broadcast %cst_285 : f32 to vector<2x18x128xf32>
      %c0_286 = arith.constant 0 : index
      %c0_287 = arith.constant 0 : index
      %c0_288 = arith.constant 0 : index
      %488 = vector.load %arg12[%c0_286, %c0_287, %c0_288] : memref<2x18x128xf32, #tpu.memory_space<vmem>>, vector<2x18x128xf32>
      tpu.vector_store %arg12[%c0_286, %c0_287, %c0_288], %487 {strides = array<i32>} : memref<2x18x128xf32, #tpu.memory_space<vmem>>, vector<2x18x128xf32>,
      %cst_289 = arith.constant 0.000000e+00 : f32
      %489 = vector.broadcast %cst_289 : f32 to vector<2x18x64xf32>
      %c0_290 = arith.constant 0 : index
      %c0_291 = arith.constant 0 : index
      %c0_292 = arith.constant 0 : index
      %490 = vector.load %arg13[%c0_290, %c0_291, %c0_292] : memref<2x18x64xf32, #tpu.memory_space<vmem>>, vector<2x18x64xf32>
      tpu.vector_store %arg13[%c0_290, %c0_291, %c0_292], %489 {strides = array<i32>} : memref<2x18x64xf32, #tpu.memory_space<vmem>>, vector<2x18x64xf32>,
    } else {
    }
    %c0 = arith.constant 0 : index
    %c0_1 = arith.constant 0 : index
    %3 = vector.load %arg7[%c0, %c0_1] : memref<128x128xf32, #tpu.memory_space<vmem>>, vector<128x128xf32>
    %c0_2 = arith.constant 0 : index
    %c0_3 = arith.constant 0 : index
    %4 = vector.load %arg8[%c0_2, %c0_3] : memref<64x64xf32, #tpu.memory_space<vmem>>, vector<64x64xf32>
    %c0_4 = arith.constant 0 : index
    %c0_5 = arith.constant 0 : index
    %5 = vector.load %arg10[%c0_4, %c0_5] : memref<32x128xf32, #tpu.memory_space<vmem>>, vector<32x128xf32>
    %c0_6 = arith.constant 0 : index
    %c0_7 = arith.constant 0 : index
    %c0_8 = arith.constant 0 : index
    %6 = vector.load %arg12[%c0_6, %c0_7, %c0_8] : memref<2x18x128xf32, #tpu.memory_space<vmem>>, vector<2x18x128xf32>
    %7 = arith.truncf %6 : vector<2x18x128xf32> to vector<2x18x128xbf16>
    %cst = arith.constant 0.000000e+00 : f32
    %8 = vector.broadcast %cst : f32 to vector<32x128xf32>
    %9 = vector.extract_strided_slice %7 {offsets = [0, 0, 0], sizes = [2, 16, 128], strides = [1, 1, 1]} : vector<2x18x128xbf16> to vector<2x16x128xbf16>
    %10 = vector.shape_cast %9 : vector<2x16x128xbf16> to vector<32x128xbf16>
    %c0_9 = arith.constant 0 : index
    %c0_10 = arith.constant 0 : index
    %c0_11 = arith.constant 0 : index
    %11 = vector.load %arg2[%c0_9, %c0_10, %c0_11] : memref<3x128x128xbf16, #tpu.memory_space<vmem>>, vector<1x128x128xbf16>
    %12 = vector.shape_cast %11 : vector<1x128x128xbf16> to vector<128x128xbf16>
    %cst_12 = arith.constant dense<0.000000e+00> : vector<32x128xf32>
    %13 = tpu.matmul %10, %12, %cst_12 {dimension_numbers = #tpu.dot_dimension_numbers<[1], [0], [0], [1], [0, 0, 1, 1], [], []>} : vector<32x128xbf16>, vector<128x128xbf16>, vector<32x128xf32> -> vector<32x128xf32>
    %14 = arith.addf %8, %13 : vector<32x128xf32>
    %15 = vector.extract_strided_slice %7 {offsets = [0, 1, 0], sizes = [2, 16, 128], strides = [1, 1, 1]} : vector<2x18x128xbf16> to vector<2x16x128xbf16>
    %16 = vector.shape_cast %15 : vector<2x16x128xbf16> to vector<32x128xbf16>
    %c1 = arith.constant 1 : index
    %c0_13 = arith.constant 0 : index
    %c0_14 = arith.constant 0 : index
    %17 = vector.load %arg2[%c1, %c0_13, %c0_14] : memref<3x128x128xbf16, #tpu.memory_space<vmem>>, vector<1x128x128xbf16>
    %18 = vector.shape_cast %17 : vector<1x128x128xbf16> to vector<128x128xbf16>
    %cst_15 = arith.constant dense<0.000000e+00> : vector<32x128xf32>
    %19 = tpu.matmul %16, %18, %cst_15 {dimension_numbers = #tpu.dot_dimension_numbers<[1], [0], [0], [1], [0, 0, 1, 1], [], []>} : vector<32x128xbf16>, vector<128x128xbf16>, vector<32x128xf32> -> vector<32x128xf32>
    %20 = arith.addf %14, %19 : vector<32x128xf32>
    %21 = vector.extract_strided_slice %7 {offsets = [0, 2, 0], sizes = [2, 16, 128], strides = [1, 1, 1]} : vector<2x18x128xbf16> to vector<2x16x128xbf16>
    %22 = vector.shape_cast %21 : vector<2x16x128xbf16> to vector<32x128xbf16>
    %c2 = arith.constant 2 : index
    %c0_16 = arith.constant 0 : index
    %c0_17 = arith.constant 0 : index
    %23 = vector.load %arg2[%c2, %c0_16, %c0_17] : memref<3x128x128xbf16, #tpu.memory_space<vmem>>, vector<1x128x128xbf16>
    %24 = vector.shape_cast %23 : vector<1x128x128xbf16> to vector<128x128xbf16>
    %cst_18 = arith.constant dense<0.000000e+00> : vector<32x128xf32>
    %25 = tpu.matmul %22, %24, %cst_18 {dimension_numbers = #tpu.dot_dimension_numbers<[1], [0], [0], [1], [0, 0, 1, 1], [], []>} : vector<32x128xbf16>, vector<128x128xbf16>, vector<32x128xf32> -> vector<32x128xf32>
    %26 = arith.addf %20, %25 : vector<32x128xf32>
    %cst_19 = arith.constant dense<0.000000e+00> : vector<128xf32>
    %27 = vector.multi_reduction <add>, %26, %cst_19 [0] : vector<32x128xf32> to vector<128xf32>
    %28 = vector.shape_cast %27 : vector<128xf32> to vector<1x128xf32>
    %29 = arith.mulf %26, %26 : vector<32x128xf32>
    %cst_20 = arith.constant dense<0.000000e+00> : vector<128xf32>
    %30 = vector.multi_reduction <add>, %29, %cst_20 [0] : vector<32x128xf32> to vector<128xf32>
    %31 = vector.shape_cast %30 : vector<128xf32> to vector<1x128xf32>
    %32 = tpu.concatenate %28, %31 in 0 : vector<1x128xf32>, vector<1x128xf32> -> vector<2x128xf32>
    %cst_21 = arith.constant dense<0.000000e+00> : vector<2x128xf32>
    %33 = tpu.matmul %32, %3, %cst_21 {dimension_numbers = #tpu.dot_dimension_numbers<[1], [0], [0], [1], [0, 0, 1, 1], [], []>} : vector<2x128xf32>, vector<128x128xf32>, vector<2x128xf32> -> vector<2x128xf32>
    %34 = vector.extract_strided_slice %33 {offsets = [0, 0], sizes = [1, 128], strides = [1, 1]} : vector<2x128xf32> to vector<1x128xf32>
    %35 = vector.extract_strided_slice %33 {offsets = [1, 0], sizes = [1, 128], strides = [1, 1]} : vector<2x128xf32> to vector<1x128xf32>
    %36 = arith.mulf %34, %34 : vector<1x128xf32>
    %37 = arith.subf %35, %36 : vector<1x128xf32>
    %38 = vector.broadcast %34 : vector<1x128xf32> to vector<32x128xf32>
    %39 = arith.subf %26, %38 : vector<32x128xf32>
    %cst_22 = arith.constant 9.99999974E-6 : f32
    %40 = vector.broadcast %cst_22 : f32 to vector<1x128xf32>
    %41 = arith.addf %37, %40 : vector<1x128xf32>
    %42 = math.rsqrt %41 : vector<1x128xf32>
    %43 = vector.broadcast %42 : vector<1x128xf32> to vector<32x128xf32>
    %44 = arith.mulf %39, %43 : vector<32x128xf32>
    %cst_23 = arith.constant 0.000000e+00 : f32
    %45 = vector.broadcast %cst_23 : f32 to vector<32x128xf32>
    %46 = arith.maximumf %44, %45 : vector<32x128xf32>
    %47 = vector.shape_cast %46 : vector<32x128xf32> to vector<2x16x128xf32>
    %c0_24 = arith.constant 0 : index
    %c1_25 = arith.constant 1 : index
    %c0_26 = arith.constant 0 : index
    %48 = vector.load %arg12[%c0_24, %c1_25, %c0_26] : memref<2x18x128xf32, #tpu.memory_space<vmem>>, vector<2x16x128xf32>
    tpu.vector_store %arg12[%c0_24, %c1_25, %c0_26], %47 {strides = array<i32>} : memref<2x18x128xf32, #tpu.memory_space<vmem>>, vector<2x16x128xf32>,
    %c0_27 = arith.constant 0 : index
    %c0_28 = arith.constant 0 : index
    %c0_29 = arith.constant 0 : index
    %49 = vector.load %arg12[%c0_27, %c0_28, %c0_29] : memref<2x18x128xf32, #tpu.memory_space<vmem>>, vector<2x18x128xf32>
    %50 = arith.truncf %49 : vector<2x18x128xf32> to vector<2x18x128xbf16>
    %cst_30 = arith.constant 0.000000e+00 : f32
    %51 = vector.broadcast %cst_30 : f32 to vector<32x64xf32>
    %52 = vector.extract_strided_slice %50 {offsets = [0, 0, 0], sizes = [2, 16, 128], strides = [1, 1, 1]} : vector<2x18x128xbf16> to vector<2x16x128xbf16>
    %53 = vector.shape_cast %52 : vector<2x16x128xbf16> to vector<32x128xbf16>
    %c0_31 = arith.constant 0 : index
    %c0_32 = arith.constant 0 : index
    %c0_33 = arith.constant 0 : index
    %54 = vector.load %arg3[%c0_31, %c0_32, %c0_33] : memref<3x128x64xbf16, #tpu.memory_space<vmem>>, vector<1x128x64xbf16>
    %55 = vector.shape_cast %54 : vector<1x128x64xbf16> to vector<128x64xbf16>
    %cst_34 = arith.constant dense<0.000000e+00> : vector<32x64xf32>
    %56 = tpu.matmul %53, %55, %cst_34 {dimension_numbers = #tpu.dot_dimension_numbers<[1], [0], [0], [1], [0, 0, 1, 1], [], []>} : vector<32x128xbf16>, vector<128x64xbf16>, vector<32x64xf32> -> vector<32x64xf32>
    %57 = arith.addf %51, %56 : vector<32x64xf32>
    %58 = vector.extract_strided_slice %50 {offsets = [0, 1, 0], sizes = [2, 16, 128], strides = [1, 1, 1]} : vector<2x18x128xbf16> to vector<2x16x128xbf16>
    %59 = vector.shape_cast %58 : vector<2x16x128xbf16> to vector<32x128xbf16>
    %c1_35 = arith.constant 1 : index
    %c0_36 = arith.constant 0 : index
    %c0_37 = arith.constant 0 : index
    %60 = vector.load %arg3[%c1_35, %c0_36, %c0_37] : memref<3x128x64xbf16, #tpu.memory_space<vmem>>, vector<1x128x64xbf16>
    %61 = vector.shape_cast %60 : vector<1x128x64xbf16> to vector<128x64xbf16>
    %cst_38 = arith.constant dense<0.000000e+00> : vector<32x64xf32>
    %62 = tpu.matmul %59, %61, %cst_38 {dimension_numbers = #tpu.dot_dimension_numbers<[1], [0], [0], [1], [0, 0, 1, 1], [], []>} : vector<32x128xbf16>, vector<128x64xbf16>, vector<32x64xf32> -> vector<32x64xf32>
    %63 = arith.addf %57, %62 : vector<32x64xf32>
    %64 = vector.extract_strided_slice %50 {offsets = [0, 2, 0], sizes = [2, 16, 128], strides = [1, 1, 1]} : vector<2x18x128xbf16> to vector<2x16x128xbf16>
    %65 = vector.shape_cast %64 : vector<2x16x128xbf16> to vector<32x128xbf16>
    %c2_39 = arith.constant 2 : index
    %c0_40 = arith.constant 0 : index
    %c0_41 = arith.constant 0 : index
    %66 = vector.load %arg3[%c2_39, %c0_40, %c0_41] : memref<3x128x64xbf16, #tpu.memory_space<vmem>>, vector<1x128x64xbf16>
    %67 = vector.shape_cast %66 : vector<1x128x64xbf16> to vector<128x64xbf16>
    %cst_42 = arith.constant dense<0.000000e+00> : vector<32x64xf32>
    %68 = tpu.matmul %65, %67, %cst_42 {dimension_numbers = #tpu.dot_dimension_numbers<[1], [0], [0], [1], [0, 0, 1, 1], [], []>} : vector<32x128xbf16>, vector<128x64xbf16>, vector<32x64xf32> -> vector<32x64xf32>
    %69 = arith.addf %63, %68 : vector<32x64xf32>
    %cst_43 = arith.constant dense<0.000000e+00> : vector<64xf32>
    %70 = vector.multi_reduction <add>, %69, %cst_43 [0] : vector<32x64xf32> to vector<64xf32>
    %71 = vector.shape_cast %70 : vector<64xf32> to vector<1x64xf32>
    %72 = arith.mulf %69, %69 : vector<32x64xf32>
    %cst_44 = arith.constant dense<0.000000e+00> : vector<64xf32>
    %73 = vector.multi_reduction <add>, %72, %cst_44 [0] : vector<32x64xf32> to vector<64xf32>
    %74 = vector.shape_cast %73 : vector<64xf32> to vector<1x64xf32>
    %75 = tpu.concatenate %71, %74 in 0 : vector<1x64xf32>, vector<1x64xf32> -> vector<2x64xf32>
    %cst_45 = arith.constant dense<0.000000e+00> : vector<2x64xf32>
    %76 = tpu.matmul %75, %4, %cst_45 {dimension_numbers = #tpu.dot_dimension_numbers<[1], [0], [0], [1], [0, 0, 1, 1], [], []>} : vector<2x64xf32>, vector<64x64xf32>, vector<2x64xf32> -> vector<2x64xf32>
    %77 = vector.extract_strided_slice %76 {offsets = [0, 0], sizes = [1, 64], strides = [1, 1]} : vector<2x64xf32> to vector<1x64xf32>
    %78 = vector.extract_strided_slice %76 {offsets = [1, 0], sizes = [1, 64], strides = [1, 1]} : vector<2x64xf32> to vector<1x64xf32>
    %79 = arith.mulf %77, %77 : vector<1x64xf32>
    %80 = arith.subf %78, %79 : vector<1x64xf32>
    %81 = vector.broadcast %77 : vector<1x64xf32> to vector<32x64xf32>
    %82 = arith.subf %69, %81 : vector<32x64xf32>
    %cst_46 = arith.constant 9.99999974E-6 : f32
    %83 = vector.broadcast %cst_46 : f32 to vector<1x64xf32>
    %84 = arith.addf %80, %83 : vector<1x64xf32>
    %85 = math.rsqrt %84 : vector<1x64xf32>
    %86 = vector.broadcast %85 : vector<1x64xf32> to vector<32x64xf32>
    %87 = arith.mulf %82, %86 : vector<32x64xf32>
    %cst_47 = arith.constant 0.000000e+00 : f32
    %88 = vector.broadcast %cst_47 : f32 to vector<32x64xf32>
    %89 = arith.maximumf %87, %88 : vector<32x64xf32>
    %90 = vector.shape_cast %89 : vector<32x64xf32> to vector<2x16x64xf32>
    %c0_48 = arith.constant 0 : index
    %c1_49 = arith.constant 1 : index
    %c0_50 = arith.constant 0 : index
    %91 = vector.load %arg13[%c0_48, %c1_49, %c0_50] : memref<2x18x64xf32, #tpu.memory_space<vmem>>, vector<2x16x64xf32>
    tpu.vector_store %arg13[%c0_48, %c1_49, %c0_50], %90 {strides = array<i32>} : memref<2x18x64xf32, #tpu.memory_space<vmem>>, vector<2x16x64xf32>,
    %c0_51 = arith.constant 0 : index
    %c0_52 = arith.constant 0 : index
    %c0_53 = arith.constant 0 : index
    %92 = vector.load %arg13[%c0_51, %c0_52, %c0_53] : memref<2x18x64xf32, #tpu.memory_space<vmem>>, vector<2x18x64xf32>
    %93 = arith.truncf %92 : vector<2x18x64xf32> to vector<2x18x64xbf16>
    %cst_54 = arith.constant 0.000000e+00 : f32
    %94 = vector.broadcast %cst_54 : f32 to vector<32x64xf32>
    %95 = vector.extract_strided_slice %93 {offsets = [0, 0, 0], sizes = [2, 16, 64], strides = [1, 1, 1]} : vector<2x18x64xbf16> to vector<2x16x64xbf16>
    %96 = vector.shape_cast %95 : vector<2x16x64xbf16> to vector<32x64xbf16>
    %c0_55 = arith.constant 0 : index
    %c0_56 = arith.constant 0 : index
    %c0_57 = arith.constant 0 : index
    %97 = vector.load %arg4[%c0_55, %c0_56, %c0_57] : memref<3x64x64xbf16, #tpu.memory_space<vmem>>, vector<1x64x64xbf16>
    %98 = vector.shape_cast %97 : vector<1x64x64xbf16> to vector<64x64xbf16>
    %cst_58 = arith.constant dense<0.000000e+00> : vector<32x64xf32>
    %99 = tpu.matmul %96, %98, %cst_58 {dimension_numbers = #tpu.dot_dimension_numbers<[1], [0], [0], [1], [0, 0, 1, 1], [], []>} : vector<32x64xbf16>, vector<64x64xbf16>, vector<32x64xf32> -> vector<32x64xf32>
    %100 = arith.addf %94, %99 : vector<32x64xf32>
    %101 = vector.extract_strided_slice %93 {offsets = [0, 1, 0], sizes = [2, 16, 64], strides = [1, 1, 1]} : vector<2x18x64xbf16> to vector<2x16x64xbf16>
    %102 = vector.shape_cast %101 : vector<2x16x64xbf16> to vector<32x64xbf16>
    %c1_59 = arith.constant 1 : index
    %c0_60 = arith.constant 0 : index
    %c0_61 = arith.constant 0 : index
    %103 = vector.load %arg4[%c1_59, %c0_60, %c0_61] : memref<3x64x64xbf16, #tpu.memory_space<vmem>>, vector<1x64x64xbf16>
    %104 = vector.shape_cast %103 : vector<1x64x64xbf16> to vector<64x64xbf16>
    %cst_62 = arith.constant dense<0.000000e+00> : vector<32x64xf32>
    %105 = tpu.matmul %102, %104, %cst_62 {dimension_numbers = #tpu.dot_dimension_numbers<[1], [0], [0], [1], [0, 0, 1, 1], [], []>} : vector<32x64xbf16>, vector<64x64xbf16>, vector<32x64xf32> -> vector<32x64xf32>
    %106 = arith.addf %100, %105 : vector<32x64xf32>
    %107 = vector.extract_strided_slice %93 {offsets = [0, 2, 0], sizes = [2, 16, 64], strides = [1, 1, 1]} : vector<2x18x64xbf16> to vector<2x16x64xbf16>
    %108 = vector.shape_cast %107 : vector<2x16x64xbf16> to vector<32x64xbf16>
    %c2_63 = arith.constant 2 : index
    %c0_64 = arith.constant 0 : index
    %c0_65 = arith.constant 0 : index
    %109 = vector.load %arg4[%c2_63, %c0_64, %c0_65] : memref<3x64x64xbf16, #tpu.memory_space<vmem>>, vector<1x64x64xbf16>
    %110 = vector.shape_cast %109 : vector<1x64x64xbf16> to vector<64x64xbf16>
    %cst_66 = arith.constant dense<0.000000e+00> : vector<32x64xf32>
    %111 = tpu.matmul %108, %110, %cst_66 {dimension_numbers = #tpu.dot_dimension_numbers<[1], [0], [0], [1], [0, 0, 1, 1], [], []>} : vector<32x64xbf16>, vector<64x64xbf16>, vector<32x64xf32> -> vector<32x64xf32>
    %112 = arith.addf %106, %111 : vector<32x64xf32>
    %cst_67 = arith.constant dense<0.000000e+00> : vector<64xf32>
    %113 = vector.multi_reduction <add>, %112, %cst_67 [0] : vector<32x64xf32> to vector<64xf32>
    %114 = vector.shape_cast %113 : vector<64xf32> to vector<1x64xf32>
    %115 = arith.mulf %112, %112 : vector<32x64xf32>
    %cst_68 = arith.constant dense<0.000000e+00> : vector<64xf32>
    %116 = vector.multi_reduction <add>, %115, %cst_68 [0] : vector<32x64xf32> to vector<64xf32>
    %117 = vector.shape_cast %116 : vector<64xf32> to vector<1x64xf32>
    %118 = tpu.concatenate %114, %117 in 0 : vector<1x64xf32>, vector<1x64xf32> -> vector<2x64xf32>
    %cst_69 = arith.constant dense<0.000000e+00> : vector<2x64xf32>
    %119 = tpu.matmul %118, %4, %cst_69 {dimension_numbers = #tpu.dot_dimension_numbers<[1], [0], [0], [1], [0, 0, 1, 1], [], []>} : vector<2x64xf32>, vector<64x64xf32>, vector<2x64xf32> -> vector<2x64xf32>
    %120 = vector.extract_strided_slice %119 {offsets = [0, 0], sizes = [1, 64], strides = [1, 1]} : vector<2x64xf32> to vector<1x64xf32>
    %121 = vector.extract_strided_slice %119 {offsets = [1, 0], sizes = [1, 64], strides = [1, 1]} : vector<2x64xf32> to vector<1x64xf32>
    %122 = arith.mulf %120, %120 : vector<1x64xf32>
    %123 = arith.subf %121, %122 : vector<1x64xf32>
    %124 = vector.broadcast %120 : vector<1x64xf32> to vector<32x64xf32>
    %125 = arith.subf %112, %124 : vector<32x64xf32>
    %cst_70 = arith.constant 9.99999974E-6 : f32
    %126 = vector.broadcast %cst_70 : f32 to vector<1x64xf32>
    %127 = arith.addf %123, %126 : vector<1x64xf32>
    %128 = math.rsqrt %127 : vector<1x64xf32>
    %129 = vector.broadcast %128 : vector<1x64xf32> to vector<32x64xf32>
    %130 = arith.mulf %125, %129 : vector<32x64xf32>
    %cst_71 = arith.constant 0.000000e+00 : f32
    %131 = vector.broadcast %cst_71 : f32 to vector<32x64xf32>
    %132 = arith.maximumf %130, %131 : vector<32x64xf32>
    %133 = vector.shape_cast %132 : vector<32x64xf32> to vector<2x16x64xf32>
    %c0_72 = arith.constant 0 : index
    %c1_73 = arith.constant 1 : index
    %c0_74 = arith.constant 0 : index
    %134 = vector.load %arg13[%c0_72, %c1_73, %c0_74] : memref<2x18x64xf32, #tpu.memory_space<vmem>>, vector<2x16x64xf32>
    tpu.vector_store %arg13[%c0_72, %c1_73, %c0_74], %133 {strides = array<i32>} : memref<2x18x64xf32, #tpu.memory_space<vmem>>, vector<2x16x64xf32>,
    %c0_75 = arith.constant 0 : index
    %c0_76 = arith.constant 0 : index
    %c0_77 = arith.constant 0 : index
    %135 = vector.load %arg13[%c0_75, %c0_76, %c0_77] : memref<2x18x64xf32, #tpu.memory_space<vmem>>, vector<2x18x64xf32>
    %136 = arith.truncf %135 : vector<2x18x64xf32> to vector<2x18x64xbf16>
    %cst_78 = arith.constant 0.000000e+00 : f32
    %137 = vector.broadcast %cst_78 : f32 to vector<32x128xf32>
    %138 = vector.extract_strided_slice %136 {offsets = [0, 0, 0], sizes = [2, 16, 64], strides = [1, 1, 1]} : vector<2x18x64xbf16> to vector<2x16x64xbf16>
    %139 = vector.shape_cast %138 : vector<2x16x64xbf16> to vector<32x64xbf16>
    %c0_79 = arith.constant 0 : index
    %c0_80 = arith.constant 0 : index
    %c0_81 = arith.constant 0 : index
    %140 = vector.load %arg5[%c0_79, %c0_80, %c0_81] : memref<3x64x128xbf16, #tpu.memory_space<vmem>>, vector<1x64x128xbf16>
    %141 = vector.shape_cast %140 : vector<1x64x128xbf16> to vector<64x128xbf16>
    %cst_82 = arith.constant dense<0.000000e+00> : vector<32x128xf32>
    %142 = tpu.matmul %139, %141, %cst_82 {dimension_numbers = #tpu.dot_dimension_numbers<[1], [0], [0], [1], [0, 0, 1, 1], [], []>} : vector<32x64xbf16>, vector<64x128xbf16>, vector<32x128xf32> -> vector<32x128xf32>
    %143 = arith.addf %137, %142 : vector<32x128xf32>
    %144 = vector.extract_strided_slice %136 {offsets = [0, 1, 0], sizes = [2, 16, 64], strides = [1, 1, 1]} : vector<2x18x64xbf16> to vector<2x16x64xbf16>
    %145 = vector.shape_cast %144 : vector<2x16x64xbf16> to vector<32x64xbf16>
    %c1_83 = arith.constant 1 : index
    %c0_84 = arith.constant 0 : index
    %c0_85 = arith.constant 0 : index
    %146 = vector.load %arg5[%c1_83, %c0_84, %c0_85] : memref<3x64x128xbf16, #tpu.memory_space<vmem>>, vector<1x64x128xbf16>
    %147 = vector.shape_cast %146 : vector<1x64x128xbf16> to vector<64x128xbf16>
    %cst_86 = arith.constant dense<0.000000e+00> : vector<32x128xf32>
    %148 = tpu.matmul %145, %147, %cst_86 {dimension_numbers = #tpu.dot_dimension_numbers<[1], [0], [0], [1], [0, 0, 1, 1], [], []>} : vector<32x64xbf16>, vector<64x128xbf16>, vector<32x128xf32> -> vector<32x128xf32>
    %149 = arith.addf %143, %148 : vector<32x128xf32>
    %150 = vector.extract_strided_slice %136 {offsets = [0, 2, 0], sizes = [2, 16, 64], strides = [1, 1, 1]} : vector<2x18x64xbf16> to vector<2x16x64xbf16>
    %151 = vector.shape_cast %150 : vector<2x16x64xbf16> to vector<32x64xbf16>
    %c2_87 = arith.constant 2 : index
    %c0_88 = arith.constant 0 : index
    %c0_89 = arith.constant 0 : index
    %152 = vector.load %arg5[%c2_87, %c0_88, %c0_89] : memref<3x64x128xbf16, #tpu.memory_space<vmem>>, vector<1x64x128xbf16>
    %153 = vector.shape_cast %152 : vector<1x64x128xbf16> to vector<64x128xbf16>
    %cst_90 = arith.constant dense<0.000000e+00> : vector<32x128xf32>
    %154 = tpu.matmul %151, %153, %cst_90 {dimension_numbers = #tpu.dot_dimension_numbers<[1], [0], [0], [1], [0, 0, 1, 1], [], []>} : vector<32x64xbf16>, vector<64x128xbf16>, vector<32x128xf32> -> vector<32x128xf32>
    %155 = arith.addf %149, %154 : vector<32x128xf32>
    %cst_91 = arith.constant dense<0.000000e+00> : vector<128xf32>
    %156 = vector.multi_reduction <add>, %155, %cst_91 [0] : vector<32x128xf32> to vector<128xf32>
    %157 = vector.shape_cast %156 : vector<128xf32> to vector<1x128xf32>
    %158 = arith.mulf %155, %155 : vector<32x128xf32>
    %cst_92 = arith.constant dense<0.000000e+00> : vector<128xf32>
    %159 = vector.multi_reduction <add>, %158, %cst_92 [0] : vector<32x128xf32> to vector<128xf32>
    %160 = vector.shape_cast %159 : vector<128xf32> to vector<1x128xf32>
    %161 = tpu.concatenate %157, %160 in 0 : vector<1x128xf32>, vector<1x128xf32> -> vector<2x128xf32>
    %cst_93 = arith.constant dense<0.000000e+00> : vector<2x128xf32>
    %162 = tpu.matmul %161, %3, %cst_93 {dimension_numbers = #tpu.dot_dimension_numbers<[1], [0], [0], [1], [0, 0, 1, 1], [], []>} : vector<2x128xf32>, vector<128x128xf32>, vector<2x128xf32> -> vector<2x128xf32>
    %163 = vector.extract_strided_slice %162 {offsets = [0, 0], sizes = [1, 128], strides = [1, 1]} : vector<2x128xf32> to vector<1x128xf32>
    %164 = vector.extract_strided_slice %162 {offsets = [1, 0], sizes = [1, 128], strides = [1, 1]} : vector<2x128xf32> to vector<1x128xf32>
    %165 = arith.mulf %163, %163 : vector<1x128xf32>
    %166 = arith.subf %164, %165 : vector<1x128xf32>
    %167 = vector.broadcast %163 : vector<1x128xf32> to vector<32x128xf32>
    %168 = arith.subf %155, %167 : vector<32x128xf32>
    %cst_94 = arith.constant 9.99999974E-6 : f32
    %169 = vector.broadcast %cst_94 : f32 to vector<1x128xf32>
    %170 = arith.addf %166, %169 : vector<1x128xf32>
    %171 = math.rsqrt %170 : vector<1x128xf32>
    %172 = vector.broadcast %171 : vector<1x128xf32> to vector<32x128xf32>
    %173 = arith.mulf %168, %172 : vector<32x128xf32>
    %cst_95 = arith.constant 0.000000e+00 : f32
    %174 = vector.broadcast %cst_95 : f32 to vector<32x128xf32>
    %175 = arith.maximumf %173, %174 : vector<32x128xf32>
    %cst_96 = arith.constant 2.500000e-01 : f32
    %176 = vector.broadcast %cst_96 : f32 to vector<32x128xf32>
    %177 = arith.mulf %176, %175 : vector<32x128xf32>
    %178 = arith.addf %5, %177 : vector<32x128xf32>
    %179 = vector.shape_cast %178 : vector<32x128xf32> to vector<2x16x128xf32>
    %c0_97 = arith.constant 0 : index
    %c1_98 = arith.constant 1 : index
    %c0_99 = arith.constant 0 : index
    %180 = vector.load %arg12[%c0_97, %c1_98, %c0_99] : memref<2x18x128xf32, #tpu.memory_space<vmem>>, vector<2x16x128xf32>
    tpu.vector_store %arg12[%c0_97, %c1_98, %c0_99], %179 {strides = array<i32>} : memref<2x18x128xf32, #tpu.memory_space<vmem>>, vector<2x16x128xf32>,
    %c0_100 = arith.constant 0 : index
    %c0_101 = arith.constant 0 : index
    %c0_102 = arith.constant 0 : index
    %181 = vector.load %arg12[%c0_100, %c0_101, %c0_102] : memref<2x18x128xf32, #tpu.memory_space<vmem>>, vector<2x18x128xf32>
    %182 = arith.truncf %181 : vector<2x18x128xf32> to vector<2x18x128xbf16>
    %cst_103 = arith.constant 0.000000e+00 : f32
    %183 = vector.broadcast %cst_103 : f32 to vector<32x512xf32>
    %184 = vector.extract_strided_slice %182 {offsets = [0, 0, 0], sizes = [2, 16, 128], strides = [1, 1, 1]} : vector<2x18x128xbf16> to vector<2x16x128xbf16>
    %185 = vector.shape_cast %184 : vector<2x16x128xbf16> to vector<32x128xbf16>
    %c0_104 = arith.constant 0 : index
    %c0_105 = arith.constant 0 : index
    %c0_106 = arith.constant 0 : index
    %186 = vector.load %arg6[%c0_104, %c0_105, %c0_106] : memref<3x128x512xbf16, #tpu.memory_space<vmem>>, vector<1x128x512xbf16>
    %187 = vector.shape_cast %186 : vector<1x128x512xbf16> to vector<128x512xbf16>
    %cst_107 = arith.constant dense<0.000000e+00> : vector<32x512xf32>
    %188 = tpu.matmul %185, %187, %cst_107 {dimension_numbers = #tpu.dot_dimension_numbers<[1], [0], [0], [1], [0, 0, 1, 1], [], []>} : vector<32x128xbf16>, vector<128x512xbf16>, vector<32x512xf32> -> vector<32x512xf32>
    %189 = arith.addf %183, %188 : vector<32x512xf32>
    %190 = vector.extract_strided_slice %182 {offsets = [0, 1, 0], sizes = [2, 16, 128], strides = [1, 1, 1]} : vector<2x18x128xbf16> to vector<2x16x128xbf16>
    %191 = vector.shape_cast %190 : vector<2x16x128xbf16> to vector<32x128xbf16>
    %c1_108 = arith.constant 1 : index
    %c0_109 = arith.constant 0 : index
    %c0_110 = arith.constant 0 : index
    %192 = vector.load %arg6[%c1_108, %c0_109, %c0_110] : memref<3x128x512xbf16, #tpu.memory_space<vmem>>, vector<1x128x512xbf16>
    %193 = vector.shape_cast %192 : vector<1x128x512xbf16> to vector<128x512xbf16>
    %cst_111 = arith.constant dense<0.000000e+00> : vector<32x512xf32>
    %194 = tpu.matmul %191, %193, %cst_111 {dimension_numbers = #tpu.dot_dimension_numbers<[1], [0], [0], [1], [0, 0, 1, 1], [], []>} : vector<32x128xbf16>, vector<128x512xbf16>, vector<32x512xf32> -> vector<32x512xf32>
    %195 = arith.addf %189, %194 : vector<32x512xf32>
    %196 = vector.extract_strided_slice %182 {offsets = [0, 2, 0], sizes = [2, 16, 128], strides = [1, 1, 1]} : vector<2x18x128xbf16> to vector<2x16x128xbf16>
    %197 = vector.shape_cast %196 : vector<2x16x128xbf16> to vector<32x128xbf16>
    %c2_112 = arith.constant 2 : index
    %c0_113 = arith.constant 0 : index
    %c0_114 = arith.constant 0 : index
    %198 = vector.load %arg6[%c2_112, %c0_113, %c0_114] : memref<3x128x512xbf16, #tpu.memory_space<vmem>>, vector<1x128x512xbf16>
    %199 = vector.shape_cast %198 : vector<1x128x512xbf16> to vector<128x512xbf16>
    %cst_115 = arith.constant dense<0.000000e+00> : vector<32x512xf32>
    %200 = tpu.matmul %197, %199, %cst_115 {dimension_numbers = #tpu.dot_dimension_numbers<[1], [0], [0], [1], [0, 0, 1, 1], [], []>} : vector<32x128xbf16>, vector<128x512xbf16>, vector<32x512xf32> -> vector<32x512xf32>
    %201 = arith.addf %195, %200 : vector<32x512xf32>
    %c0_116 = arith.constant 0 : index
    %c0_117 = arith.constant 0 : index
    %c0_118 = arith.constant 0 : index
    %202 = vector.load %arg1[%c0_116, %c0_117, %c0_118] : memref<2x32x512xf32, #tpu.memory_space<vmem>>, vector<1x32x512xf32>
    %203 = vector.shape_cast %202 : vector<1x32x512xf32> to vector<32x512xf32>
    %204 = arith.addf %201, %203 : vector<32x512xf32>
    %205 = vector.extract_strided_slice %204 {offsets = [0, 0], sizes = [32, 128], strides = [1, 1]} : vector<32x512xf32> to vector<32x128xf32>
    %cst_119 = arith.constant 5.000000e-01 : f32
    %206 = vector.broadcast %cst_119 : f32 to vector<32x128xf32>
    %207 = arith.mulf %206, %205 : vector<32x128xf32>
    %208 = math.tanh %207 : vector<32x128xf32>
    %cst_120 = arith.constant 1.000000e+00 : f32
    %209 = vector.broadcast %cst_120 : f32 to vector<32x128xf32>
    %210 = arith.addf %209, %208 : vector<32x128xf32>
    %cst_121 = arith.constant 5.000000e-01 : f32
    %211 = vector.broadcast %cst_121 : f32 to vector<32x128xf32>
    %212 = arith.mulf %211, %210 : vector<32x128xf32>
    %213 = vector.extract_strided_slice %204 {offsets = [0, 128], sizes = [32, 128], strides = [1, 1]} : vector<32x512xf32> to vector<32x128xf32>
    %cst_122 = arith.constant 5.000000e-01 : f32
    %214 = vector.broadcast %cst_122 : f32 to vector<32x128xf32>
    %215 = arith.mulf %214, %213 : vector<32x128xf32>
    %216 = math.tanh %215 : vector<32x128xf32>
    %cst_123 = arith.constant 1.000000e+00 : f32
    %217 = vector.broadcast %cst_123 : f32 to vector<32x128xf32>
    %218 = arith.addf %217, %216 : vector<32x128xf32>
    %cst_124 = arith.constant 5.000000e-01 : f32
    %219 = vector.broadcast %cst_124 : f32 to vector<32x128xf32>
    %220 = arith.mulf %219, %218 : vector<32x128xf32>
    %221 = vector.extract_strided_slice %204 {offsets = [0, 256], sizes = [32, 128], strides = [1, 1]} : vector<32x512xf32> to vector<32x128xf32>
    %cst_125 = arith.constant 5.000000e-01 : f32
    %222 = vector.broadcast %cst_125 : f32 to vector<32x128xf32>
    %223 = arith.mulf %222, %221 : vector<32x128xf32>
    %224 = math.tanh %223 : vector<32x128xf32>
    %cst_126 = arith.constant 1.000000e+00 : f32
    %225 = vector.broadcast %cst_126 : f32 to vector<32x128xf32>
    %226 = arith.addf %225, %224 : vector<32x128xf32>
    %cst_127 = arith.constant 5.000000e-01 : f32
    %227 = vector.broadcast %cst_127 : f32 to vector<32x128xf32>
    %228 = arith.mulf %227, %226 : vector<32x128xf32>
    %229 = vector.extract_strided_slice %204 {offsets = [0, 384], sizes = [32, 128], strides = [1, 1]} : vector<32x512xf32> to vector<32x128xf32>
    %230 = math.tanh %229 : vector<32x128xf32>
    %c0_128 = arith.constant 0 : index
    %c0_129 = arith.constant 0 : index
    %231 = vector.load %arg11[%c0_128, %c0_129] : memref<32x128xf32, #tpu.memory_space<vmem>>, vector<32x128xf32>
    %232 = arith.mulf %220, %231 : vector<32x128xf32>
    %233 = arith.mulf %212, %230 : vector<32x128xf32>
    %234 = arith.addf %232, %233 : vector<32x128xf32>
    %235 = math.tanh %234 : vector<32x128xf32>
    %236 = arith.mulf %228, %235 : vector<32x128xf32>
    %c0_130 = arith.constant 0 : index
    %c0_131 = arith.constant 0 : index
    %237 = vector.load %arg11[%c0_130, %c0_131] : memref<32x128xf32, #tpu.memory_space<vmem>>, vector<32x128xf32>
    tpu.vector_store %arg11[%c0_130, %c0_131], %234 {strides = array<i32>} : memref<32x128xf32, #tpu.memory_space<vmem>>, vector<32x128xf32>,
    %c0_132 = arith.constant 0 : index
    %c0_133 = arith.constant 0 : index
    %238 = vector.load %arg10[%c0_132, %c0_133] : memref<32x128xf32, #tpu.memory_space<vmem>>, vector<32x128xf32>
    tpu.vector_store %arg10[%c0_132, %c0_133], %236 {strides = array<i32>} : memref<32x128xf32, #tpu.memory_space<vmem>>, vector<32x128xf32>,
    %239 = vector.shape_cast %236 : vector<32x128xf32> to vector<2x16x128xf32>
    %c0_134 = arith.constant 0 : index
    %c1_135 = arith.constant 1 : index
    %c0_136 = arith.constant 0 : index
    %240 = vector.load %arg12[%c0_134, %c1_135, %c0_136] : memref<2x18x128xf32, #tpu.memory_space<vmem>>, vector<2x16x128xf32>
    tpu.vector_store %arg12[%c0_134, %c1_135, %c0_136], %239 {strides = array<i32>} : memref<2x18x128xf32, #tpu.memory_space<vmem>>, vector<2x16x128xf32>,
    %c0_137 = arith.constant 0 : index
    %c0_138 = arith.constant 0 : index
    %c0_139 = arith.constant 0 : index
    %241 = vector.load %arg9[%c0_137, %c0_138, %c0_139] : memref<2x32x128xf32, #tpu.memory_space<vmem>>, vector<1x32x128xf32>
    %242 = vector.shape_cast %241 : vector<1x32x128xf32> to vector<32x128xf32>
    %243 = vector.shape_cast %236 : vector<32x128xf32> to vector<1x32x128xf32>
    tpu.vector_store %arg9[%c0_137, %c0_138, %c0_139], %243 {strides = array<i32>} : memref<2x32x128xf32, #tpu.memory_space<vmem>>, vector<1x32x128xf32>,
    %c0_140 = arith.constant 0 : index
    %c0_141 = arith.constant 0 : index
    %244 = vector.load %arg10[%c0_140, %c0_141] : memref<32x128xf32, #tpu.memory_space<vmem>>, vector<32x128xf32>
    %c0_142 = arith.constant 0 : index
    %c0_143 = arith.constant 0 : index
    %c0_144 = arith.constant 0 : index
    %245 = vector.load %arg12[%c0_142, %c0_143, %c0_144] : memref<2x18x128xf32, #tpu.memory_space<vmem>>, vector<2x18x128xf32>
    %246 = arith.truncf %245 : vector<2x18x128xf32> to vector<2x18x128xbf16>
    %cst_145 = arith.constant 0.000000e+00 : f32
    %247 = vector.broadcast %cst_145 : f32 to vector<32x128xf32>
    %248 = vector.extract_strided_slice %246 {offsets = [0, 0, 0], sizes = [2, 16, 128], strides = [1, 1, 1]} : vector<2x18x128xbf16> to vector<2x16x128xbf16>
    %249 = vector.shape_cast %248 : vector<2x16x128xbf16> to vector<32x128xbf16>
    %c0_146 = arith.constant 0 : index
    %c0_147 = arith.constant 0 : index
    %c0_148 = arith.constant 0 : index
    %250 = vector.load %arg2[%c0_146, %c0_147, %c0_148] : memref<3x128x128xbf16, #tpu.memory_space<vmem>>, vector<1x128x128xbf16>
    %251 = vector.shape_cast %250 : vector<1x128x128xbf16> to vector<128x128xbf16>
    %cst_149 = arith.constant dense<0.000000e+00> : vector<32x128xf32>
    %252 = tpu.matmul %249, %251, %cst_149 {dimension_numbers = #tpu.dot_dimension_numbers<[1], [0], [0], [1], [0, 0, 1, 1], [], []>} : vector<32x128xbf16>, vector<128x128xbf16>, vector<32x128xf32> -> vector<32x128xf32>
    %253 = arith.addf %247, %252 : vector<32x128xf32>
    %254 = vector.extract_strided_slice %246 {offsets = [0, 1, 0], sizes = [2, 16, 128], strides = [1, 1, 1]} : vector<2x18x128xbf16> to vector<2x16x128xbf16>
    %255 = vector.shape_cast %254 : vector<2x16x128xbf16> to vector<32x128xbf16>
    %c1_150 = arith.constant 1 : index
    %c0_151 = arith.constant 0 : index
    %c0_152 = arith.constant 0 : index
    %256 = vector.load %arg2[%c1_150, %c0_151, %c0_152] : memref<3x128x128xbf16, #tpu.memory_space<vmem>>, vector<1x128x128xbf16>
    %257 = vector.shape_cast %256 : vector<1x128x128xbf16> to vector<128x128xbf16>
    %cst_153 = arith.constant dense<0.000000e+00> : vector<32x128xf32>
    %258 = tpu.matmul %255, %257, %cst_153 {dimension_numbers = #tpu.dot_dimension_numbers<[1], [0], [0], [1], [0, 0, 1, 1], [], []>} : vector<32x128xbf16>, vector<128x128xbf16>, vector<32x128xf32> -> vector<32x128xf32>
    %259 = arith.addf %253, %258 : vector<32x128xf32>
    %260 = vector.extract_strided_slice %246 {offsets = [0, 2, 0], sizes = [2, 16, 128], strides = [1, 1, 1]} : vector<2x18x128xbf16> to vector<2x16x128xbf16>
    %261 = vector.shape_cast %260 : vector<2x16x128xbf16> to vector<32x128xbf16>
    %c2_154 = arith.constant 2 : index
    %c0_155 = arith.constant 0 : index
    %c0_156 = arith.constant 0 : index
    %262 = vector.load %arg2[%c2_154, %c0_155, %c0_156] : memref<3x128x128xbf16, #tpu.memory_space<vmem>>, vector<1x128x128xbf16>
    %263 = vector.shape_cast %262 : vector<1x128x128xbf16> to vector<128x128xbf16>
    %cst_157 = arith.constant dense<0.000000e+00> : vector<32x128xf32>
    %264 = tpu.matmul %261, %263, %cst_157 {dimension_numbers = #tpu.dot_dimension_numbers<[1], [0], [0], [1], [0, 0, 1, 1], [], []>} : vector<32x128xbf16>, vector<128x128xbf16>, vector<32x128xf32> -> vector<32x128xf32>
    %265 = arith.addf %259, %264 : vector<32x128xf32>
    %cst_158 = arith.constant dense<0.000000e+00> : vector<128xf32>
    %266 = vector.multi_reduction <add>, %265, %cst_158 [0] : vector<32x128xf32> to vector<128xf32>
    %267 = vector.shape_cast %266 : vector<128xf32> to vector<1x128xf32>
    %268 = arith.mulf %265, %265 : vector<32x128xf32>
    %cst_159 = arith.constant dense<0.000000e+00> : vector<128xf32>
    %269 = vector.multi_reduction <add>, %268, %cst_159 [0] : vector<32x128xf32> to vector<128xf32>
    %270 = vector.shape_cast %269 : vector<128xf32> to vector<1x128xf32>
    %271 = tpu.concatenate %267, %270 in 0 : vector<1x128xf32>, vector<1x128xf32> -> vector<2x128xf32>
    %cst_160 = arith.constant dense<0.000000e+00> : vector<2x128xf32>
    %272 = tpu.matmul %271, %3, %cst_160 {dimension_numbers = #tpu.dot_dimension_numbers<[1], [0], [0], [1], [0, 0, 1, 1], [], []>} : vector<2x128xf32>, vector<128x128xf32>, vector<2x128xf32> -> vector<2x128xf32>
    %273 = vector.extract_strided_slice %272 {offsets = [0, 0], sizes = [1, 128], strides = [1, 1]} : vector<2x128xf32> to vector<1x128xf32>
    %274 = vector.extract_strided_slice %272 {offsets = [1, 0], sizes = [1, 128], strides = [1, 1]} : vector<2x128xf32> to vector<1x128xf32>
    %275 = arith.mulf %273, %273 : vector<1x128xf32>
    %276 = arith.subf %274, %275 : vector<1x128xf32>
    %277 = vector.broadcast %273 : vector<1x128xf32> to vector<32x128xf32>
    %278 = arith.subf %265, %277 : vector<32x128xf32>
    %cst_161 = arith.constant 9.99999974E-6 : f32
    %279 = vector.broadcast %cst_161 : f32 to vector<1x128xf32>
    %280 = arith.addf %276, %279 : vector<1x128xf32>
    %281 = math.rsqrt %280 : vector<1x128xf32>
    %282 = vector.broadcast %281 : vector<1x128xf32> to vector<32x128xf32>
    %283 = arith.mulf %278, %282 : vector<32x128xf32>
    %cst_162 = arith.constant 0.000000e+00 : f32
    %284 = vector.broadcast %cst_162 : f32 to vector<32x128xf32>
    %285 = arith.maximumf %283, %284 : vector<32x128xf32>
    %286 = vector.shape_cast %285 : vector<32x128xf32> to vector<2x16x128xf32>
    %c0_163 = arith.constant 0 : index
    %c1_164 = arith.constant 1 : index
    %c0_165 = arith.constant 0 : index
    %287 = vector.load %arg12[%c0_163, %c1_164, %c0_165] : memref<2x18x128xf32, #tpu.memory_space<vmem>>, vector<2x16x128xf32>
    tpu.vector_store %arg12[%c0_163, %c1_164, %c0_165], %286 {strides = array<i32>} : memref<2x18x128xf32, #tpu.memory_space<vmem>>, vector<2x16x128xf32>,
    %c0_166 = arith.constant 0 : index
    %c0_167 = arith.constant 0 : index
    %c0_168 = arith.constant 0 : index
    %288 = vector.load %arg12[%c0_166, %c0_167, %c0_168] : memref<2x18x128xf32, #tpu.memory_space<vmem>>, vector<2x18x128xf32>
    %289 = arith.truncf %288 : vector<2x18x128xf32> to vector<2x18x128xbf16>
    %cst_169 = arith.constant 0.000000e+00 : f32
    %290 = vector.broadcast %cst_169 : f32 to vector<32x64xf32>
    %291 = vector.extract_strided_slice %289 {offsets = [0, 0, 0], sizes = [2, 16, 128], strides = [1, 1, 1]} : vector<2x18x128xbf16> to vector<2x16x128xbf16>
    %292 = vector.shape_cast %291 : vector<2x16x128xbf16> to vector<32x128xbf16>
    %c0_170 = arith.constant 0 : index
    %c0_171 = arith.constant 0 : index
    %c0_172 = arith.constant 0 : index
    %293 = vector.load %arg3[%c0_170, %c0_171, %c0_172] : memref<3x128x64xbf16, #tpu.memory_space<vmem>>, vector<1x128x64xbf16>
    %294 = vector.shape_cast %293 : vector<1x128x64xbf16> to vector<128x64xbf16>
    %cst_173 = arith.constant dense<0.000000e+00> : vector<32x64xf32>
    %295 = tpu.matmul %292, %294, %cst_173 {dimension_numbers = #tpu.dot_dimension_numbers<[1], [0], [0], [1], [0, 0, 1, 1], [], []>} : vector<32x128xbf16>, vector<128x64xbf16>, vector<32x64xf32> -> vector<32x64xf32>
    %296 = arith.addf %290, %295 : vector<32x64xf32>
    %297 = vector.extract_strided_slice %289 {offsets = [0, 1, 0], sizes = [2, 16, 128], strides = [1, 1, 1]} : vector<2x18x128xbf16> to vector<2x16x128xbf16>
    %298 = vector.shape_cast %297 : vector<2x16x128xbf16> to vector<32x128xbf16>
    %c1_174 = arith.constant 1 : index
    %c0_175 = arith.constant 0 : index
    %c0_176 = arith.constant 0 : index
    %299 = vector.load %arg3[%c1_174, %c0_175, %c0_176] : memref<3x128x64xbf16, #tpu.memory_space<vmem>>, vector<1x128x64xbf16>
    %300 = vector.shape_cast %299 : vector<1x128x64xbf16> to vector<128x64xbf16>
    %cst_177 = arith.constant dense<0.000000e+00> : vector<32x64xf32>
    %301 = tpu.matmul %298, %300, %cst_177 {dimension_numbers = #tpu.dot_dimension_numbers<[1], [0], [0], [1], [0, 0, 1, 1], [], []>} : vector<32x128xbf16>, vector<128x64xbf16>, vector<32x64xf32> -> vector<32x64xf32>
    %302 = arith.addf %296, %301 : vector<32x64xf32>
    %303 = vector.extract_strided_slice %289 {offsets = [0, 2, 0], sizes = [2, 16, 128], strides = [1, 1, 1]} : vector<2x18x128xbf16> to vector<2x16x128xbf16>
    %304 = vector.shape_cast %303 : vector<2x16x128xbf16> to vector<32x128xbf16>
    %c2_178 = arith.constant 2 : index
    %c0_179 = arith.constant 0 : index
    %c0_180 = arith.constant 0 : index
    %305 = vector.load %arg3[%c2_178, %c0_179, %c0_180] : memref<3x128x64xbf16, #tpu.memory_space<vmem>>, vector<1x128x64xbf16>
    %306 = vector.shape_cast %305 : vector<1x128x64xbf16> to vector<128x64xbf16>
    %cst_181 = arith.constant dense<0.000000e+00> : vector<32x64xf32>
    %307 = tpu.matmul %304, %306, %cst_181 {dimension_numbers = #tpu.dot_dimension_numbers<[1], [0], [0], [1], [0, 0, 1, 1], [], []>} : vector<32x128xbf16>, vector<128x64xbf16>, vector<32x64xf32> -> vector<32x64xf32>
    %308 = arith.addf %302, %307 : vector<32x64xf32>
    %cst_182 = arith.constant dense<0.000000e+00> : vector<64xf32>
    %309 = vector.multi_reduction <add>, %308, %cst_182 [0] : vector<32x64xf32> to vector<64xf32>
    %310 = vector.shape_cast %309 : vector<64xf32> to vector<1x64xf32>
    %311 = arith.mulf %308, %308 : vector<32x64xf32>
    %cst_183 = arith.constant dense<0.000000e+00> : vector<64xf32>
    %312 = vector.multi_reduction <add>, %311, %cst_183 [0] : vector<32x64xf32> to vector<64xf32>
    %313 = vector.shape_cast %312 : vector<64xf32> to vector<1x64xf32>
    %314 = tpu.concatenate %310, %313 in 0 : vector<1x64xf32>, vector<1x64xf32> -> vector<2x64xf32>
    %cst_184 = arith.constant dense<0.000000e+00> : vector<2x64xf32>
    %315 = tpu.matmul %314, %4, %cst_184 {dimension_numbers = #tpu.dot_dimension_numbers<[1], [0], [0], [1], [0, 0, 1, 1], [], []>} : vector<2x64xf32>, vector<64x64xf32>, vector<2x64xf32> -> vector<2x64xf32>
    %316 = vector.extract_strided_slice %315 {offsets = [0, 0], sizes = [1, 64], strides = [1, 1]} : vector<2x64xf32> to vector<1x64xf32>
    %317 = vector.extract_strided_slice %315 {offsets = [1, 0], sizes = [1, 64], strides = [1, 1]} : vector<2x64xf32> to vector<1x64xf32>
    %318 = arith.mulf %316, %316 : vector<1x64xf32>
    %319 = arith.subf %317, %318 : vector<1x64xf32>
    %320 = vector.broadcast %316 : vector<1x64xf32> to vector<32x64xf32>
    %321 = arith.subf %308, %320 : vector<32x64xf32>
    %cst_185 = arith.constant 9.99999974E-6 : f32
    %322 = vector.broadcast %cst_185 : f32 to vector<1x64xf32>
    %323 = arith.addf %319, %322 : vector<1x64xf32>
    %324 = math.rsqrt %323 : vector<1x64xf32>
    %325 = vector.broadcast %324 : vector<1x64xf32> to vector<32x64xf32>
    %326 = arith.mulf %321, %325 : vector<32x64xf32>
    %cst_186 = arith.constant 0.000000e+00 : f32
    %327 = vector.broadcast %cst_186 : f32 to vector<32x64xf32>
    %328 = arith.maximumf %326, %327 : vector<32x64xf32>
    %329 = vector.shape_cast %328 : vector<32x64xf32> to vector<2x16x64xf32>
    %c0_187 = arith.constant 0 : index
    %c1_188 = arith.constant 1 : index
    %c0_189 = arith.constant 0 : index
    %330 = vector.load %arg13[%c0_187, %c1_188, %c0_189] : memref<2x18x64xf32, #tpu.memory_space<vmem>>, vector<2x16x64xf32>
    tpu.vector_store %arg13[%c0_187, %c1_188, %c0_189], %329 {strides = array<i32>} : memref<2x18x64xf32, #tpu.memory_space<vmem>>, vector<2x16x64xf32>,
    %c0_190 = arith.constant 0 : index
    %c0_191 = arith.constant 0 : index
    %c0_192 = arith.constant 0 : index
    %331 = vector.load %arg13[%c0_190, %c0_191, %c0_192] : memref<2x18x64xf32, #tpu.memory_space<vmem>>, vector<2x18x64xf32>
    %332 = arith.truncf %331 : vector<2x18x64xf32> to vector<2x18x64xbf16>
    %cst_193 = arith.constant 0.000000e+00 : f32
    %333 = vector.broadcast %cst_193 : f32 to vector<32x64xf32>
    %334 = vector.extract_strided_slice %332 {offsets = [0, 0, 0], sizes = [2, 16, 64], strides = [1, 1, 1]} : vector<2x18x64xbf16> to vector<2x16x64xbf16>
    %335 = vector.shape_cast %334 : vector<2x16x64xbf16> to vector<32x64xbf16>
    %c0_194 = arith.constant 0 : index
    %c0_195 = arith.constant 0 : index
    %c0_196 = arith.constant 0 : index
    %336 = vector.load %arg4[%c0_194, %c0_195, %c0_196] : memref<3x64x64xbf16, #tpu.memory_space<vmem>>, vector<1x64x64xbf16>
    %337 = vector.shape_cast %336 : vector<1x64x64xbf16> to vector<64x64xbf16>
    %cst_197 = arith.constant dense<0.000000e+00> : vector<32x64xf32>
    %338 = tpu.matmul %335, %337, %cst_197 {dimension_numbers = #tpu.dot_dimension_numbers<[1], [0], [0], [1], [0, 0, 1, 1], [], []>} : vector<32x64xbf16>, vector<64x64xbf16>, vector<32x64xf32> -> vector<32x64xf32>
    %339 = arith.addf %333, %338 : vector<32x64xf32>
    %340 = vector.extract_strided_slice %332 {offsets = [0, 1, 0], sizes = [2, 16, 64], strides = [1, 1, 1]} : vector<2x18x64xbf16> to vector<2x16x64xbf16>
    %341 = vector.shape_cast %340 : vector<2x16x64xbf16> to vector<32x64xbf16>
    %c1_198 = arith.constant 1 : index
    %c0_199 = arith.constant 0 : index
    %c0_200 = arith.constant 0 : index
    %342 = vector.load %arg4[%c1_198, %c0_199, %c0_200] : memref<3x64x64xbf16, #tpu.memory_space<vmem>>, vector<1x64x64xbf16>
    %343 = vector.shape_cast %342 : vector<1x64x64xbf16> to vector<64x64xbf16>
    %cst_201 = arith.constant dense<0.000000e+00> : vector<32x64xf32>
    %344 = tpu.matmul %341, %343, %cst_201 {dimension_numbers = #tpu.dot_dimension_numbers<[1], [0], [0], [1], [0, 0, 1, 1], [], []>} : vector<32x64xbf16>, vector<64x64xbf16>, vector<32x64xf32> -> vector<32x64xf32>
    %345 = arith.addf %339, %344 : vector<32x64xf32>
    %346 = vector.extract_strided_slice %332 {offsets = [0, 2, 0], sizes = [2, 16, 64], strides = [1, 1, 1]} : vector<2x18x64xbf16> to vector<2x16x64xbf16>
    %347 = vector.shape_cast %346 : vector<2x16x64xbf16> to vector<32x64xbf16>
    %c2_202 = arith.constant 2 : index
    %c0_203 = arith.constant 0 : index
    %c0_204 = arith.constant 0 : index
    %348 = vector.load %arg4[%c2_202, %c0_203, %c0_204] : memref<3x64x64xbf16, #tpu.memory_space<vmem>>, vector<1x64x64xbf16>
    %349 = vector.shape_cast %348 : vector<1x64x64xbf16> to vector<64x64xbf16>
    %cst_205 = arith.constant dense<0.000000e+00> : vector<32x64xf32>
    %350 = tpu.matmul %347, %349, %cst_205 {dimension_numbers = #tpu.dot_dimension_numbers<[1], [0], [0], [1], [0, 0, 1, 1], [], []>} : vector<32x64xbf16>, vector<64x64xbf16>, vector<32x64xf32> -> vector<32x64xf32>
    %351 = arith.addf %345, %350 : vector<32x64xf32>
    %cst_206 = arith.constant dense<0.000000e+00> : vector<64xf32>
    %352 = vector.multi_reduction <add>, %351, %cst_206 [0] : vector<32x64xf32> to vector<64xf32>
    %353 = vector.shape_cast %352 : vector<64xf32> to vector<1x64xf32>
    %354 = arith.mulf %351, %351 : vector<32x64xf32>
    %cst_207 = arith.constant dense<0.000000e+00> : vector<64xf32>
    %355 = vector.multi_reduction <add>, %354, %cst_207 [0] : vector<32x64xf32> to vector<64xf32>
    %356 = vector.shape_cast %355 : vector<64xf32> to vector<1x64xf32>
    %357 = tpu.concatenate %353, %356 in 0 : vector<1x64xf32>, vector<1x64xf32> -> vector<2x64xf32>
    %cst_208 = arith.constant dense<0.000000e+00> : vector<2x64xf32>
    %358 = tpu.matmul %357, %4, %cst_208 {dimension_numbers = #tpu.dot_dimension_numbers<[1], [0], [0], [1], [0, 0, 1, 1], [], []>} : vector<2x64xf32>, vector<64x64xf32>, vector<2x64xf32> -> vector<2x64xf32>
    %359 = vector.extract_strided_slice %358 {offsets = [0, 0], sizes = [1, 64], strides = [1, 1]} : vector<2x64xf32> to vector<1x64xf32>
    %360 = vector.extract_strided_slice %358 {offsets = [1, 0], sizes = [1, 64], strides = [1, 1]} : vector<2x64xf32> to vector<1x64xf32>
    %361 = arith.mulf %359, %359 : vector<1x64xf32>
    %362 = arith.subf %360, %361 : vector<1x64xf32>
    %363 = vector.broadcast %359 : vector<1x64xf32> to vector<32x64xf32>
    %364 = arith.subf %351, %363 : vector<32x64xf32>
    %cst_209 = arith.constant 9.99999974E-6 : f32
    %365 = vector.broadcast %cst_209 : f32 to vector<1x64xf32>
    %366 = arith.addf %362, %365 : vector<1x64xf32>
    %367 = math.rsqrt %366 : vector<1x64xf32>
    %368 = vector.broadcast %367 : vector<1x64xf32> to vector<32x64xf32>
    %369 = arith.mulf %364, %368 : vector<32x64xf32>
    %cst_210 = arith.constant 0.000000e+00 : f32
    %370 = vector.broadcast %cst_210 : f32 to vector<32x64xf32>
    %371 = arith.maximumf %369, %370 : vector<32x64xf32>
    %372 = vector.shape_cast %371 : vector<32x64xf32> to vector<2x16x64xf32>
    %c0_211 = arith.constant 0 : index
    %c1_212 = arith.constant 1 : index
    %c0_213 = arith.constant 0 : index
    %373 = vector.load %arg13[%c0_211, %c1_212, %c0_213] : memref<2x18x64xf32, #tpu.memory_space<vmem>>, vector<2x16x64xf32>
    tpu.vector_store %arg13[%c0_211, %c1_212, %c0_213], %372 {strides = array<i32>} : memref<2x18x64xf32, #tpu.memory_space<vmem>>, vector<2x16x64xf32>,
    %c0_214 = arith.constant 0 : index
    %c0_215 = arith.constant 0 : index
    %c0_216 = arith.constant 0 : index
    %374 = vector.load %arg13[%c0_214, %c0_215, %c0_216] : memref<2x18x64xf32, #tpu.memory_space<vmem>>, vector<2x18x64xf32>
    %375 = arith.truncf %374 : vector<2x18x64xf32> to vector<2x18x64xbf16>
    %cst_217 = arith.constant 0.000000e+00 : f32
    %376 = vector.broadcast %cst_217 : f32 to vector<32x128xf32>
    %377 = vector.extract_strided_slice %375 {offsets = [0, 0, 0], sizes = [2, 16, 64], strides = [1, 1, 1]} : vector<2x18x64xbf16> to vector<2x16x64xbf16>
    %378 = vector.shape_cast %377 : vector<2x16x64xbf16> to vector<32x64xbf16>
    %c0_218 = arith.constant 0 : index
    %c0_219 = arith.constant 0 : index
    %c0_220 = arith.constant 0 : index
    %379 = vector.load %arg5[%c0_218, %c0_219, %c0_220] : memref<3x64x128xbf16, #tpu.memory_space<vmem>>, vector<1x64x128xbf16>
    %380 = vector.shape_cast %379 : vector<1x64x128xbf16> to vector<64x128xbf16>
    %cst_221 = arith.constant dense<0.000000e+00> : vector<32x128xf32>
    %381 = tpu.matmul %378, %380, %cst_221 {dimension_numbers = #tpu.dot_dimension_numbers<[1], [0], [0], [1], [0, 0, 1, 1], [], []>} : vector<32x64xbf16>, vector<64x128xbf16>, vector<32x128xf32> -> vector<32x128xf32>
    %382 = arith.addf %376, %381 : vector<32x128xf32>
    %383 = vector.extract_strided_slice %375 {offsets = [0, 1, 0], sizes = [2, 16, 64], strides = [1, 1, 1]} : vector<2x18x64xbf16> to vector<2x16x64xbf16>
    %384 = vector.shape_cast %383 : vector<2x16x64xbf16> to vector<32x64xbf16>
    %c1_222 = arith.constant 1 : index
    %c0_223 = arith.constant 0 : index
    %c0_224 = arith.constant 0 : index
    %385 = vector.load %arg5[%c1_222, %c0_223, %c0_224] : memref<3x64x128xbf16, #tpu.memory_space<vmem>>, vector<1x64x128xbf16>
    %386 = vector.shape_cast %385 : vector<1x64x128xbf16> to vector<64x128xbf16>
    %cst_225 = arith.constant dense<0.000000e+00> : vector<32x128xf32>
    %387 = tpu.matmul %384, %386, %cst_225 {dimension_numbers = #tpu.dot_dimension_numbers<[1], [0], [0], [1], [0, 0, 1, 1], [], []>} : vector<32x64xbf16>, vector<64x128xbf16>, vector<32x128xf32> -> vector<32x128xf32>
    %388 = arith.addf %382, %387 : vector<32x128xf32>
    %389 = vector.extract_strided_slice %375 {offsets = [0, 2, 0], sizes = [2, 16, 64], strides = [1, 1, 1]} : vector<2x18x64xbf16> to vector<2x16x64xbf16>
    %390 = vector.shape_cast %389 : vector<2x16x64xbf16> to vector<32x64xbf16>
    %c2_226 = arith.constant 2 : index
    %c0_227 = arith.constant 0 : index
    %c0_228 = arith.constant 0 : index
    %391 = vector.load %arg5[%c2_226, %c0_227, %c0_228] : memref<3x64x128xbf16, #tpu.memory_space<vmem>>, vector<1x64x128xbf16>
    %392 = vector.shape_cast %391 : vector<1x64x128xbf16> to vector<64x128xbf16>
    %cst_229 = arith.constant dense<0.000000e+00> : vector<32x128xf32>
    %393 = tpu.matmul %390, %392, %cst_229 {dimension_numbers = #tpu.dot_dimension_numbers<[1], [0], [0], [1], [0, 0, 1, 1], [], []>} : vector<32x64xbf16>, vector<64x128xbf16>, vector<32x128xf32> -> vector<32x128xf32>
    %394 = arith.addf %388, %393 : vector<32x128xf32>
    %cst_230 = arith.constant dense<0.000000e+00> : vector<128xf32>
    %395 = vector.multi_reduction <add>, %394, %cst_230 [0] : vector<32x128xf32> to vector<128xf32>
    %396 = vector.shape_cast %395 : vector<128xf32> to vector<1x128xf32>
    %397 = arith.mulf %394, %394 : vector<32x128xf32>
    %cst_231 = arith.constant dense<0.000000e+00> : vector<128xf32>
    %398 = vector.multi_reduction <add>, %397, %cst_231 [0] : vector<32x128xf32> to vector<128xf32>
    %399 = vector.shape_cast %398 : vector<128xf32> to vector<1x128xf32>
    %400 = tpu.concatenate %396, %399 in 0 : vector<1x128xf32>, vector<1x128xf32> -> vector<2x128xf32>
    %cst_232 = arith.constant dense<0.000000e+00> : vector<2x128xf32>
    %401 = tpu.matmul %400, %3, %cst_232 {dimension_numbers = #tpu.dot_dimension_numbers<[1], [0], [0], [1], [0, 0, 1, 1], [], []>} : vector<2x128xf32>, vector<128x128xf32>, vector<2x128xf32> -> vector<2x128xf32>
    %402 = vector.extract_strided_slice %401 {offsets = [0, 0], sizes = [1, 128], strides = [1, 1]} : vector<2x128xf32> to vector<1x128xf32>
    %403 = vector.extract_strided_slice %401 {offsets = [1, 0], sizes = [1, 128], strides = [1, 1]} : vector<2x128xf32> to vector<1x128xf32>
    %404 = arith.mulf %402, %402 : vector<1x128xf32>
    %405 = arith.subf %403, %404 : vector<1x128xf32>
    %406 = vector.broadcast %402 : vector<1x128xf32> to vector<32x128xf32>
    %407 = arith.subf %394, %406 : vector<32x128xf32>
    %cst_233 = arith.constant 9.99999974E-6 : f32
    %408 = vector.broadcast %cst_233 : f32 to vector<1x128xf32>
    %409 = arith.addf %405, %408 : vector<1x128xf32>
    %410 = math.rsqrt %409 : vector<1x128xf32>
    %411 = vector.broadcast %410 : vector<1x128xf32> to vector<32x128xf32>
    %412 = arith.mulf %407, %411 : vector<32x128xf32>
    %cst_234 = arith.constant 0.000000e+00 : f32
    %413 = vector.broadcast %cst_234 : f32 to vector<32x128xf32>
    %414 = arith.maximumf %412, %413 : vector<32x128xf32>
    %cst_235 = arith.constant 2.500000e-01 : f32
    %415 = vector.broadcast %cst_235 : f32 to vector<32x128xf32>
    %416 = arith.mulf %415, %414 : vector<32x128xf32>
    %417 = arith.addf %244, %416 : vector<32x128xf32>
    %418 = vector.shape_cast %417 : vector<32x128xf32> to vector<2x16x128xf32>
    %c0_236 = arith.constant 0 : index
    %c1_237 = arith.constant 1 : index
    %c0_238 = arith.constant 0 : index
    %419 = vector.load %arg12[%c0_236, %c1_237, %c0_238] : memref<2x18x128xf32, #tpu.memory_space<vmem>>, vector<2x16x128xf32>
    tpu.vector_store %arg12[%c0_236, %c1_237, %c0_238], %418 {strides = array<i32>} : memref<2x18x128xf32, #tpu.memory_space<vmem>>, vector<2x16x128xf32>,
    %c0_239 = arith.constant 0 : index
    %c0_240 = arith.constant 0 : index
    %c0_241 = arith.constant 0 : index
    %420 = vector.load %arg12[%c0_239, %c0_240, %c0_241] : memref<2x18x128xf32, #tpu.memory_space<vmem>>, vector<2x18x128xf32>
    %421 = arith.truncf %420 : vector<2x18x128xf32> to vector<2x18x128xbf16>
    %cst_242 = arith.constant 0.000000e+00 : f32
    %422 = vector.broadcast %cst_242 : f32 to vector<32x512xf32>
    %423 = vector.extract_strided_slice %421 {offsets = [0, 0, 0], sizes = [2, 16, 128], strides = [1, 1, 1]} : vector<2x18x128xbf16> to vector<2x16x128xbf16>
    %424 = vector.shape_cast %423 : vector<2x16x128xbf16> to vector<32x128xbf16>
    %c0_243 = arith.constant 0 : index
    %c0_244 = arith.constant 0 : index
    %c0_245 = arith.constant 0 : index
    %425 = vector.load %arg6[%c0_243, %c0_244, %c0_245] : memref<3x128x512xbf16, #tpu.memory_space<vmem>>, vector<1x128x512xbf16>
    %426 = vector.shape_cast %425 : vector<1x128x512xbf16> to vector<128x512xbf16>
    %cst_246 = arith.constant dense<0.000000e+00> : vector<32x512xf32>
    %427 = tpu.matmul %424, %426, %cst_246 {dimension_numbers = #tpu.dot_dimension_numbers<[1], [0], [0], [1], [0, 0, 1, 1], [], []>} : vector<32x128xbf16>, vector<128x512xbf16>, vector<32x512xf32> -> vector<32x512xf32>
    %428 = arith.addf %422, %427 : vector<32x512xf32>
    %429 = vector.extract_strided_slice %421 {offsets = [0, 1, 0], sizes = [2, 16, 128], strides = [1, 1, 1]} : vector<2x18x128xbf16> to vector<2x16x128xbf16>
    %430 = vector.shape_cast %429 : vector<2x16x128xbf16> to vector<32x128xbf16>
    %c1_247 = arith.constant 1 : index
    %c0_248 = arith.constant 0 : index
    %c0_249 = arith.constant 0 : index
    %431 = vector.load %arg6[%c1_247, %c0_248, %c0_249] : memref<3x128x512xbf16, #tpu.memory_space<vmem>>, vector<1x128x512xbf16>
    %432 = vector.shape_cast %431 : vector<1x128x512xbf16> to vector<128x512xbf16>
    %cst_250 = arith.constant dense<0.000000e+00> : vector<32x512xf32>
    %433 = tpu.matmul %430, %432, %cst_250 {dimension_numbers = #tpu.dot_dimension_numbers<[1], [0], [0], [1], [0, 0, 1, 1], [], []>} : vector<32x128xbf16>, vector<128x512xbf16>, vector<32x512xf32> -> vector<32x512xf32>
    %434 = arith.addf %428, %433 : vector<32x512xf32>
    %435 = vector.extract_strided_slice %421 {offsets = [0, 2, 0], sizes = [2, 16, 128], strides = [1, 1, 1]} : vector<2x18x128xbf16> to vector<2x16x128xbf16>
    %436 = vector.shape_cast %435 : vector<2x16x128xbf16> to vector<32x128xbf16>
    %c2_251 = arith.constant 2 : index
    %c0_252 = arith.constant 0 : index
    %c0_253 = arith.constant 0 : index
    %437 = vector.load %arg6[%c2_251, %c0_252, %c0_253] : memref<3x128x512xbf16, #tpu.memory_space<vmem>>, vector<1x128x512xbf16>
    %438 = vector.shape_cast %437 : vector<1x128x512xbf16> to vector<128x512xbf16>
    %cst_254 = arith.constant dense<0.000000e+00> : vector<32x512xf32>
    %439 = tpu.matmul %436, %438, %cst_254 {dimension_numbers = #tpu.dot_dimension_numbers<[1], [0], [0], [1], [0, 0, 1, 1], [], []>} : vector<32x128xbf16>, vector<128x512xbf16>, vector<32x512xf32> -> vector<32x512xf32>
    %440 = arith.addf %434, %439 : vector<32x512xf32>
    %c1_255 = arith.constant 1 : index
    %c0_256 = arith.constant 0 : index
    %c0_257 = arith.constant 0 : index
    %441 = vector.load %arg1[%c1_255, %c0_256, %c0_257] : memref<2x32x512xf32, #tpu.memory_space<vmem>>, vector<1x32x512xf32>
    %442 = vector.shape_cast %441 : vector<1x32x512xf32> to vector<32x512xf32>
    %443 = arith.addf %440, %442 : vector<32x512xf32>
    %444 = vector.extract_strided_slice %443 {offsets = [0, 0], sizes = [32, 128], strides = [1, 1]} : vector<32x512xf32> to vector<32x128xf32>
    %cst_258 = arith.constant 5.000000e-01 : f32
    %445 = vector.broadcast %cst_258 : f32 to vector<32x128xf32>
    %446 = arith.mulf %445, %444 : vector<32x128xf32>
    %447 = math.tanh %446 : vector<32x128xf32>
    %cst_259 = arith.constant 1.000000e+00 : f32
    %448 = vector.broadcast %cst_259 : f32 to vector<32x128xf32>
    %449 = arith.addf %448, %447 : vector<32x128xf32>
    %cst_260 = arith.constant 5.000000e-01 : f32
    %450 = vector.broadcast %cst_260 : f32 to vector<32x128xf32>
    %451 = arith.mulf %450, %449 : vector<32x128xf32>
    %452 = vector.extract_strided_slice %443 {offsets = [0, 128], sizes = [32, 128], strides = [1, 1]} : vector<32x512xf32> to vector<32x128xf32>
    %cst_261 = arith.constant 5.000000e-01 : f32
    %453 = vector.broadcast %cst_261 : f32 to vector<32x128xf32>
    %454 = arith.mulf %453, %452 : vector<32x128xf32>
    %455 = math.tanh %454 : vector<32x128xf32>
    %cst_262 = arith.constant 1.000000e+00 : f32
    %456 = vector.broadcast %cst_262 : f32 to vector<32x128xf32>
    %457 = arith.addf %456, %455 : vector<32x128xf32>
    %cst_263 = arith.constant 5.000000e-01 : f32
    %458 = vector.broadcast %cst_263 : f32 to vector<32x128xf32>
    %459 = arith.mulf %458, %457 : vector<32x128xf32>
    %460 = vector.extract_strided_slice %443 {offsets = [0, 256], sizes = [32, 128], strides = [1, 1]} : vector<32x512xf32> to vector<32x128xf32>
    %cst_264 = arith.constant 5.000000e-01 : f32
    %461 = vector.broadcast %cst_264 : f32 to vector<32x128xf32>
    %462 = arith.mulf %461, %460 : vector<32x128xf32>
    %463 = math.tanh %462 : vector<32x128xf32>
    %cst_265 = arith.constant 1.000000e+00 : f32
    %464 = vector.broadcast %cst_265 : f32 to vector<32x128xf32>
    %465 = arith.addf %464, %463 : vector<32x128xf32>
    %cst_266 = arith.constant 5.000000e-01 : f32
    %466 = vector.broadcast %cst_266 : f32 to vector<32x128xf32>
    %467 = arith.mulf %466, %465 : vector<32x128xf32>
    %468 = vector.extract_strided_slice %443 {offsets = [0, 384], sizes = [32, 128], strides = [1, 1]} : vector<32x512xf32> to vector<32x128xf32>
    %469 = math.tanh %468 : vector<32x128xf32>
    %c0_267 = arith.constant 0 : index
    %c0_268 = arith.constant 0 : index
    %470 = vector.load %arg11[%c0_267, %c0_268] : memref<32x128xf32, #tpu.memory_space<vmem>>, vector<32x128xf32>
    %471 = arith.mulf %459, %470 : vector<32x128xf32>
    %472 = arith.mulf %451, %469 : vector<32x128xf32>
    %473 = arith.addf %471, %472 : vector<32x128xf32>
    %474 = math.tanh %473 : vector<32x128xf32>
    %475 = arith.mulf %467, %474 : vector<32x128xf32>
    %c0_269 = arith.constant 0 : index
    %c0_270 = arith.constant 0 : index
    %476 = vector.load %arg11[%c0_269, %c0_270] : memref<32x128xf32, #tpu.memory_space<vmem>>, vector<32x128xf32>
    tpu.vector_store %arg11[%c0_269, %c0_270], %473 {strides = array<i32>} : memref<32x128xf32, #tpu.memory_space<vmem>>, vector<32x128xf32>,
    %c0_271 = arith.constant 0 : index
    %c0_272 = arith.constant 0 : index
    %477 = vector.load %arg10[%c0_271, %c0_272] : memref<32x128xf32, #tpu.memory_space<vmem>>, vector<32x128xf32>
    tpu.vector_store %arg10[%c0_271, %c0_272], %475 {strides = array<i32>} : memref<32x128xf32, #tpu.memory_space<vmem>>, vector<32x128xf32>,
    %478 = vector.shape_cast %475 : vector<32x128xf32> to vector<2x16x128xf32>
    %c0_273 = arith.constant 0 : index
    %c1_274 = arith.constant 1 : index
    %c0_275 = arith.constant 0 : index
    %479 = vector.load %arg12[%c0_273, %c1_274, %c0_275] : memref<2x18x128xf32, #tpu.memory_space<vmem>>, vector<2x16x128xf32>
    tpu.vector_store %arg12[%c0_273, %c1_274, %c0_275], %478 {strides = array<i32>} : memref<2x18x128xf32, #tpu.memory_space<vmem>>, vector<2x16x128xf32>,
    %c1_276 = arith.constant 1 : index
    %c0_277 = arith.constant 0 : index
    %c0_278 = arith.constant 0 : index
    %480 = vector.load %arg9[%c1_276, %c0_277, %c0_278] : memref<2x32x128xf32, #tpu.memory_space<vmem>>, vector<1x32x128xf32>
    %481 = vector.shape_cast %480 : vector<1x32x128xf32> to vector<32x128xf32>
    %482 = vector.shape_cast %475 : vector<32x128xf32> to vector<1x32x128xf32>
    tpu.vector_store %arg9[%c1_276, %c0_277, %c0_278], %482 {strides = array<i32>} : memref<2x32x128xf32, #tpu.memory_space<vmem>>, vector<1x32x128xf32>,
    return
  }
  func.func @transform_0(%arg0: i32) -> (i32, i32, i32) {
    %c0_i32 = arith.constant 0 : i32
    %c0_i32_0 = arith.constant 0 : i32
    %c0_i32_1 = arith.constant 0 : i32
    return %arg0, %c0_i32, %c0_i32_0 : i32, i32, i32
  }
  func.func @transform_1(%arg0: i32) -> (i32, i32, i32) {
    %c0_i32 = arith.constant 0 : i32
    %c0_i32_0 = arith.constant 0 : i32
    %c0_i32_1 = arith.constant 0 : i32
    %c0_i32_2 = arith.constant 0 : i32
    return %c0_i32, %c0_i32_0, %c0_i32_1 : i32, i32, i32
  }
  func.func @transform_2(%arg0: i32) -> (i32, i32, i32) {
    %c0_i32 = arith.constant 0 : i32
    %c0_i32_0 = arith.constant 0 : i32
    %c0_i32_1 = arith.constant 0 : i32
    %c0_i32_2 = arith.constant 0 : i32
    return %c0_i32, %c0_i32_0, %c0_i32_1 : i32, i32, i32
  }
  func.func @transform_3(%arg0: i32) -> (i32, i32, i32) {
    %c0_i32 = arith.constant 0 : i32
    %c0_i32_0 = arith.constant 0 : i32
    %c0_i32_1 = arith.constant 0 : i32
    %c0_i32_2 = arith.constant 0 : i32
    return %c0_i32, %c0_i32_0, %c0_i32_1 : i32, i32, i32
  }
  func.func @transform_4(%arg0: i32) -> (i32, i32, i32) {
    %c0_i32 = arith.constant 0 : i32
    %c0_i32_0 = arith.constant 0 : i32
    %c0_i32_1 = arith.constant 0 : i32
    %c0_i32_2 = arith.constant 0 : i32
    return %c0_i32, %c0_i32_0, %c0_i32_1 : i32, i32, i32
  }
  func.func @transform_5(%arg0: i32) -> (i32, i32, i32) {
    %c0_i32 = arith.constant 0 : i32
    %c0_i32_0 = arith.constant 0 : i32
    %c0_i32_1 = arith.constant 0 : i32
    %c0_i32_2 = arith.constant 0 : i32
    return %c0_i32, %c0_i32_0, %c0_i32_1 : i32, i32, i32
  }
  func.func @transform_6(%arg0: i32) -> (i32, i32) {
    %c0_i32 = arith.constant 0 : i32
    %c0_i32_0 = arith.constant 0 : i32
    %c0_i32_1 = arith.constant 0 : i32
    return %c0_i32, %c0_i32_0 : i32, i32
  }
  func.func @transform_7(%arg0: i32) -> (i32, i32) {
    %c0_i32 = arith.constant 0 : i32
    %c0_i32_0 = arith.constant 0 : i32
    %c0_i32_1 = arith.constant 0 : i32
    return %c0_i32, %c0_i32_0 : i32, i32
  }
  func.func @transform_8(%arg0: i32) -> (i32, i32, i32) {
    %c0_i32 = arith.constant 0 : i32
    %c0_i32_0 = arith.constant 0 : i32
    %c0_i32_1 = arith.constant 0 : i32
    return %arg0, %c0_i32, %c0_i32_0 : i32, i32, i32
  }
}

</mosaic_0001>

<bundles_post_ra>
// kernel: convlstm_ode_forward.1
= control target key start
LH: loop header
LB: loop body
LE: loop exit
PB: predicated region body
PF: predicated region fallthrough
CT: control target
= control target key end

     0   :  { %s8724_s27 = smov 0   ;;  %s10730_s0 = inlined_call_operand.vmem [shape: f32[4,32,512], index: 0, kind: input, shape index: {}]   ;;  %s10731_s1 = inlined_call_operand.vmem [shape: bf16[3,128,128], index: 1, kind: input, shape index: {}]   ;;  %s10732_s2 = inlined_call_operand.vmem [shape: bf16[3,128,64], index: 2, kind: input, shape index: {}]   ;;  %s10733_s3 = inlined_call_operand.vmem [shape: bf16[3,64,64], index: 3, kind: input, shape index: {}]   ;;  %s10734_s4 = inlined_call_operand.vmem [shape: bf16[3,64,128], index: 4, kind: input, shape index: {}]   ;;  %s10735_s5 = inlined_call_operand.vmem [shape: bf16[3,128,512], index: 5, kind: input, shape index: {}]   ;;  %s10736_s6 = inlined_call_operand.vmem [shape: f32[128,128], index: 6, kind: input, shape index: {}]   ;;  %s10737_s7 = inlined_call_operand.vmem [shape: f32[64,64], index: 7, kind: input, shape index: {}]   ;;  %s10738_s8 = inlined_call_operand.vmem [shape: f32[4,32,128], index: 8, kind: output, shape index: {}]  }
   0x1 LB: > { %s6455_s28 = sadd.s32 4294967295, %s8673_s27   ;;  %p6459_p0 = scmp.ge.s32.totalorder %s8673_s27, 1  ;;  %s8673_s27 = sphi %s8724_s27, %s18_s27  }
   0x2   : > { %p264_p1 = scmp.lt.s32.totalorder %s8673_s27, 3 }
   0x4   : > { %p265_p2 = pnand %p6459_p0, %p264_p1 }
   0x5   : > { %s6460_s29 = sshll.u32 (!%p265_p2), %s6455_s28, 1  ;;  %p6466_p4 = scmp.ne.s32.totalorder (!%p265_p2), %s6455_s28, 0 }
   0x6   : > { %268 = sbr.rel (%p265_p2) target bundleno = 4616 (0x1208), region = 52  ;;  %p301_p3 = scmp.lt.s32.totalorder (!%p265_p2), %s6460_s29, 3 }
   0xb   : > { %s10740_s29 = smov (!%p301_p3, %s6460_s29), 3  ;;  %318 = sbr.rel (%p6466_p4) target bundleno = 27 (0x1b), region = 56 }
   0xc   : > { %s7173_s30 = sshll.u32 %s10740_s29, 7  ;;  %s7174_s9 = sshll.u32 %s10740_s29, 5 }
   0xd   : > { %s8735_s12 = scalar_lea.vmem %s10730_s0, %s7173_s30  ;;  %s8740_s15 = scalar_lea.vmem %s10738_s8, %s7174_s9 }
  0x10   : > { %vm333_vm0 = vcmask 523264   ;;  %vm336_vm1 = vcmask 517120   ;;  %v8675_v0 = vmov 0.0  }
  0x11   : > { %319 = vst [vmem:[#allocation2 + $0x10] sm:$0xff] %v8675_v0  ;;  %320 = vst [vmem:[#allocation2] sm:$0xff] %v8675_v0 }
  0x12   : > { %321 = vst [vmem:[#allocation2 + $0x18] sm:$0xff] %v8675_v0  ;;  %322 = vst [vmem:[#allocation2 + $0x8] sm:$0xff] %v8675_v0 }
  0x13   : > { %323 = vst [vmem:[#allocation3] sm:$0xff] %v8675_v0  ;;  %324 = vst [vmem:[#allocation3 + $0x18] sm:$0xff] %v8675_v0 }
  0x14   : > { %325 = vst [vmem:[#allocation3 + $0x8] sm:$0xff] %v8675_v0  ;;  %326 = vst [vmem:[#allocation3 + $0x10] sm:$0xff] %v8675_v0 }
  0x15   : > { %327 = vst [vmem:[#allocation4] sm:$0xff] %v8675_v0  ;;  %328 = vst [vmem:[#allocation4 + $0x8] sm:$0xff] %v8675_v0 }
  0x16   : > { %329 = vst [vmem:[#allocation4 + $0x10] sm:$0x3] %v8675_v0  ;;  %330 = vst [vmem:[#allocation4 + $0x18] sm:$0xff] %v8675_v0 }
  0x17   : > { %331 = vst [vmem:[#allocation4 + $0x20] sm:$0xff] %v8675_v0  ;;  %332 = vst [vmem:[#allocation4 + $0x28] sm:$0x3] %v8675_v0 }
  0x18   : > { %334 = vst.msk [vmem:[#allocation5] sm:$0xff] %vm333_vm0, %v8675_v0  ;;  %335 = vst.msk [vmem:[#allocation5 + $0x8] sm:$0xff] %vm333_vm0, %v8675_v0 }
  0x19   : > { %338 = vst.msk [vmem:[#allocation5 + $0x18] sm:$0xff] %vm333_vm0, %v8675_v0  ;;  %339 = vst.msk [vmem:[#allocation5 + $0x20] sm:$0xff] %vm333_vm0, %v8675_v0 }
  0x1a   : > { %337 = vst.msk [vmem:[#allocation5 + $0x10] sm:$0x3] %vm336_vm1, %v8675_v0  ;;  %340 = vst.msk [vmem:[#allocation5 + $0x28] sm:$0x3] %vm336_vm1, %v8675_v0 }
  0x1b PF: > { %v8083_v1 = vld [vmem:[%s10731_s1 + $0x78] sm:$0xff]   ;;  %v8085_v3 = vld [vmem:[%s10731_s1 + $0x70] sm:$0xff]   ;;  %v8087_v5 = vld [vmem:[%s10731_s1 + $0x68] sm:$0xff]   ;;  %vm395_vm2 = vsmask.f32 7424  ;;  %vm637_vm3 = vcmask 1046528  }
  0x1c   : > { %v8084_v2 = vld [vmem:[%s10731_s1 + $0x38] sm:$0xff]   ;;  %7471 = vmatprep.subr.bf16.mxu0 %v8083_v1  ;;  %v8086_v4 = vld [vmem:[%s10731_s1 + $0x30] sm:$0xff]   ;;  %v8088_v6 = vld [vmem:[%s10731_s1 + $0x28] sm:$0xff]   ;;  %v8676_v56 = vmov 0.0   ;;  %vm8677_vm4 = vmmov 0   ;;  %vm786_vm5 = vcmask 1040384  }
  0x1d   : > { %7491 = vmatprep.subr.bf16.mxu1 %v8084_v2  ;;  %7472 = vmatpush3.bf16.msra.mxu0 %v8083_v1  ;;  %v8089_v7 = vld [vmem:[%s10731_s1 + $0x60] sm:$0xff]   ;;  %v8091_v9 = vld [vmem:[%s10731_s1 + $0x58] sm:$0xff]   ;;  %v8093_v11 = vld [vmem:[%s10731_s1 + $0x50] sm:$0xff]   ;;  %vm1282_vm6 = vcmask 523264  }
  0x1e   : > { %7492 = vmatpush3.bf16.msra.mxu1 %v8084_v2  ;;  %7473 = vmatprep.subr.bf16.mxu0 %v8085_v3  ;;  %v8090_v8 = vld [vmem:[%s10731_s1 + $0x20] sm:$0xff]   ;;  %v8092_v10 = vld [vmem:[%s10731_s1 + $0x18] sm:$0xff]   ;;  %v8094_v12 = vld [vmem:[%s10731_s1 + $0x10] sm:$0xff]  }
  0x1f   : > { %7493 = vmatprep.subr.bf16.mxu1 %v8086_v4  ;;  %v369_v13 = vld [vmem:[#allocation4] sm:$0xff]  ;;  %v370_v14 = vld [vmem:[#allocation4 + $0x8] sm:$0xff]  ;;  %v371_v15 = vld [vmem:[#allocation4 + $0x10] sm:$0x3] }
  0x20   : > { %v375_v16 = vpack.c.bf16 %v370_v14, %v369_v13  ;;  %v376_v17 = vpack.c.bf16 %v371_v15, %v371_v15  ;;  %v372_v18 = vld [vmem:[#allocation4 + $0x18] sm:$0xff]  ;;  %v373_v19 = vld [vmem:[#allocation4 + $0x20] sm:$0xff]  ;;  %v374_v20 = vld [vmem:[#allocation4 + $0x28] sm:$0x3] }
  0x21   : > { %7474 = vmatpush3.bf16.msra.mxu0 %v8085_v3  ;;  %v8784_v21 = vpack.c.bf16 %v373_v19, %v372_v18  ;;  %v8786_v22 = vpack.c.bf16 %v374_v20, %v374_v20  ;;  %v8095_v23 = vld [vmem:[%s10731_s1 + $0x48] sm:$0xff]   ;;  %v8097_v35 = vld [vmem:[%s10731_s1 + $0x40] sm:$0xff]   ;;  %v8099_v39 = vld [vmem:[%s10731_s1 + $0xb8] sm:$0xff]  }
  0x22   : > { %7494 = vmatpush3.bf16.msra.mxu1 %v8086_v4  ;;  %7475 = vmatprep.subr.bf16.mxu0 %v8087_v5  ;;  %v397_v24 = vshrl.u32 %v375_v16, 16  ;;  %v399_v25 = vshll.u32 %v375_v16, 16  ;;  %v404_v26 = vshll.u32 %v376_v17, 16  ;;  %v8096_v27 = vld [vmem:[%s10731_s1 + $0x8] sm:$0xff]   ;;  %v8098_v36 = vld [vmem:[%s10731_s1] sm:$0xff]   ;;  %v638_v41 = vrot.slane %v375_v16, 1 }
  0x23   : > { %7495 = vmatprep.subr.bf16.mxu1 %v8088_v6  ;;  %7507 = vmatprep.mubr.bf16.mxu1 %v375_v16  ;;  %v411_v28 = vshll.u32 %v8784_v21, 16  ;;  %v416_v31 = vshll.u32 %v8786_v22, 16  ;;  %v409_v33 = vshrl.u32 %v8784_v21, 16  ;;  %v639_v42 = vrot.slane %v376_v17, 1  ;;  %v8100_v43 = vld [vmem:[%s10731_s1 + $0xb0] sm:$0xff]   ;;  %v8101_v46 = vld [vmem:[%s10731_s1 + $0xa8] sm:$0xff]  }
  0x24   : > { %v401_v29 = vrot.slane %v399_v25, 1  ;;  %v406_v30 = vrot.slane %v404_v26, 1  ;;  %v8102_v47 = vld [vmem:[%s10731_s1 + $0xa0] sm:$0xff]   ;;  %v8103_v48 = vld [vmem:[%s10731_s1 + $0x98] sm:$0xff]   ;;  %v8104_v49 = vld [vmem:[%s10731_s1 + $0x90] sm:$0xff]   ;;  %v641_v52 = vrot.slane %v8784_v21, 1 }
  0x25   : > { %7476 = vmatpush3.bf16.msra.mxu0 %v8087_v5  ;;  %v413_v34 = vrot.slane %v411_v28, 1  ;;  %v418_v38 = vrot.slane %v416_v31, 1  ;;  %v640_v45 = vsel %vm637_vm3, %v638_v41, %v639_v42  ;;  %v8105_v50 = vld [vmem:[%s10731_s1 + $0x88] sm:$0xff]   ;;  %v8106_v51 = vld [vmem:[%s10731_s1 + $0x80] sm:$0xff]   ;;  %v642_v53 = vrot.slane %v8786_v22, 1  ;;  %v356_v55 = vld [vmem:[%s10736_s6 + $0x78] sm:$0xff] }
  0x26   : > { %7496 = vmatpush3.bf16.msra.mxu1 %v8088_v6  ;;  %7477 = vmatprep.subr.bf16.mxu0 %v8089_v7  ;;  %v402_v32 = vor.u32 %v401_v29, %v397_v24  ;;  %v355_v57 = vld [vmem:[%s10736_s6 + $0x70] sm:$0xff]  ;;  %v354_v58 = vld [vmem:[%s10736_s6 + $0x68] sm:$0xff]  ;;  %v353_v59 = vld [vmem:[%s10736_s6 + $0x60] sm:$0xff] }
  0x27   : > { %7497 = vmatprep.subr.bf16.mxu1 %v8090_v8  ;;  %v414_v40 = vor.u32 %v413_v34, %v409_v33  ;;  %v643_v54 = vsel %vm637_vm3, %v641_v52, %v642_v53  ;;  %v352_v60 = vld [vmem:[%s10736_s6 + $0x58] sm:$0xff]  ;;  %v351_v61 = vld [vmem:[%s10736_s6 + $0x50] sm:$0xff]  ;;  %v350_v62 = vld [vmem:[%s10736_s6 + $0x48] sm:$0xff] }
  0x28   : > { %v407_v37 = vsel %vm395_vm2, %v402_v32, %v406_v30  ;;  %v349_v63 = vld [vmem:[%s10736_s6 + $0x40] sm:$0xff]  ;;  %v348_v0 = vld [vmem:[%s10736_s6 + $0x38] sm:$0xff]  ;;  %v347_v1 = vld [vmem:[%s10736_s6 + $0x30] sm:$0xff] }
  0x29   : > { %7478 = vmatpush3.bf16.msra.mxu0 %v8089_v7  ;;  %7487 = vmatprep.mubr.bf16.mxu0 %v407_v37  ;;  %v419_v44 = vsel %vm395_vm2, %v414_v40, %v418_v38  ;;  %v346_v2 = vld [vmem:[%s10736_s6 + $0x28] sm:$0xff]  ;;  %v345_v3 = vld [vmem:[%s10736_s6 + $0x20] sm:$0xff]  ;;  %v344_v4 = vld [vmem:[%s10736_s6 + $0x18] sm:$0xff] }
  0x2a   : > { %7498 = vmatpush3.bf16.msra.mxu1 %v8090_v8  ;;  %7479 = vmatprep.subr.bf16.mxu0 %v8091_v9  ;;  %v343_v5 = vld [vmem:[%s10736_s6 + $0x10] sm:$0xff]  ;;  %v342_v6 = vld [vmem:[%s10736_s6 + $0x8] sm:$0xff]  ;;  %v341_v7 = vld [vmem:[%s10736_s6] sm:$0xff] }
  0x2b   : > { %7499 = vmatprep.subr.bf16.mxu1 %v8092_v10  ;;  %v8108_v52 = vld [vmem:[%s10732_s2 + $0x30] sm:$0xff]   ;;  %v8109_v53 = vld [vmem:[%s10732_s2 + $0x78] sm:$0xff]  }
  0x2d   : > { %7480 = vmatpush3.bf16.msra.mxu0 %v8091_v9 }
  0x2e   : > { %7500 = vmatpush3.bf16.msra.mxu1 %v8092_v10  ;;  %7481 = vmatprep.subr.bf16.mxu0 %v8093_v11 }
  0x2f   : > { %7501 = vmatprep.subr.bf16.mxu1 %v8094_v12 }
  0x31   : > { %7482 = vmatpush3.bf16.msra.mxu0 %v8093_v11 }
  0x32   : > { %7502 = vmatpush3.bf16.msra.mxu1 %v8094_v12  ;;  %7483 = vmatprep.subr.bf16.mxu0 %v8095_v23 }
  0x33   : > { %7503 = vmatprep.subr.bf16.mxu1 %v8096_v27 }
  0x35   : > { %7484 = vmatpush3.bf16.msra.mxu0 %v8095_v23 }
  0x36   : > { %7504 = vmatpush3.bf16.msra.mxu1 %v8096_v27  ;;  %7485 = vmatprep.subr.bf16.mxu0 %v8097_v35 }
  0x37   : > { %7505 = vmatprep.subr.bf16.mxu1 %v8098_v36 }
  0x39   : > { %7486 = vmatpush3.bf16.msra.mxu0 %v8097_v35 }
  0x3a   : > { %7506 = vmatpush3.bf16.msra.mxu1 %v8098_v36  ;;  %7511 = vmatprep.subr.bf16.mxu0 %v8099_v39 }
  0x3b   : > { %7531 = vmatprep.subr.mxu1 %v8676_v56 }
  0x3c   : > { %7488 = vmatmul.mubr.bf16.vlgmr.msra.gmra.mxu0 %v419_v44 }
  0x3d   : > { %7508 = vmatmul.mubr.bf16.vlgmr.msra.gmra.mxu1 %v8784_v21  ;;  %7512 = vmatpush3.bf16.msra.mxu0 %v8099_v39 }
  0x3e   : > { %7513 = vmatprep.subr.bf16.mxu0 %v8100_v43  ;;  %7527 = vmatprep.mubr.bf16.mxu0 %v640_v45 }
  0x3f   : > { %7532 = vmatpush3.msra.mxu1 %v356_v55  ;;  %7563 = vmatprep.mubr.msk.f32.mxu1 %vm8677_vm4, %v8676_v56  ;;  %v8111_v55 = vld [vmem:[%s10732_s2 + $0x70] sm:$0xff]  }
  0x40   : > { %7533 = vmatprep.subr.mxu1 %v8676_v56 }
  0x41   : > { %7514 = vmatpush3.bf16.msra.mxu0 %v8100_v43  ;;  %7534 = vmatpush3.msra.mxu1 %v355_v57  ;;  %v8112_v57 = vld [vmem:[%s10732_s2 + $0x20] sm:$0xff]  }
  0x42   : > { %7515 = vmatprep.subr.bf16.mxu0 %v8101_v46  ;;  %7535 = vmatprep.subr.mxu1 %v8676_v56 }
  0x43   : > { %7536 = vmatpush3.msra.mxu1 %v354_v58  ;;  %v8113_v58 = vld [vmem:[%s10732_s2 + $0x68] sm:$0xff]  }
  0x44   : > { %7537 = vmatprep.subr.mxu1 %v8676_v56 }
  0x45   : > { %7516 = vmatpush3.bf16.msra.mxu0 %v8101_v46  ;;  %7538 = vmatpush3.msra.mxu1 %v353_v59  ;;  %v8114_v59 = vld [vmem:[%s10732_s2 + $0x18] sm:$0xff]  }
  0x46   : > { %7517 = vmatprep.subr.bf16.mxu0 %v8102_v47  ;;  %7539 = vmatprep.subr.mxu1 %v8676_v56 }
  0x47   : > { %7540 = vmatpush3.msra.mxu1 %v352_v60  ;;  %v8115_v60 = vld [vmem:[%s10732_s2 + $0x60] sm:$0xff]  }
  0x48   : > { %7541 = vmatprep.subr.mxu1 %v8676_v56 }
  0x49   : > { %7518 = vmatpush3.bf16.msra.mxu0 %v8102_v47  ;;  %7542 = vmatpush3.msra.mxu1 %v351_v61  ;;  %v8116_v61 = vld [vmem:[%s10732_s2 + $0x10] sm:$0xff]  }
  0x4a   : > { %7519 = vmatprep.subr.bf16.mxu0 %v8103_v48  ;;  %7543 = vmatprep.subr.mxu1 %v8676_v56 }
  0x4b   : > { %7544 = vmatpush3.msra.mxu1 %v350_v62  ;;  %v8117_v62 = vld [vmem:[%s10732_s2 + $0x58] sm:$0xff]  }
  0x4c   : > { %7545 = vmatprep.subr.mxu1 %v8676_v56 }
  0x4d   : > { %7520 = vmatpush3.bf16.msra.mxu0 %v8103_v48  ;;  %7546 = vmatpush3.msra.mxu1 %v349_v63  ;;  %v8118_v63 = vld [vmem:[%s10732_s2 + $0x8] sm:$0xff]  }
  0x4e   : > { %7521 = vmatprep.subr.bf16.mxu0 %v8104_v49  ;;  %7547 = vmatprep.subr.mxu1 %v8676_v56 }
  0x4f   : > { %7548 = vmatpush3.msra.mxu1 %v348_v0  ;;  %v8119_v0 = vld [vmem:[%s10732_s2 + $0x50] sm:$0xff]  }
  0x50   : > { %7549 = vmatprep.subr.mxu1 %v8676_v56 }
  0x51   : > { %7522 = vmatpush3.bf16.msra.mxu0 %v8104_v49  ;;  %7550 = vmatpush3.msra.mxu1 %v347_v1  ;;  %v8120_v1 = vld [vmem:[%s10732_s2] sm:$0xff]  }
  0x52   : > { %7523 = vmatprep.subr.bf16.mxu0 %v8105_v50  ;;  %7551 = vmatprep.subr.mxu1 %v8676_v56 }
  0x53   : > { %7552 = vmatpush3.msra.mxu1 %v346_v2  ;;  %v8121_v2 = vld [vmem:[%s10732_s2 + $0x48] sm:$0xff]  }
  0x54   : > { %7553 = vmatprep.subr.mxu1 %v8676_v56 }
  0x55   : > { %7524 = vmatpush3.bf16.msra.mxu0 %v8105_v50  ;;  %7554 = vmatpush3.msra.mxu1 %v345_v3  ;;  %v8122_v3 = vld [vmem:[%s10732_s2 + $0x40] sm:$0xff]  }
  0x56   : > { %7525 = vmatprep.subr.bf16.mxu0 %v8106_v51  ;;  %7555 = vmatprep.subr.mxu1 %v8676_v56 }
  0x57   : > { %7556 = vmatpush3.msra.mxu1 %v344_v4  ;;  %v8973_v4 = vld [vmem:[%s10732_s2 + $0xb8] sm:$0xff]  }
  0x58   : > { %7557 = vmatprep.subr.mxu1 %v8676_v56 }
  0x59   : > { %7526 = vmatpush3.bf16.msra.mxu0 %v8106_v51  ;;  %7558 = vmatpush3.msra.mxu1 %v343_v5  ;;  %v8107_v51 = vld [vmem:[%s10732_s2 + $0x38] sm:$0xff]  }
  0x5a   : > { %7559 = vmatprep.subr.mxu1 %v8676_v56  ;;  %7566 = vmatprep.subr.bf16.mxu0 %v8109_v53 }
  0x5b   : > { %7560 = vmatpush3.msra.mxu1 %v342_v6 }
  0x5c   : > { %7528 = vmatmul.mubr.bf16.vlgmr.msra.gmra.mxu0 %v643_v54  ;;  %7561 = vmatprep.subr.mxu1 %v8676_v56  ;;  %v8110_v54 = vld [vmem:[%s10732_s2 + $0x28] sm:$0xff]  }
  0x5d   : > { %7562 = vmatpush3.msra.mxu1 %v341_v7  ;;  %7567 = vmatpush3.bf16.msra.mxu0 %v8109_v53 }
  0x5e   : > { %7586 = vmatprep.subr.bf16.mxu1 %v8107_v51  ;;  %7568 = vmatprep.subr.bf16.mxu0 %v8111_v55 }
  0x61   : > { %7569 = vmatpush3.bf16.msra.mxu0 %v8111_v55  ;;  %v8124_v55 = vld [vmem:[%s10732_s2 + $0xb0] sm:$0xff]  }
  0x62   : > { %7570 = vmatprep.subr.bf16.mxu0 %v8113_v58 }
  0x65   : > { %7571 = vmatpush3.bf16.msra.mxu0 %v8113_v58 }
  0x66   : > { %7572 = vmatprep.subr.bf16.mxu0 %v8115_v60 }
  0x69   : > { %7573 = vmatpush3.bf16.msra.mxu0 %v8115_v60  ;;  %v8126_v60 = vld [vmem:[%s10732_s2 + $0xa0] sm:$0xff]  }
  0x6a   : > { %7574 = vmatprep.subr.bf16.mxu0 %v8117_v62 }
  0x6d   : > { %7575 = vmatpush3.bf16.msra.mxu0 %v8117_v62  ;;  %v8128_v62 = vld [vmem:[%s10732_s2 + $0x90] sm:$0xff]  }
  0x6e   : > { %7576 = vmatprep.subr.bf16.mxu0 %v8119_v0 }
  0x71   : > { %7577 = vmatpush3.bf16.msra.mxu0 %v8119_v0  ;;  %v8130_v0 = vld [vmem:[%s10732_s2 + $0x80] sm:$0xff]  }
  0x72   : > { %7578 = vmatprep.subr.bf16.mxu0 %v8121_v2 }
  0x75   : > { %7579 = vmatpush3.bf16.msra.mxu0 %v8121_v2 }
  0x76   : > { %7580 = vmatprep.subr.bf16.mxu0 %v8122_v3 }
  0x79   : > { %7581 = vmatpush3.bf16.msra.mxu0 %v8122_v3 }
  0x7a   : > { %7606 = vmatprep.subr.bf16.mxu0 %v8973_v4 }
  0xfc   : > { %v7489_v8 = vpop.f32.mrf.mxu0 }
  0xfd   : > { %v7509_v9 = vpop.f32.mrf.mxu1 }
  0xfe   : > { %v521_v10 = vpop.f32.mrf.mxu0  ;;  %v627_v20 = vadd.f32 %v7509_v9, %v7489_v8 }
  0xff   : > { %v618_v11 = vpop.f32.mrf.mxu1 }
 0x100   : > { %v7490_v12 = vpop.f32.mrf.mxu0  ;;  %v619_v18 = vadd.f32 %v618_v11, %v521_v10  ;;  %v863_v10 = vlaneseq }
 0x101   : > { %v7510_v13 = vpop.f32.mrf.mxu1 }
 0x102   : > { %v524_v14 = vpop.f32.mrf.mxu0  ;;  %v630_v24 = vadd.f32 %v7510_v13, %v7490_v12  ;;  %v864_v12 = vshrl.u32 %v863_v10, 7  ;;  %v358_v10 = vld [vmem:[%s10737_s7 + $0x8] sm:$0xff] }
 0x103   : > { %v621_v16 = vpop.f32.mrf.mxu1 }
 0x104   : > { %v622_v21 = vadd.f32 %v621_v16, %v524_v14  ;;  %v8976_v13 = vsub.s32 0, %v864_v12 }
 0x11c   : > { %v7529_v15 = vpop.f32.mrf.mxu0 }
 0x11d   : > { %v8902_v25 = vadd.f32 %v7529_v15, %v627_v20  ;;  %v8979_v15 = vsub.s32 1, %v864_v12 }
 0x11e   : > { %v745_v17 = vpop.f32.mrf.mxu0 }
 0x11f   : > { %v8900_v22 = vadd.f32 %v745_v17, %v619_v18  ;;  %v775_v31 = vmul.f32 %v8902_v25, %v8902_v25 }
 0x120   : > { %v7530_v19 = vpop.f32.mrf.mxu0 }
 0x121   : > { %v773_v27 = vmul.f32 %v8900_v22, %v8900_v22  ;;  %v8908_v28 = vadd.f32 %v7530_v19, %v630_v24 }
 0x122   : > { %v748_v23 = vpop.f32.mrf.mxu0 }
 0x123   : > { %v8904_v26 = vadd.f32 %v748_v23, %v622_v21  ;;  %v776_v34 = vmul.f32 %v8908_v28, %v8908_v28 }
 0x125   : > { %v764_v29 = vadd.f32 %v8904_v26, %v8900_v22  ;;  %v774_v30 = vmul.f32 %v8904_v26, %v8904_v26 }
 0x127   : > { %v765_v32 = vadd.f32 %v764_v29, %v8902_v25  ;;  %v777_v33 = vadd.f32 %v774_v30, %v773_v27 }
 0x129   : > { %v766_v35 = vadd.f32 %v765_v32, %v8908_v28  ;;  %v778_v36 = vadd.f32 %v777_v33, %v775_v31 }
 0x12b   : > { %v767_v37 = vrot.slane %v766_v35, 4  ;;  %v779_v38 = vadd.f32 %v778_v36, %v776_v34 }
 0x12d   : > { %v768_v39 = vadd.f32 %v767_v37, %v766_v35  ;;  %v780_v40 = vrot.slane %v779_v38, 4 }
 0x12f   : > { %v769_v41 = vrot.slane %v768_v39, 2  ;;  %v781_v42 = vadd.f32 %v780_v40, %v779_v38 }
 0x131   : > { %v770_v43 = vadd.f32 %v769_v41, %v768_v39  ;;  %v782_v44 = vrot.slane %v781_v42, 2 }
 0x133   : > { %v771_v45 = vrot.slane %v770_v43, 1  ;;  %v783_v46 = vadd.f32 %v782_v44, %v781_v42 }
 0x135   : > { %v784_v47 = vrot.slane %v783_v46, 1  ;;  %v772_v48 = vadd.f32 %v771_v45, %v770_v43 }
 0x137   : > { %v785_v49 = vadd.f32 %v784_v47, %v783_v46 }
 0x139   : > { %v787_v50 = vsel %vm786_vm5, %v772_v48, %v785_v49 }
 0x13a   : > { %7564 = vmatmul.mubr.f32.vlgmr.msra.gmra.mxu1 %v787_v50 }
 0x13b   : > { %7587 = vmatpush3.bf16.msra.mxu1 %v8107_v51 }
 0x13c   : > { %7588 = vmatprep.subr.bf16.mxu1 %v8108_v52 }
 0x13f   : > { %7589 = vmatpush3.bf16.msra.mxu1 %v8108_v52 }
 0x140   : > { %7590 = vmatprep.subr.bf16.mxu1 %v8110_v54 }
 0x143   : > { %7591 = vmatpush3.bf16.msra.mxu1 %v8110_v54 }
 0x144   : > { %7592 = vmatprep.subr.bf16.mxu1 %v8112_v57 }
 0x147   : > { %7593 = vmatpush3.bf16.msra.mxu1 %v8112_v57 }
 0x148   : > { %7594 = vmatprep.subr.bf16.mxu1 %v8114_v59 }
 0x14b   : > { %7595 = vmatpush3.bf16.msra.mxu1 %v8114_v59  ;;  %v8125_v59 = vld [vmem:[%s10732_s2 + $0xa8] sm:$0xff]  }
 0x14c   : > { %7596 = vmatprep.subr.bf16.mxu1 %v8116_v61 }
 0x14f   : > { %7597 = vmatpush3.bf16.msra.mxu1 %v8116_v61  ;;  %v8127_v61 = vld [vmem:[%s10732_s2 + $0x98] sm:$0xff]  }
 0x150   : > { %7598 = vmatprep.subr.bf16.mxu1 %v8118_v63 }
 0x153   : > { %7599 = vmatpush3.bf16.msra.mxu1 %v8118_v63  ;;  %v8129_v63 = vld [vmem:[%s10732_s2 + $0x88] sm:$0xff]  }
 0x154   : > { %7600 = vmatprep.subr.bf16.mxu1 %v8120_v1 }
 0x157   : > { %7601 = vmatpush3.bf16.msra.mxu1 %v8120_v1 }
 0x158   : > { %7626 = vmatprep.subr.mxu1 %v8676_v56 }
 0x1fa   : > { %v854_v5 = vpop.f32.mrf.mxu1 }
 0x1fb   : > { %v858_v6 = vmul.f32 %v854_v5, %v854_v5  ;;  %v866_v14 = vrot.slane %v854_v5, %v8976_v13 }
 0x1fc   : > { %v7565_v7 = vpop.f32.mrf.mxu1 }
 0x1fd   : > { %v860_v8 = vrot.slane %v858_v6, 7  ;;  %v867_v17 = vsub.f32 %v8900_v22, %v866_v14  ;;  %v868_v18 = vsub.f32 %v8904_v26, %v866_v14  ;;  %v869_v19 = vsub.f32 %v8902_v25, %v866_v14  ;;  %v362_v6 = vld [vmem:[%s10737_s7 + $0x28] sm:$0xff]  ;;  %v361_v7 = vld [vmem:[%s10737_s7 + $0x20] sm:$0xff] }
 0x1fe   : > { %v870_v20 = vsub.f32 %v8908_v28, %v866_v14 }
 0x1ff   : > { %v862_v9 = vsub.f32 %v854_v5, %v860_v8  ;;  %v363_v5 = vld [vmem:[%s10737_s7 + $0x30] sm:$0xff]  ;;  %v360_v8 = vld [vmem:[%s10737_s7 + $0x18] sm:$0xff] }
 0x201   : > { %v871_v11 = vadd.f32 1e-05, %v862_v9  ;;  %v359_v9 = vld [vmem:[%s10737_s7 + $0x10] sm:$0xff] }
 0x203   : > { %8515 = vrsqrt.f32 %v871_v11  ;;  %v357_v11 = vld [vmem:[%s10737_s7] sm:$0xff] }
 0x210   : > { %v8516_v16 = vpop.eup %8515 }
 0x211   : > { %v876_v21 = vrot.slane %v8516_v16, %v8979_v15 }
 0x213   : > { %v877_v23 = vmul.f32 %v876_v21, %v867_v17  ;;  %v878_v24 = vmul.f32 %v876_v21, %v868_v18  ;;  %v879_v27 = vmul.f32 %v876_v21, %v869_v19  ;;  %v880_v29 = vmul.f32 %v876_v21, %v870_v20 }
 0x215   : > { %v881_v30 = vmax.f32 %v877_v23, 0.0  ;;  %v882_v31 = vmax.f32 %v878_v24, 0.0  ;;  %v883_v32 = vmax.f32 %v879_v27, 0.0  ;;  %v884_v33 = vmax.f32 %v880_v29, 0.0 }
 0x217   : > { %885 = vst [vmem:[#allocation4 + $0x1] sm:$0xff] %v881_v30  ;;  %886 = vst [vmem:[#allocation4 + $0x9] sm:$0xff] %v882_v31 }
 0x218   : > { %887 = vst [vmem:[#allocation4 + $0x19] sm:$0xff] %v883_v32  ;;  %888 = vst [vmem:[#allocation4 + $0x21] sm:$0xff] %v884_v33 }
 0x21e   : > { %v889_v22 = vld [vmem:[#allocation4] sm:$0xff]  ;;  %v890_v26 = vld [vmem:[#allocation4 + $0x8] sm:$0xff]  ;;  %v891_v28 = vld [vmem:[#allocation4 + $0x10] sm:$0x3] }
 0x21f   : > { %v892_v34 = vld [vmem:[#allocation4 + $0x18] sm:$0xff]  ;;  %v895_v25 = vpack.c.bf16 %v890_v26, %v889_v22  ;;  %v893_v35 = vld [vmem:[#allocation4 + $0x20] sm:$0xff]  ;;  %v894_v36 = vld [vmem:[#allocation4 + $0x28] sm:$0x3]  ;;  %v896_v38 = vpack.c.bf16 %v891_v28, %v891_v28 }
 0x220   : > { %v897_v37 = vpack.c.bf16 %v893_v35, %v892_v34  ;;  %v898_v39 = vpack.c.bf16 %v894_v36, %v894_v36 }
 0x221   : > { %7602 = vmatprep.mubr.bf16.mxu1 %v895_v25  ;;  %v918_v40 = vshll.u32 %v895_v25, 16  ;;  %v923_v41 = vshll.u32 %v896_v38, 16  ;;  %v916_v44 = vshrl.u32 %v895_v25, 16  ;;  %v1156_v50 = vrot.slane %v895_v25, 1 }
 0x222   : > { %7603 = vmatmul.mubr.bf16.vlgmr.msra.gmra.mxu1 %v897_v37  ;;  %v930_v42 = vshll.u32 %v897_v37, 16  ;;  %v935_v43 = vshll.u32 %v898_v39, 16  ;;  %v928_v46 = vshrl.u32 %v897_v37, 16  ;;  %v1157_v51 = vrot.slane %v896_v38, 1 }
 0x223   : > { %v920_v45 = vrot.slane %v918_v40, 1  ;;  %7642 = vmatprep.mubr.msk.f32.mxu1 %vm8677_vm4, %v8676_v56  ;;  %v925_v49 = vrot.slane %v923_v41, 1  ;;  %v1159_v1 = vrot.slane %v897_v37, 1  ;;  %v1160_v2 = vrot.slane %v898_v39, 1 }
 0x224   : > { %v932_v47 = vrot.slane %v930_v42, 1  ;;  %v937_v53 = vrot.slane %v935_v43, 1  ;;  %v1158_v58 = vsel %vm637_vm3, %v1156_v50, %v1157_v51 }
 0x225   : > { %v921_v48 = vor.u32 %v920_v45, %v916_v44  ;;  %v1161_v3 = vsel %vm637_vm3, %v1159_v1, %v1160_v2  ;;  %v8131_v2 = vld [vmem:[%s10733_s3 + $0x38] sm:$0xff]  }
 0x226   : > { %v933_v52 = vor.u32 %v932_v47, %v928_v46 }
 0x227   : > { %v926_v54 = vsel %vm395_vm2, %v921_v48, %v925_v49 }
 0x228   : > { %7582 = vmatprep.mubr.bf16.mxu0 %v926_v54  ;;  %v938_v57 = vsel %vm395_vm2, %v933_v52, %v937_v53 }
 0x229   : > { %7583 = vmatmul.mubr.bf16.vlgmr.msra.gmra.mxu0 %v938_v57 }
 0x22a   : > { %7607 = vmatpush3.bf16.msra.mxu0 %v8973_v4  ;;  %7622 = vmatprep.mubr.bf16.mxu0 %v1158_v58  ;;  %v364_v4 = vld [vmem:[%s10737_s7 + $0x38] sm:$0xff] }
 0x22b   : > { %7608 = vmatprep.subr.bf16.mxu0 %v8124_v55  ;;  %7627 = vmatpush3.msra.mxu1 %v364_v4 }
 0x22c   : > { %7628 = vmatprep.subr.mxu1 %v8676_v56 }
 0x22d   : > { %7629 = vmatpush3.msra.mxu1 %v363_v5 }
 0x22e   : > { %7609 = vmatpush3.bf16.msra.mxu0 %v8124_v55  ;;  %7630 = vmatprep.subr.mxu1 %v8676_v56 }
 0x22f   : > { %7610 = vmatprep.subr.bf16.mxu0 %v8125_v59  ;;  %7631 = vmatpush3.msra.mxu1 %v362_v6 }
 0x230   : > { %7632 = vmatprep.subr.mxu1 %v8676_v56 }
 0x231   : > { %7633 = vmatpush3.msra.mxu1 %v361_v7 }
 0x232   : > { %7611 = vmatpush3.bf16.msra.mxu0 %v8125_v59  ;;  %7634 = vmatprep.subr.mxu1 %v8676_v56 }
 0x233   : > { %7612 = vmatprep.subr.bf16.mxu0 %v8126_v60  ;;  %7635 = vmatpush3.msra.mxu1 %v360_v8 }
 0x234   : > { %7636 = vmatprep.subr.mxu1 %v8676_v56 }
 0x235   : > { %7637 = vmatpush3.msra.mxu1 %v359_v9 }
 0x236   : > { %7613 = vmatpush3.bf16.msra.mxu0 %v8126_v60  ;;  %7638 = vmatprep.subr.mxu1 %v8676_v56 }
 0x237   : > { %7614 = vmatprep.subr.bf16.mxu0 %v8127_v61  ;;  %7639 = vmatpush3.msra.mxu1 %v358_v10 }
 0x238   : > { %7640 = vmatprep.subr.mxu1 %v8676_v56 }
 0x239   : > { %7641 = vmatpush3.msra.mxu1 %v357_v11 }
 0x23a   : > { %7615 = vmatpush3.bf16.msra.mxu0 %v8127_v61  ;;  %7645 = vmatprep.subr.bf16.mxu1 %v8131_v2 }
 0x23b   : > { %7616 = vmatprep.subr.bf16.mxu0 %v8128_v62 }
 0x23e   : > { %7617 = vmatpush3.bf16.msra.mxu0 %v8128_v62 }
 0x23f   : > { %7618 = vmatprep.subr.bf16.mxu0 %v8129_v63 }
 0x242   : > { %7619 = vmatpush3.bf16.msra.mxu0 %v8129_v63 }
 0x243   : > { %7620 = vmatprep.subr.bf16.mxu0 %v8130_v0 }
 0x246   : > { %7621 = vmatpush3.bf16.msra.mxu0 %v8130_v0 }
 0x247   : > { %7681 = vmatprep.subr.mxu0 %v8676_v56 }
 0x249   : > { %7623 = vmatmul.mubr.bf16.vlgmr.msra.gmra.mxu0 %v1161_v3  ;;  %v8132_v3 = vld [vmem:[%s10733_s3 + $0x30] sm:$0xff]  }
 0x24a   : > { %7697 = vmatprep.mubr.msk.f32.mxu0 %vm8677_vm4, %v8676_v56  ;;  %7682 = vmatpush3.msra.mxu0 %v364_v4  ;;  %v8133_v4 = vld [vmem:[%s10733_s3 + $0x28] sm:$0xff]  }
 0x24b   : > { %7683 = vmatprep.subr.mxu0 %v8676_v56 }
 0x24c   : > { %7684 = vmatpush3.msra.mxu0 %v363_v5  ;;  %v8134_v5 = vld [vmem:[%s10733_s3 + $0x20] sm:$0xff]  }
 0x24d   : > { %7685 = vmatprep.subr.mxu0 %v8676_v56 }
 0x24e   : > { %7686 = vmatpush3.msra.mxu0 %v362_v6  ;;  %v8135_v6 = vld [vmem:[%s10733_s3 + $0x18] sm:$0xff]  }
 0x24f   : > { %7687 = vmatprep.subr.mxu0 %v8676_v56 }
 0x250   : > { %7688 = vmatpush3.msra.mxu0 %v361_v7 }
 0x251   : > { %7689 = vmatprep.subr.mxu0 %v8676_v56 }
 0x252   : > { %7690 = vmatpush3.msra.mxu0 %v360_v8 }
 0x253   : > { %7691 = vmatprep.subr.mxu0 %v8676_v56 }
 0x254   : > { %7692 = vmatpush3.msra.mxu0 %v359_v9 }
 0x255   : > { %7693 = vmatprep.subr.mxu0 %v8676_v56 }
 0x256   : > { %7694 = vmatpush3.msra.mxu0 %v358_v10 }
 0x257   : > { %7695 = vmatprep.subr.mxu0 %v8676_v56 }
 0x258   : > { %7696 = vmatpush3.msra.mxu0 %v357_v11 }
 0x2e2   : > { %v7604_v16 = vpop.f32.mrf.mxu1 }
 0x2e4   : > { %v1137_v18 = vpop.f32.mrf.mxu1 }
 0x2e6   : > { %v7605_v20 = vpop.f32.mrf.mxu1 }
 0x2e8   : > { %v1140_v30 = vpop.f32.mrf.mxu1 }
 0x2e9   : > { %v7584_v12 = vpop.f32.mrf.mxu0 }
 0x2ea   : > { %v1146_v27 = vadd.f32 %v7604_v16, %v7584_v12 }
 0x2eb   : > { %v1040_v14 = vpop.f32.mrf.mxu0 }
 0x2ec   : > { %v1138_v23 = vadd.f32 %v1137_v18, %v1040_v14 }
 0x2ed   : > { %v7585_v17 = vpop.f32.mrf.mxu0 }
 0x2ee   : > { %v1149_v32 = vadd.f32 %v7605_v20, %v7585_v17 }
 0x2ef   : > { %v1043_v19 = vpop.f32.mrf.mxu0 }
 0x2f0   : > { %v1141_v33 = vadd.f32 %v1140_v30, %v1043_v19 }
 0x309   : > { %v7624_v21 = vpop.f32.mrf.mxu0 }
 0x30a   : > { %v9057_v22 = vadd.f32 %v7624_v21, %v1146_v27 }
 0x30b   : > { %v1263_v24 = vpop.f32.mrf.mxu0 }
 0x30c   : > { %v9055_v29 = vadd.f32 %v1263_v24, %v1138_v23  ;;  %v1298_v28 = vmul.f32 %v9057_v22, %v9057_v22  ;;  %v1286_v40 = vsel %vm1282_vm6, %v9057_v22, 0.0 }
 0x30d   : > { %v7625_v31 = vpop.f32.mrf.mxu0 }
 0x30e   : > { %v1296_v34 = vmul.f32 %v9055_v29, %v9055_v29  ;;  %v9061_v25 = vadd.f32 %v7625_v31, %v1149_v32  ;;  %v1283_v36 = vsel %vm1282_vm6, %v9055_v29, 0.0  ;;  %v1303_v46 = vsel %vm1282_vm6, %v1298_v28, 0.0 }
 0x30f   : > { %v1266_v26 = vpop.f32.mrf.mxu0 }
 0x310   : > { %v9063_v35 = vadd.f32 %v1266_v26, %v1141_v33  ;;  %v1300_v41 = vsel %vm1282_vm6, %v1296_v34, 0.0  ;;  %v1299_v42 = vmul.f32 %v9061_v25, %v9061_v25  ;;  %v1288_v47 = vsel %vm1282_vm6, %v9061_v25, 0.0 }
 0x312   : > { %v1284_v37 = vsel %vm1282_vm6, %v9063_v35, 0.0  ;;  %v1297_v38 = vmul.f32 %v9063_v35, %v9063_v35  ;;  %v1305_v50 = vsel %vm1282_vm6, %v1299_v42, 0.0 }
 0x313   : > { %v1285_v39 = vadd.f32 %v1284_v37, %v1283_v36 }
 0x314   : > { %v1301_v43 = vsel %vm1282_vm6, %v1297_v38, 0.0 }
 0x315   : > { %v1287_v44 = vadd.f32 %v1286_v40, %v1285_v39  ;;  %v1302_v45 = vadd.f32 %v1301_v43, %v1300_v41 }
 0x317   : > { %v1289_v48 = vadd.f32 %v1288_v47, %v1287_v44  ;;  %v1304_v49 = vadd.f32 %v1303_v46, %v1302_v45 }
 0x319   : > { %v1290_v51 = vrot.slane %v1289_v48, 4  ;;  %v1306_v52 = vadd.f32 %v1305_v50, %v1304_v49 }
 0x31b   : > { %v1291_v53 = vadd.f32 %v1290_v51, %v1289_v48  ;;  %v1307_v54 = vrot.slane %v1306_v52, 4 }
 0x31d   : > { %v1292_v55 = vrot.slane %v1291_v53, 2  ;;  %v1308_v57 = vadd.f32 %v1307_v54, %v1306_v52 }
 0x31f   : > { %v1293_v58 = vadd.f32 %v1292_v55, %v1291_v53  ;;  %v1309_v59 = vrot.slane %v1308_v57, 2  ;;  %v8136_v53 = vld [vmem:[%s10733_s3 + $0x10] sm:$0xff]   ;;  %v8137_v55 = vld [vmem:[%s10733_s3 + $0x8] sm:$0xff]  }
 0x321   : > { %v1294_v60 = vrot.slane %v1293_v58, 1  ;;  %v1310_v61 = vadd.f32 %v1309_v59, %v1308_v57  ;;  %v8138_v57 = vld [vmem:[%s10733_s3] sm:$0xff]  }
 0x323   : > { %v1311_v62 = vrot.slane %v1310_v61, 1  ;;  %v1295_v63 = vadd.f32 %v1294_v60, %v1293_v58  ;;  %v8139_v58 = vld [vmem:[%s10733_s3 + $0x58] sm:$0xff]  }
 0x325   : > { %v1312_v0 = vadd.f32 %v1311_v62, %v1310_v61  ;;  %v8140_v61 = vld [vmem:[%s10733_s3 + $0x50] sm:$0xff]  }
 0x327   : > { %v1313_v1 = vsel %vm786_vm5, %v1295_v63, %v1312_v0  ;;  %v8141_v63 = vld [vmem:[%s10733_s3 + $0x48] sm:$0xff]   ;;  %v8142_v0 = vld [vmem:[%s10733_s3 + $0x40] sm:$0xff]  }
 0x328   : > { %7643 = vmatmul.mubr.msk.f32.vlgmr.msra.gmra.mxu1 %vm1282_vm6, %v1313_v1 }
 0x329   : > { %7646 = vmatpush3.bf16.msra.mxu1 %v8131_v2 }
 0x32a   : > { %7647 = vmatprep.subr.bf16.mxu1 %v8132_v3 }
 0x32d   : > { %7648 = vmatpush3.bf16.msra.mxu1 %v8132_v3 }
 0x32e   : > { %7649 = vmatprep.subr.bf16.mxu1 %v8133_v4 }
 0x331   : > { %7650 = vmatpush3.bf16.msra.mxu1 %v8133_v4 }
 0x332   : > { %7651 = vmatprep.subr.bf16.mxu1 %v8134_v5 }
 0x335   : > { %7652 = vmatpush3.bf16.msra.mxu1 %v8134_v5 }
 0x336   : > { %7657 = vmatprep.subr.bf16.mxu1 %v8135_v6 }
 0x3e8   : > { %v1383_v7 = vpop.f32.mrf.mxu1 }
 0x3e9   : > { %v1387_v8 = vmul.f32 %v1383_v7, %v1383_v7  ;;  %v1395_v14 = vrot.slane %v1383_v7, %v8976_v13 }
 0x3ea   : > { %v7644_v9 = vpop.f32.mrf.mxu1 }
 0x3eb   : > { %v1389_v10 = vrot.slane %v1387_v8, 7  ;;  %v1396_v17 = vsub.f32 %v9055_v29, %v1395_v14  ;;  %v1397_v18 = vsub.f32 %v9063_v35, %v1395_v14  ;;  %v1398_v19 = vsub.f32 %v9057_v22, %v1395_v14 }
 0x3ec   : > { %v1399_v20 = vsub.f32 %v9061_v25, %v1395_v14 }
 0x3ed   : > { %v1391_v11 = vsub.f32 %v1383_v7, %v1389_v10 }
 0x3ef   : > { %v1400_v12 = vadd.f32 1e-05, %v1391_v11 }
 0x3f1   : > { %8517 = vrsqrt.f32 %v1400_v12 }
 0x3fe   : > { %v8518_v16 = vpop.eup %8517 }
 0x3ff   : > { %v1405_v21 = vrot.slane %v8518_v16, %v8979_v15 }
 0x401   : > { %v1406_v23 = vmul.f32 %v1405_v21, %v1396_v17  ;;  %v1407_v24 = vmul.f32 %v1405_v21, %v1397_v18  ;;  %v1408_v27 = vmul.f32 %v1405_v21, %v1398_v19  ;;  %v1409_v30 = vmul.f32 %v1405_v21, %v1399_v20 }
 0x403   : > { %v1410_v31 = vmax.f32 %v1406_v23, 0.0  ;;  %v1411_v32 = vmax.f32 %v1407_v24, 0.0  ;;  %v1412_v33 = vmax.f32 %v1408_v27, 0.0  ;;  %v1413_v26 = vmax.f32 %v1409_v30, 0.0 }
 0x405   : > { %1414 = vst.msk [vmem:[#allocation5 + $0x1] sm:$0xff] %vm1282_vm6, %v1410_v31  ;;  %1415 = vst.msk [vmem:[#allocation5 + $0x9] sm:$0xff] %vm1282_vm6, %v1411_v32 }
 0x406   : > { %1416 = vst.msk [vmem:[#allocation5 + $0x19] sm:$0xff] %vm1282_vm6, %v1412_v33  ;;  %1417 = vst.msk [vmem:[#allocation5 + $0x21] sm:$0xff] %vm1282_vm6, %v1413_v26 }
 0x40c   : > { %v1418_v29 = vld [vmem:[#allocation5] sm:$0xff]  ;;  %v1419_v22 = vld [vmem:[#allocation5 + $0x8] sm:$0xff]  ;;  %v1420_v34 = vld [vmem:[#allocation5 + $0x10] sm:$0x3] }
 0x40d   : > { %v1424_v25 = vpack.c.bf16 %v1419_v22, %v1418_v29  ;;  %v1425_v35 = vpack.c.bf16 %v1420_v34, %v1420_v34  ;;  %v1421_v28 = vld [vmem:[#allocation5 + $0x18] sm:$0xff]  ;;  %v1422_v36 = vld [vmem:[#allocation5 + $0x20] sm:$0xff]  ;;  %v1423_v37 = vld [vmem:[#allocation5 + $0x28] sm:$0x3] }
 0x40e   : > { %v1426_v38 = vpack.c.bf16 %v1422_v36, %v1421_v28  ;;  %v1427_v39 = vpack.c.bf16 %v1423_v37, %v1423_v37 }
 0x40f   : > { %v1439_v40 = vshll.u32 %v1424_v25, 16  ;;  %v1444_v41 = vshll.u32 %v1425_v35, 16  ;;  %v1437_v44 = vshrl.u32 %v1424_v25, 16  ;;  %v1629_v59 = vrot.slane %v1424_v25, 1 }
 0x410   : > { %v1451_v42 = vshll.u32 %v1426_v38, 16  ;;  %v1456_v43 = vshll.u32 %v1427_v39, 16  ;;  %v1449_v46 = vshrl.u32 %v1426_v38, 16  ;;  %v1630_v60 = vrot.slane %v1425_v35, 1 }
 0x411   : > { %v1441_v45 = vrot.slane %v1439_v40, 1  ;;  %v1446_v49 = vrot.slane %v1444_v41, 1  ;;  %v1632_v1 = vrot.slane %v1426_v38, 1  ;;  %v1633_v2 = vrot.slane %v1427_v39, 1 }
 0x412   : > { %v1453_v47 = vrot.slane %v1451_v42, 1  ;;  %v1458_v51 = vrot.slane %v1456_v43, 1  ;;  %v1631_v62 = vsel %vm637_vm3, %v1629_v59, %v1630_v60  ;;  %v8144_v59 = vld [vmem:[%s10734_s4 + $0x10] sm:$0xff]   ;;  %v8145_v60 = vld [vmem:[%s10734_s4 + $0x38] sm:$0xff]  }
 0x413   : > { %v1442_v48 = vor.u32 %v1441_v45, %v1437_v44  ;;  %v1634_v3 = vsel %vm637_vm3, %v1632_v1, %v1633_v2  ;;  %v8150_v1 = vld [vmem:[%s10734_s4 + $0x20] sm:$0xff]   ;;  %v9199_v2 = vld [vmem:[%s10734_s4 + $0x58] sm:$0xff]  }
 0x414   : > { %v1454_v50 = vor.u32 %v1453_v47, %v1449_v46 }
 0x415   : > { %v1447_v52 = vsel %vm395_vm2, %v1442_v48, %v1446_v49 }
 0x416   : > { %7653 = vmatprep.mubr.msk.bf16.mxu1 %vm1282_vm6, %v1447_v52  ;;  %v1459_v54 = vsel %vm395_vm2, %v1454_v50, %v1458_v51 }
 0x417   : > { %7654 = vmatmul.mubr.msk.bf16.vlgmr.msra.gmra.mxu1 %vm1282_vm6, %v1459_v54 }
 0x418   : > { %7658 = vmatpush3.bf16.msra.mxu1 %v8135_v6  ;;  %7665 = vmatprep.mubr.msk.bf16.mxu1 %vm1282_vm6, %v1424_v25 }
 0x419   : > { %7659 = vmatprep.subr.bf16.mxu1 %v8136_v53 }
 0x41c   : > { %7660 = vmatpush3.bf16.msra.mxu1 %v8136_v53 }
 0x41d   : > { %7661 = vmatprep.subr.bf16.mxu1 %v8137_v55 }
 0x420   : > { %7662 = vmatpush3.bf16.msra.mxu1 %v8137_v55 }
 0x421   : > { %7663 = vmatprep.subr.bf16.mxu1 %v8138_v57 }
 0x424   : > { %7664 = vmatpush3.bf16.msra.mxu1 %v8138_v57 }
 0x425   : > { %7669 = vmatprep.subr.bf16.mxu1 %v8139_v58 }
 0x427   : > { %7666 = vmatmul.mubr.msk.bf16.vlgmr.msra.gmra.mxu1 %vm1282_vm6, %v1426_v38 }
 0x428   : > { %7670 = vmatpush3.bf16.msra.mxu1 %v8139_v58  ;;  %7677 = vmatprep.mubr.msk.bf16.mxu1 %vm1282_vm6, %v1631_v62  ;;  %v8143_v58 = vld [vmem:[%s10734_s4 + $0x18] sm:$0xff]   ;;  %v8147_v62 = vld [vmem:[%s10734_s4 + $0x30] sm:$0xff]  }
 0x429   : > { %7671 = vmatprep.subr.bf16.mxu1 %v8140_v61  ;;  %7712 = vmatprep.subr.bf16.mxu0 %v8143_v58 }
 0x42c   : > { %7672 = vmatpush3.bf16.msra.mxu1 %v8140_v61  ;;  %v8146_v61 = vld [vmem:[%s10734_s4 + $0x8] sm:$0xff]  }
 0x42d   : > { %7673 = vmatprep.subr.bf16.mxu1 %v8141_v63 }
 0x430   : > { %7674 = vmatpush3.bf16.msra.mxu1 %v8141_v63  ;;  %v8148_v63 = vld [vmem:[%s10734_s4] sm:$0xff]  }
 0x431   : > { %7675 = vmatprep.subr.bf16.mxu1 %v8142_v0 }
 0x434   : > { %7676 = vmatpush3.bf16.msra.mxu1 %v8142_v0  ;;  %v8149_v0 = vld [vmem:[%s10734_s4 + $0x28] sm:$0xff]  }
 0x435   : > { %7700 = vmatprep.subr.bf16.mxu1 %v8145_v60 }
 0x437   : > { %7678 = vmatmul.mubr.msk.bf16.vlgmr.msra.gmra.mxu1 %vm1282_vm6, %v1634_v3 }
 0x438   : > { %7701 = vmatpush3.bf16.msra.mxu1 %v8145_v60  ;;  %v8615_v60 = vld [vmem:[%s10736_s6 + $0x58] sm:$0xff] }
 0x439   : > { %7702 = vmatprep.subr.bf16.mxu1 %v8147_v62 }
 0x43c   : > { %7703 = vmatpush3.bf16.msra.mxu1 %v8147_v62  ;;  %v8154_v62 = vld [vmem:[%s10734_s4 + $0x40] sm:$0xff]  }
 0x43d   : > { %7704 = vmatprep.subr.bf16.mxu1 %v8149_v0 }
 0x440   : > { %7705 = vmatpush3.bf16.msra.mxu1 %v8149_v0  ;;  %v8618_v0 = vld [vmem:[%s10736_s6 + $0x40] sm:$0xff] }
 0x441   : > { %7706 = vmatprep.subr.bf16.mxu1 %v8150_v1 }
 0x444   : > { %7707 = vmatpush3.bf16.msra.mxu1 %v8150_v1 }
 0x445   : > { %7724 = vmatprep.subr.bf16.mxu1 %v9199_v2 }
 0x4d7   : > { %v7655_v4 = vpop.f32.mrf.mxu1 }
 0x4d9   : > { %v1533_v5 = vpop.f32.mrf.mxu1 }
 0x4db   : > { %v7656_v6 = vpop.f32.mrf.mxu1 }
 0x4dd   : > { %v1536_v7 = vpop.f32.mrf.mxu1 }
 0x4e7   : > { %v7667_v8 = vpop.f32.mrf.mxu1 }
 0x4e8   : > { %v1619_v17 = vadd.f32 %v7667_v8, %v7655_v4 }
 0x4e9   : > { %v1610_v9 = vpop.f32.mrf.mxu1 }
 0x4ea   : > { %v1611_v14 = vadd.f32 %v1610_v9, %v1533_v5 }
 0x4eb   : > { %v7668_v10 = vpop.f32.mrf.mxu1 }
 0x4ec   : > { %v1622_v20 = vadd.f32 %v7668_v10, %v7656_v6 }
 0x4ed   : > { %v1613_v11 = vpop.f32.mrf.mxu1 }
 0x4ee   : > { %v1614_v21 = vadd.f32 %v1613_v11, %v1536_v7 }
 0x4f7   : > { %v7679_v12 = vpop.f32.mrf.mxu1 }
 0x4f8   : > { %v9143_v23 = vadd.f32 %v7679_v12, %v1619_v17 }
 0x4f9   : > { %v1708_v16 = vpop.f32.mrf.mxu1 }
 0x4fa   : > { %v9141_v18 = vadd.f32 %v1708_v16, %v1611_v14  ;;  %v1742_v32 = vmul.f32 %v9143_v23, %v9143_v23  ;;  %v1730_v34 = vsel %vm1282_vm6, %v9143_v23, 0.0 }
 0x4fb   : > { %v7680_v19 = vpop.f32.mrf.mxu1 }
 0x4fc   : > { %v1740_v27 = vmul.f32 %v9141_v18, %v9141_v18  ;;  %v9147_v30 = vadd.f32 %v7680_v19, %v1622_v20  ;;  %v1727_v33 = vsel %vm1282_vm6, %v9141_v18, 0.0  ;;  %v1747_v38 = vsel %vm1282_vm6, %v1742_v32, 0.0 }
 0x4fd   : > { %v1711_v24 = vpop.f32.mrf.mxu1 }
 0x4fe   : > { %v9149_v31 = vadd.f32 %v1711_v24, %v1614_v21  ;;  %v1744_v25 = vsel %vm1282_vm6, %v1740_v27, 0.0  ;;  %v1743_v35 = vmul.f32 %v9147_v30, %v9147_v30  ;;  %v1732_v39 = vsel %vm1282_vm6, %v9147_v30, 0.0 }
 0x500   : > { %v1728_v26 = vsel %vm1282_vm6, %v9149_v31, 0.0  ;;  %v1741_v29 = vmul.f32 %v9149_v31, %v9149_v31  ;;  %v1749_v42 = vsel %vm1282_vm6, %v1743_v35, 0.0 }
 0x501   : > { %v1729_v22 = vadd.f32 %v1728_v26, %v1727_v33 }
 0x502   : > { %v1745_v28 = vsel %vm1282_vm6, %v1741_v29, 0.0 }
 0x503   : > { %v1731_v36 = vadd.f32 %v1730_v34, %v1729_v22  ;;  %v1746_v37 = vadd.f32 %v1745_v28, %v1744_v25 }
 0x505   : > { %v1733_v40 = vadd.f32 %v1732_v39, %v1731_v36  ;;  %v1748_v41 = vadd.f32 %v1747_v38, %v1746_v37 }
 0x507   : > { %v1734_v43 = vrot.slane %v1733_v40, 4  ;;  %v1750_v44 = vadd.f32 %v1749_v42, %v1748_v41  ;;  %v8611_v42 = vld [vmem:[%s10736_s6 + $0x78] sm:$0xff] }
 0x509   : > { %v1735_v45 = vadd.f32 %v1734_v43, %v1733_v40  ;;  %v1751_v46 = vrot.slane %v1750_v44, 4 }
 0x50b   : > { %v1736_v47 = vrot.slane %v1735_v45, 2  ;;  %v1752_v48 = vadd.f32 %v1751_v46, %v1750_v44 }
 0x50d   : > { %v1737_v49 = vadd.f32 %v1736_v47, %v1735_v45  ;;  %v1753_v50 = vrot.slane %v1752_v48, 2 }
 0x50f   : > { %v1738_v51 = vrot.slane %v1737_v49, 1  ;;  %v1754_v52 = vadd.f32 %v1753_v50, %v1752_v48 }
 0x511   : > { %v1755_v53 = vrot.slane %v1754_v52, 1  ;;  %v1739_v54 = vadd.f32 %v1738_v51, %v1737_v49  ;;  %v8612_v49 = vld [vmem:[%s10736_s6 + $0x70] sm:$0xff] }
 0x513   : > { %v1756_v55 = vadd.f32 %v1755_v53, %v1754_v52  ;;  %v8152_v53 = vld [vmem:[%s10734_s4 + $0x50] sm:$0xff]  }
 0x515   : > { %v1757_v57 = vsel %vm786_vm5, %v1739_v54, %v1756_v55  ;;  %v8613_v54 = vld [vmem:[%s10736_s6 + $0x68] sm:$0xff] }
 0x516   : > { %7698 = vmatmul.mubr.msk.f32.vlgmr.msra.gmra.mxu0 %vm1282_vm6, %v1757_v57 }
 0x517   : > { %7713 = vmatpush3.bf16.msra.mxu0 %v8143_v58  ;;  %v8614_v58 = vld [vmem:[%s10736_s6 + $0x60] sm:$0xff] }
 0x518   : > { %7714 = vmatprep.subr.bf16.mxu0 %v8144_v59 }
 0x51b   : > { %7715 = vmatpush3.bf16.msra.mxu0 %v8144_v59  ;;  %v8153_v59 = vld [vmem:[%s10734_s4 + $0x48] sm:$0xff]  }
 0x51c   : > { %7716 = vmatprep.subr.bf16.mxu0 %v8146_v61 }
 0x51f   : > { %7717 = vmatpush3.bf16.msra.mxu0 %v8146_v61  ;;  %v8616_v61 = vld [vmem:[%s10736_s6 + $0x50] sm:$0xff] }
 0x520   : > { %7718 = vmatprep.subr.bf16.mxu0 %v8148_v63 }
 0x523   : > { %7719 = vmatpush3.bf16.msra.mxu0 %v8148_v63  ;;  %v8617_v63 = vld [vmem:[%s10736_s6 + $0x48] sm:$0xff] }
 0x524   : > { %7736 = vmatprep.subr.mxu0 %v8676_v56 }
 0x5d6   : > { %v1827_v3 = vpop.f32.mrf.mxu0 }
 0x5d7   : > { %v1831_v4 = vmul.f32 %v1827_v3, %v1827_v3  ;;  %v1839_v9 = vrot.slane %v1827_v3, %v8976_v13 }
 0x5d8   : > { %v7699_v5 = vpop.f32.mrf.mxu0 }
 0x5d9   : > { %v1833_v6 = vrot.slane %v1831_v4, 7  ;;  %v1840_v11 = vsub.f32 %v9141_v18, %v1839_v9  ;;  %v1841_v12 = vsub.f32 %v9149_v31, %v1839_v9  ;;  %v1842_v14 = vsub.f32 %v9143_v23, %v1839_v9  ;;  %v8620_v4 = vld [vmem:[%s10736_s6 + $0x30] sm:$0xff] }
 0x5da   : > { %v1843_v16 = vsub.f32 %v9147_v30, %v1839_v9  ;;  %v8624_v9 = vld [vmem:[%s10736_s6 + $0x10] sm:$0xff] }
 0x5db   : > { %v1835_v7 = vsub.f32 %v1827_v3, %v1833_v6  ;;  %v8619_v3 = vld [vmem:[%s10736_s6 + $0x38] sm:$0xff]  ;;  %v8621_v6 = vld [vmem:[%s10736_s6 + $0x28] sm:$0xff] }
 0x5dd   : > { %v1844_v8 = vadd.f32 1e-05, %v1835_v7  ;;  %v8622_v7 = vld [vmem:[%s10736_s6 + $0x20] sm:$0xff] }
 0x5df   : > { %8519 = vrsqrt.f32 %v1844_v8  ;;  %v8623_v8 = vld [vmem:[%s10736_s6 + $0x18] sm:$0xff] }
 0x5ec   : > { %v8520_v10 = vpop.eup %8519 }
 0x5ed   : > { %v1849_v17 = vrot.slane %v8520_v10, %v8979_v15  ;;  %v8625_v10 = vld [vmem:[%s10736_s6 + $0x8] sm:$0xff] }
 0x5ef   : > { %v1850_v19 = vmul.f32 %v1849_v17, %v1840_v11  ;;  %v1851_v20 = vmul.f32 %v1849_v17, %v1841_v12  ;;  %v1852_v21 = vmul.f32 %v1849_v17, %v1842_v14  ;;  %v1853_v24 = vmul.f32 %v1849_v17, %v1843_v16  ;;  %v8626_v11 = vld [vmem:[%s10736_s6] sm:$0xff] }
 0x5f1   : > { %v1854_v27 = vmax.f32 %v1850_v19, 0.0  ;;  %v1855_v32 = vmax.f32 %v1851_v20, 0.0  ;;  %v1856_v33 = vmax.f32 %v1852_v21, 0.0  ;;  %v1857_v26 = vmax.f32 %v1853_v24, 0.0 }
 0x5f3   : > { %1858 = vst.msk [vmem:[#allocation5 + $0x1] sm:$0xff] %vm1282_vm6, %v1854_v27  ;;  %1859 = vst.msk [vmem:[#allocation5 + $0x9] sm:$0xff] %vm1282_vm6, %v1855_v32 }
 0x5f4   : > { %1860 = vst.msk [vmem:[#allocation5 + $0x19] sm:$0xff] %vm1282_vm6, %v1856_v33  ;;  %1861 = vst.msk [vmem:[#allocation5 + $0x21] sm:$0xff] %vm1282_vm6, %v1857_v26 }
 0x5fa   : > { %v1862_v18 = vld [vmem:[#allocation5] sm:$0xff]  ;;  %v1863_v23 = vld [vmem:[#allocation5 + $0x8] sm:$0xff]  ;;  %v1864_v22 = vld [vmem:[#allocation5 + $0x10] sm:$0x3] }
 0x5fb   : > { %v1865_v30 = vld [vmem:[#allocation5 + $0x18] sm:$0xff]  ;;  %v1868_v31 = vpack.c.bf16 %v1863_v23, %v1862_v18  ;;  %v1866_v29 = vld [vmem:[#allocation5 + $0x20] sm:$0xff]  ;;  %v1867_v34 = vld [vmem:[#allocation5 + $0x28] sm:$0x3]  ;;  %v1869_v35 = vpack.c.bf16 %v1864_v22, %v1864_v22 }
 0x5fc   : > { %v9212_v25 = vpack.c.bf16 %v1866_v29, %v1865_v30  ;;  %v9214_v28 = vpack.c.bf16 %v1867_v34, %v1867_v34 }
 0x5fd   : > { %7720 = vmatprep.mubr.msk.bf16.mxu0 %vm1282_vm6, %v1868_v31  ;;  %v1883_v36 = vshll.u32 %v1868_v31, 16  ;;  %v1888_v37 = vshll.u32 %v1869_v35, 16  ;;  %v1881_v40 = vshrl.u32 %v1868_v31, 16  ;;  %v2073_v47 = vrot.slane %v1868_v31, 1 }
 0x5fe   : > { %7721 = vmatmul.mubr.msk.bf16.vlgmr.msra.gmra.mxu0 %vm1282_vm6, %v9212_v25  ;;  %v1895_v38 = vshll.u32 %v9212_v25, 16  ;;  %v1900_v39 = vshll.u32 %v9214_v28, 16  ;;  %v1893_v43 = vshrl.u32 %v9212_v25, 16  ;;  %v2074_v48 = vrot.slane %v1869_v35, 1 }
 0x5ff   : > { %v1885_v41 = vrot.slane %v1883_v36, 1  ;;  %7737 = vmatpush3.msra.mxu0 %v8611_v42  ;;  %7768 = vmatprep.mubr.msk.f32.mxu0 %vm8677_vm4, %v8676_v56  ;;  %v1890_v46 = vrot.slane %v1888_v37, 1  ;;  %v2076_v1 = vrot.slane %v9212_v25, 1 }
 0x600   : > { %v1897_v44 = vrot.slane %v1895_v38, 1  ;;  %7738 = vmatprep.subr.mxu0 %v8676_v56  ;;  %v1902_v51 = vrot.slane %v1900_v39, 1  ;;  %v2075_v57 = vsel %vm637_vm3, %v2073_v47, %v2074_v48 }
 0x601   : > { %v1886_v45 = vor.u32 %v1885_v41, %v1881_v40  ;;  %7739 = vmatpush3.msra.mxu0 %v8612_v49 }
 0x602   : > { %v1898_v50 = vor.u32 %v1897_v44, %v1893_v43  ;;  %7740 = vmatprep.subr.mxu0 %v8676_v56 }
 0x603   : > { %v1891_v52 = vsel %vm395_vm2, %v1886_v45, %v1890_v46  ;;  %7741 = vmatpush3.msra.mxu0 %v8613_v54 }
 0x604   : > { %7708 = vmatprep.mubr.msk.bf16.mxu1 %vm1282_vm6, %v1891_v52  ;;  %v1903_v55 = vsel %vm395_vm2, %v1898_v50, %v1902_v51  ;;  %7742 = vmatprep.subr.mxu0 %v8676_v56 }
 0x605   : > { %7709 = vmatmul.mubr.msk.bf16.vlgmr.msra.gmra.mxu1 %vm1282_vm6, %v1903_v55  ;;  %7743 = vmatpush3.msra.mxu0 %v8614_v58  ;;  %v8157_v58 = vld [vmem:[%s10735_s5 + $0x1e4] ss:$16 sps:$4 sm:$0xff]  }
 0x606   : > { %7725 = vmatpush3.bf16.msra.mxu1 %v9199_v2  ;;  %7732 = vmatprep.mubr.msk.bf16.mxu1 %vm1282_vm6, %v2075_v57  ;;  %v2077_v2 = vrot.slane %v9214_v28, 1 }
 0x607   : > { %7726 = vmatprep.subr.bf16.mxu1 %v8152_v53  ;;  %7744 = vmatprep.subr.mxu0 %v8676_v56 }
 0x608   : > { %7745 = vmatpush3.msra.mxu0 %v8615_v60  ;;  %v2078_v5 = vsel %vm637_vm3, %v2076_v1, %v2077_v2  ;;  %v8155_v60 = vld [vmem:[%s10735_s5 + $0x1e0] ss:$16 sps:$4 sm:$0xff]   ;;  %v8164_v1 = vld [vmem:[%s10735_s5 + $0x1c8] ss:$16 sps:$4 sm:$0xff]   ;;  %v8169_v2 = vld [vmem:[%s10735_s5 + $0x1a4] ss:$16 sps:$4 sm:$0xff]  }
 0x609   : > { %7746 = vmatprep.subr.mxu0 %v8676_v56 }
 0x60a   : > { %7727 = vmatpush3.bf16.msra.mxu1 %v8152_v53  ;;  %7747 = vmatpush3.msra.mxu0 %v8616_v61  ;;  %v8158_v61 = vld [vmem:[%s10735_s5 + $0x1e8] ss:$16 sps:$4 sm:$0xff]  }
 0x60b   : > { %7728 = vmatprep.subr.bf16.mxu1 %v8153_v59  ;;  %7748 = vmatprep.subr.mxu0 %v8676_v56 }
 0x60c   : > { %7749 = vmatpush3.msra.mxu0 %v8617_v63  ;;  %v8166_v63 = vld [vmem:[%s10735_s5 + $0x1cc] ss:$16 sps:$4 sm:$0xff]  }
 0x60d   : > { %7750 = vmatprep.subr.mxu0 %v8676_v56 }
 0x60e   : > { %7729 = vmatpush3.bf16.msra.mxu1 %v8153_v59  ;;  %7751 = vmatpush3.msra.mxu0 %v8618_v0  ;;  %v8160_v59 = vld [vmem:[%s10735_s5 + $0x1ec] ss:$16 sps:$4 sm:$0xff]   ;;  %v8161_v0 = vld [vmem:[%s10735_s5 + $0x1c0] ss:$16 sps:$4 sm:$0xff]  }
 0x60f   : > { %7730 = vmatprep.subr.bf16.mxu1 %v8154_v62  ;;  %7752 = vmatprep.subr.mxu0 %v8676_v56 }
 0x610   : > { %7753 = vmatpush3.msra.mxu0 %v8619_v3  ;;  %v8172_v3 = vld [vmem:[%s10735_s5 + $0x1ac] ss:$16 sps:$4 sm:$0xff]  }
 0x611   : > { %7754 = vmatprep.subr.mxu0 %v8676_v56 }
 0x612   : > { %7731 = vmatpush3.bf16.msra.mxu1 %v8154_v62  ;;  %7755 = vmatpush3.msra.mxu0 %v8620_v4  ;;  %v8163_v62 = vld [vmem:[%s10735_s5 + $0x1c4] ss:$16 sps:$4 sm:$0xff]   ;;  %v8167_v4 = vld [vmem:[%s10735_s5 + $0x1a0] ss:$16 sps:$4 sm:$0xff]  }
 0x613   : > { %7756 = vmatprep.subr.mxu0 %v8676_v56  ;;  %2564 = vmatprep.subr.bf16.mxu1 %v8157_v58  ;;  %v366_v58 = vld [vmem:[#allocation2] sm:$0xff] }
 0x614   : > { %7757 = vmatpush3.msra.mxu0 %v8621_v6  ;;  %v8175_v6 = vld [vmem:[%s10735_s5 + $0x184] ss:$16 sps:$4 sm:$0xff]  }
 0x615   : > { %7733 = vmatmul.mubr.msk.bf16.vlgmr.msra.gmra.mxu1 %vm1282_vm6, %v2078_v5  ;;  %7758 = vmatprep.subr.mxu0 %v8676_v56  ;;  %v8170_v5 = vld [vmem:[%s10735_s5 + $0x1a8] ss:$16 sps:$4 sm:$0xff]  }
 0x616   : > { %7759 = vmatpush3.msra.mxu0 %v8622_v7  ;;  %2565 = vmatpush1.bf16.msra.mxu1 %v8155_v60  ;;  %v8178_v7 = vld [vmem:[%s10735_s5 + $0x18c] ss:$16 sps:$4 sm:$0xff]  }
 0x617   : > { %7760 = vmatprep.subr.mxu0 %v8676_v56  ;;  %2566 = vmatprep.subr.bf16.mxu1 %v8163_v62 }
 0x618   : > { %7761 = vmatpush3.msra.mxu0 %v8623_v8  ;;  %v8173_v8 = vld [vmem:[%s10735_s5 + $0x180] ss:$16 sps:$4 sm:$0xff]  }
 0x619   : > { %7762 = vmatprep.subr.mxu0 %v8676_v56 }
 0x61a   : > { %7763 = vmatpush3.msra.mxu0 %v8624_v9  ;;  %2567 = vmatpush1.bf16.msra.mxu1 %v8161_v0  ;;  %v8176_v9 = vld [vmem:[%s10735_s5 + $0x188] ss:$16 sps:$4 sm:$0xff]  }
 0x61b   : > { %7764 = vmatprep.subr.mxu0 %v8676_v56  ;;  %2568 = vmatprep.subr.bf16.mxu1 %v8169_v2 }
 0x61c   : > { %7765 = vmatpush3.msra.mxu0 %v8625_v10  ;;  %v8181_v10 = vld [vmem:[%s10735_s5 + $0x164] ss:$16 sps:$4 sm:$0xff]  }
 0x61d   : > { %7766 = vmatprep.subr.mxu0 %v8676_v56 }
 0x61e   : > { %7767 = vmatpush3.msra.mxu0 %v8626_v11  ;;  %2569 = vmatpush1.bf16.msra.mxu1 %v8167_v4  ;;  %v8184_v11 = vld [vmem:[%s10735_s5 + $0x16c] ss:$16 sps:$4 sm:$0xff]  }
 0x61f   : > { %2617 = vmatprep.subr.bf16.mxu0 %v8160_v59  ;;  %2570 = vmatprep.subr.bf16.mxu1 %v8175_v6  ;;  %v367_v59 = vld [vmem:[#allocation2 + $0x18] sm:$0xff] }
 0x622   : > { %2571 = vmatpush1.bf16.msra.mxu1 %v8173_v8 }
 0x623   : > { %2572 = vmatprep.subr.bf16.mxu1 %v8181_v10 }
 0x6be   : > { %v7722_v16 = vpop.f32.mrf.mxu0 }
 0x6c0   : > { %v2054_v19 = vpop.f32.mrf.mxu0 }
 0x6c2   : > { %v7723_v21 = vpop.f32.mrf.mxu0 }
 0x6c4   : > { %v2057_v33 = vpop.f32.mrf.mxu0 }
 0x6c5   : > { %v7710_v12 = vpop.f32.mrf.mxu1 }
 0x6c6   : > { %v2063_v18 = vadd.f32 %v7722_v16, %v7710_v12  ;;  %v8179_v12 = vld [vmem:[%s10735_s5 + $0x160] ss:$16 sps:$4 sm:$0xff]   ;;  %v8187_v16 = vld [vmem:[%s10735_s5 + $0x144] ss:$16 sps:$4 sm:$0xff]  }
 0x6c7   : > { %v1977_v14 = vpop.f32.mrf.mxu1  ;;  %2573 = vmatpush1.bf16.msra.mxu1 %v8179_v12 }
 0x6c8   : > { %v2055_v32 = vadd.f32 %v2054_v19, %v1977_v14  ;;  %v8182_v14 = vld [vmem:[%s10735_s5 + $0x168] ss:$16 sps:$4 sm:$0xff]   ;;  %v8185_v19 = vld [vmem:[%s10735_s5 + $0x140] ss:$16 sps:$4 sm:$0xff]   ;;  %2574 = vmatprep.subr.bf16.mxu1 %v8187_v16 }
 0x6c9   : > { %v7711_v17 = vpop.f32.mrf.mxu1 }
 0x6ca   : > { %v2066_v29 = vadd.f32 %v7723_v21, %v7711_v17  ;;  %v8190_v17 = vld [vmem:[%s10735_s5 + $0x14c] ss:$16 sps:$4 sm:$0xff]   ;;  %v8193_v21 = vld [vmem:[%s10735_s5 + $0x124] ss:$16 sps:$4 sm:$0xff]  }
 0x6cb   : > { %v1980_v20 = vpop.f32.mrf.mxu1  ;;  %2575 = vmatpush1.bf16.msra.mxu1 %v8185_v19 }
 0x6cc   : > { %v2058_v23 = vadd.f32 %v2057_v33, %v1980_v20  ;;  %v8188_v20 = vld [vmem:[%s10735_s5 + $0x148] ss:$16 sps:$4 sm:$0xff]   ;;  %2576 = vmatprep.subr.bf16.mxu1 %v8193_v21 }
 0x6cd   : > { %v8194_v33 = vld [vmem:[%s10735_s5 + $0x128] ss:$16 sps:$4 sm:$0xff]  }
 0x6d5   : > { %v7734_v24 = vpop.f32.mrf.mxu1 }
 0x6d6   : > { %v9309_v22 = vadd.f32 %v7734_v24, %v2063_v18  ;;  %v8196_v24 = vld [vmem:[%s10735_s5 + $0x12c] ss:$16 sps:$4 sm:$0xff]  }
 0x6d7   : > { %v2152_v27 = vpop.f32.mrf.mxu1  ;;  %v8202_v18 = vld [vmem:[%s10735_s5 + $0x10c] ss:$16 sps:$4 sm:$0xff]  }
 0x6d8   : > { %v9307_v30 = vadd.f32 %v2152_v27, %v2055_v32  ;;  %v2182_v37 = vmul.f32 %v9309_v22, %v9309_v22  ;;  %v8678_v27 = vmov 0   ;;  %v8191_v32 = vld [vmem:[%s10735_s5 + $0x120] ss:$16 sps:$4 sm:$0xff]  }
 0x6d9   : > { %v7735_v26 = vpop.f32.mrf.mxu1  ;;  %2596 = vmatprep.mubr.bf16.mxu1 %v8678_v27  ;;  %2577 = vmatpush1.bf16.msra.mxu1 %v8191_v32 }
 0x6da   : > { %v2180_v25 = vmul.f32 %v9307_v30, %v9307_v30  ;;  %v9315_v35 = vadd.f32 %v7735_v26, %v2066_v29  ;;  %v8199_v26 = vld [vmem:[%s10735_s5 + $0x104] ss:$16 sps:$4 sm:$0xff]  }
 0x6db   : > { %v2155_v31 = vpop.f32.mrf.mxu1  ;;  %2578 = vmatprep.subr.bf16.mxu1 %v8199_v26  ;;  %v8205_v29 = vld [vmem:[%s10735_s5 + $0xe4] ss:$16 sps:$4 sm:$0xff]   ;;  %v8206_v26 = vld [vmem:[%s10735_s5 + $0xe8] ss:$16 sps:$4 sm:$0xff]  }
 0x6dc   : > { %v9311_v34 = vadd.f32 %v2155_v31, %v2058_v23  ;;  %v2183_v40 = vmul.f32 %v9315_v35, %v9315_v35  ;;  %v8197_v23 = vld [vmem:[%s10735_s5 + $0x100] ss:$16 sps:$4 sm:$0xff]   ;;  %v8200_v31 = vld [vmem:[%s10735_s5 + $0x108] ss:$16 sps:$4 sm:$0xff]  }
 0x6dd   : > { %2579 = vmatpush1.bf16.msra.mxu1 %v8197_v23 }
 0x6de   : > { %v2171_v28 = vadd.f32 %v9311_v34, %v9307_v30  ;;  %v2181_v36 = vmul.f32 %v9311_v34, %v9311_v34  ;;  %2830 = vmatprep.subr.bf16.mxu1 %v8205_v29  ;;  %v8211_v29 = vld [vmem:[%s10735_s5 + $0xc4] ss:$16 sps:$4 sm:$0xff]  }
 0x6e0   : > { %v2172_v38 = vadd.f32 %v2171_v28, %v9309_v22  ;;  %v2184_v39 = vadd.f32 %v2181_v36, %v2180_v25  ;;  %v8208_v25 = vld [vmem:[%s10735_s5 + $0xec] ss:$16 sps:$4 sm:$0xff]  }
 0x6e2   : > { %v2173_v41 = vadd.f32 %v2172_v38, %v9315_v35  ;;  %v2185_v42 = vadd.f32 %v2184_v39, %v2182_v37 }
 0x6e4   : > { %v2174_v43 = vrot.slane %v2173_v41, 4  ;;  %v2186_v44 = vadd.f32 %v2185_v42, %v2183_v40 }
 0x6e6   : > { %v2175_v45 = vadd.f32 %v2174_v43, %v2173_v41  ;;  %v2187_v46 = vrot.slane %v2186_v44, 4 }
 0x6e8   : > { %v2176_v47 = vrot.slane %v2175_v45, 2  ;;  %v2188_v48 = vadd.f32 %v2187_v46, %v2186_v44 }
 0x6ea   : > { %v2177_v49 = vadd.f32 %v2176_v47, %v2175_v45  ;;  %v2189_v50 = vrot.slane %v2188_v48, 2 }
 0x6ec   : > { %v2178_v51 = vrot.slane %v2177_v49, 1  ;;  %v2190_v52 = vadd.f32 %v2189_v50, %v2188_v48 }
 0x6ee   : > { %v2191_v53 = vrot.slane %v2190_v52, 1  ;;  %v2179_v54 = vadd.f32 %v2178_v51, %v2177_v49 }
 0x6f0   : > { %v2192_v55 = vadd.f32 %v2191_v53, %v2190_v52  ;;  %v365_v52 = vld [vmem:[#allocation2 + $0x10] sm:$0xff] }
 0x6f2   : > { %v2193_v57 = vsel %vm786_vm5, %v2179_v54, %v2192_v55 }
 0x6f3   : > { %7769 = vmatmul.mubr.f32.vlgmr.msra.gmra.mxu0 %v2193_v57 }
 0x6f4   : > { %2618 = vmatpush1.bf16.msra.mxu0 %v8158_v61  ;;  %2649 = vmatprep.mubr.bf16.mxu0 %v8678_v27 }
 0x6f5   : > { %2619 = vmatprep.subr.bf16.mxu0 %v8166_v63 }
 0x6f8   : > { %2620 = vmatpush1.bf16.msra.mxu0 %v8164_v1 }
 0x6f9   : > { %2621 = vmatprep.subr.bf16.mxu0 %v8172_v3 }
 0x6fc   : > { %2622 = vmatpush1.bf16.msra.mxu0 %v8170_v5 }
 0x6fd   : > { %2623 = vmatprep.subr.bf16.mxu0 %v8178_v7 }
 0x700   : > { %2624 = vmatpush1.bf16.msra.mxu0 %v8176_v9 }
 0x701   : > { %2625 = vmatprep.subr.bf16.mxu0 %v8184_v11 }
 0x704   : > { %2626 = vmatpush1.bf16.msra.mxu0 %v8182_v14 }
 0x705   : > { %2627 = vmatprep.subr.bf16.mxu0 %v8190_v17 }
 0x708   : > { %2628 = vmatpush1.bf16.msra.mxu0 %v8188_v20 }
 0x709   : > { %2629 = vmatprep.subr.bf16.mxu0 %v8196_v24 }
 0x70c   : > { %2630 = vmatpush1.bf16.msra.mxu0 %v8194_v33  ;;  %v8203_v33 = vld [vmem:[%s10735_s5 + $0xe0] ss:$16 sps:$4 sm:$0xff]  }
 0x70d   : > { %2631 = vmatprep.subr.bf16.mxu0 %v8202_v18 }
 0x710   : > { %2632 = vmatpush1.bf16.msra.mxu0 %v8200_v31 }
 0x711   : > { %2883 = vmatprep.subr.bf16.mxu0 %v8208_v25  ;;  %v8214_v25 = vld [vmem:[%s10735_s5 + $0xcc] ss:$16 sps:$4 sm:$0xff]  }
 0x7b3   : > { %v2260_v28 = vpop.f32.mrf.mxu0 }
 0x7b4   : > { %v2264_v36 = vmul.f32 %v2260_v28, %v2260_v28  ;;  %v2272_v41 = vrot.slane %v2260_v28, %v8976_v13 }
 0x7b5   : > { %v7770_v37 = vpop.f32.mrf.mxu0 }
 0x7b6   : > { %v2266_v38 = vrot.slane %v2264_v36, 7  ;;  %v2273_v43 = vsub.f32 %v9307_v30, %v2272_v41  ;;  %v2274_v44 = vsub.f32 %v9311_v34, %v2272_v41  ;;  %v2275_v45 = vsub.f32 %v9309_v22, %v2272_v41  ;;  %v368_v30 = vld [vmem:[#allocation2 + $0x8] sm:$0xff]  ;;  %v8209_v37 = vld [vmem:[%s10735_s5 + $0xc0] ss:$16 sps:$4 sm:$0xff]  }
 0x7b7   : > { %v2276_v46 = vsub.f32 %v9315_v35, %v2272_v41  ;;  %v8217_v41 = vld [vmem:[%s10735_s5 + $0xa4] ss:$16 sps:$4 sm:$0xff]  }
 0x7b8   : > { %v2268_v39 = vsub.f32 %v2260_v28, %v2266_v38  ;;  %v8212_v38 = vld [vmem:[%s10735_s5 + $0xc8] ss:$16 sps:$4 sm:$0xff]  }
 0x7ba   : > { %v2277_v40 = vadd.f32 1e-05, %v2268_v39 }
 0x7bc   : > { %8521 = vrsqrt.f32 %v2277_v40 }
 0x7c9   : > { %v8522_v42 = vpop.eup %8521 }
 0x7ca   : > { %v2282_v47 = vrot.slane %v8522_v42, %v8979_v15  ;;  %v8220_v42 = vld [vmem:[%s10735_s5 + $0xac] ss:$16 sps:$4 sm:$0xff]  }
 0x7cc   : > { %v2283_v48 = vmul.f32 %v2282_v47, %v2273_v43  ;;  %v2284_v49 = vmul.f32 %v2282_v47, %v2274_v44  ;;  %v2285_v50 = vmul.f32 %v2282_v47, %v2275_v45  ;;  %v2286_v51 = vmul.f32 %v2282_v47, %v2276_v46  ;;  %v8215_v44 = vld [vmem:[%s10735_s5 + $0xa0] ss:$16 sps:$4 sm:$0xff]   ;;  %v8218_v45 = vld [vmem:[%s10735_s5 + $0xa8] ss:$16 sps:$4 sm:$0xff]   ;;  %v8223_v47 = vld [vmem:[%s10735_s5 + $0x84] ss:$16 sps:$4 sm:$0xff]  }
 0x7ce   : > { %v2287_v53 = vmax.f32 %v2283_v48, 0.0  ;;  %v2288_v54 = vmax.f32 %v2284_v49, 0.0  ;;  %v2289_v55 = vmax.f32 %v2285_v50, 0.0  ;;  %v2290_v57 = vmax.f32 %v2286_v51, 0.0  ;;  %v8226_v48 = vld [vmem:[%s10735_s5 + $0x8c] ss:$16 sps:$4 sm:$0xff]  }
 0x7cf   : > { %v8221_v50 = vld [vmem:[%s10735_s5 + $0x80] ss:$16 sps:$4 sm:$0xff]   ;;  %v8224_v51 = vld [vmem:[%s10735_s5 + $0x88] ss:$16 sps:$4 sm:$0xff]  }
 0x7d0   : > { %v2291_v60 = vmul.f32 0.25, %v2287_v53  ;;  %v2292_v34 = vmul.f32 0.25, %v2288_v54  ;;  %v2293_v61 = vmul.f32 0.25, %v2289_v55  ;;  %v2294_v22 = vmul.f32 0.25, %v2290_v57  ;;  %v8232_v53 = vld [vmem:[%s10735_s5 + $0x6c] ss:$16 sps:$4 sm:$0xff]  }
 0x7d1   : > { %v8227_v54 = vld [vmem:[%s10735_s5 + $0x60] ss:$16 sps:$4 sm:$0xff]   ;;  %v8230_v55 = vld [vmem:[%s10735_s5 + $0x68] ss:$16 sps:$4 sm:$0xff]   ;;  %v8235_v57 = vld [vmem:[%s10735_s5 + $0x44] ss:$16 sps:$4 sm:$0xff]  }
 0x7d2   : > { %v2295_v62 = vadd.f32 %v2291_v60, %v365_v52  ;;  %v2296_v35 = vadd.f32 %v2292_v34, %v366_v58  ;;  %v2297_v63 = vadd.f32 %v2293_v61, %v367_v59  ;;  %v2298_v0 = vadd.f32 %v2294_v22, %v368_v30  ;;  %v8229_v52 = vld [vmem:[%s10735_s5 + $0x64] ss:$16 sps:$4 sm:$0xff]   ;;  %v8238_v58 = vld [vmem:[%s10735_s5 + $0x4c] ss:$16 sps:$4 sm:$0xff]   ;;  %v8233_v59 = vld [vmem:[%s10735_s5 + $0x40] ss:$16 sps:$4 sm:$0xff]  }
 0x7d3   : > { %v8236_v30 = vld [vmem:[%s10735_s5 + $0x48] ss:$16 sps:$4 sm:$0xff]   ;;  %v8241_v60 = vld [vmem:[%s10735_s5 + $0x24] ss:$16 sps:$4 sm:$0xff]   ;;  %v8244_v34 = vld [vmem:[%s10735_s5 + $0x2c] ss:$16 sps:$4 sm:$0xff]  }
 0x7d4   : > { %2299 = vst [vmem:[#allocation4 + $0x1] sm:$0xff] %v2295_v62  ;;  %2300 = vst [vmem:[#allocation4 + $0x9] sm:$0xff] %v2296_v35  ;;  %v8239_v61 = vld [vmem:[%s10735_s5 + $0x20] ss:$16 sps:$4 sm:$0xff]   ;;  %v8242_v22 = vld [vmem:[%s10735_s5 + $0x28] ss:$16 sps:$4 sm:$0xff]  }
 0x7d5   : > { %2301 = vst [vmem:[#allocation4 + $0x19] sm:$0xff] %v2297_v63  ;;  %2302 = vst [vmem:[#allocation4 + $0x21] sm:$0xff] %v2298_v0  ;;  %v8247_v62 = vld [vmem:[%s10735_s5 + $0x4] ss:$16 sps:$4 sm:$0xff]   ;;  %v8250_v35 = vld [vmem:[%s10735_s5 + $0xc] ss:$16 sps:$4 sm:$0xff]  }
 0x7d6   : > { %v8245_v63 = vld [vmem:[%s10735_s5] ss:$16 sps:$4 sm:$0xff]   ;;  %v8248_v0 = vld [vmem:[%s10735_s5 + $0x8] ss:$16 sps:$4 sm:$0xff]  }
 0x7db   : > { %v2303_v1 = vld [vmem:[#allocation4] sm:$0xff]  ;;  %v2304_v2 = vld [vmem:[#allocation4 + $0x8] sm:$0xff]  ;;  %v2305_v3 = vld [vmem:[#allocation4 + $0x10] sm:$0x3] }
 0x7dc   : > { %v9438_v4 = vpack.c.bf16 %v2304_v2, %v2303_v1  ;;  %v2310_v5 = vpack.c.bf16 %v2305_v3, %v2305_v3  ;;  %v2306_v6 = vld [vmem:[#allocation4 + $0x18] sm:$0xff]  ;;  %v2307_v7 = vld [vmem:[#allocation4 + $0x20] sm:$0xff]  ;;  %v2308_v8 = vld [vmem:[#allocation4 + $0x28] sm:$0x3] }
 0x7dd   : > { %v9440_v9 = vpack.c.bf16 %v2307_v7, %v2306_v6  ;;  %v2312_v10 = vpack.c.bf16 %v2308_v8, %v2308_v8  ;;  %v8253_v1 = vld [vmem:[%s10735_s5 + $0x2e4] ss:$16 sps:$4 sm:$0xff]   ;;  %v8256_v2 = vld [vmem:[%s10735_s5 + $0x2ec] ss:$16 sps:$4 sm:$0xff]   ;;  %v8251_v3 = vld [vmem:[%s10735_s5 + $0x2e0] ss:$16 sps:$4 sm:$0xff]  }
 0x7de   : > { %v2348_v11 = vshll.u32 %v9438_v4, 16  ;;  %v2353_v12 = vshll.u32 %v2310_v5, 16  ;;  %v2940_v14 = vrot.slane %v9438_v4, 1  ;;  %v2346_v16 = vshrl.u32 %v9438_v4, 16  ;;  %v8259_v6 = vld [vmem:[%s10735_s5 + $0x2c4] ss:$16 sps:$4 sm:$0xff]  }
 0x7df   : > { %v2941_v17 = vrot.slane %v2310_v5, 1  ;;  %v2360_v20 = vshll.u32 %v9440_v9, 16  ;;  %v2943_v21 = vrot.slane %v9440_v9, 1  ;;  %v2944_v24 = vrot.slane %v2312_v10, 1  ;;  %v8254_v5 = vld [vmem:[%s10735_s5 + $0x2e8] ss:$16 sps:$4 sm:$0xff]  }
 0x7e0   : > { %v2350_v19 = vrot.slane %v2348_v11, 1  ;;  %v2355_v23 = vrot.slane %v2353_v12, 1  ;;  %v2358_v39 = vshrl.u32 %v9440_v9, 16  ;;  %v2365_v40 = vshll.u32 %v2312_v10, 16  ;;  %v8262_v7 = vld [vmem:[%s10735_s5 + $0x2cc] ss:$16 sps:$4 sm:$0xff]  }
 0x7e1   : > { %v9448_v32 = vsel %vm637_vm3, %v2940_v14, %v2941_v17  ;;  %v9457_v31 = vsel %vm637_vm3, %v2943_v21, %v2944_v24  ;;  %v2362_v36 = vrot.slane %v2360_v20, 1  ;;  %v8257_v8 = vld [vmem:[%s10735_s5 + $0x2c0] ss:$16 sps:$4 sm:$0xff]   ;;  %v8260_v10 = vld [vmem:[%s10735_s5 + $0x2c8] ss:$16 sps:$4 sm:$0xff]  }
 0x7e2   : > { %v2351_v18 = vor.u32 %v2350_v19, %v2346_v16  ;;  %v2367_v46 = vrot.slane %v2365_v40, 1  ;;  %v8265_v11 = vld [vmem:[%s10735_s5 + $0x2a4] ss:$16 sps:$4 sm:$0xff]   ;;  %v8263_v12 = vld [vmem:[%s10735_s5 + $0x2a0] ss:$16 sps:$4 sm:$0xff]  }
 0x7e3   : > { %v2363_v43 = vor.u32 %v2362_v36, %v2358_v39  ;;  %v8266_v14 = vld [vmem:[%s10735_s5 + $0x2a8] ss:$16 sps:$4 sm:$0xff]   ;;  %v8271_v16 = vld [vmem:[%s10735_s5 + $0x284] ss:$16 sps:$4 sm:$0xff]   ;;  %v8274_v17 = vld [vmem:[%s10735_s5 + $0x28c] ss:$16 sps:$4 sm:$0xff]  }
 0x7e4   : > { %v2356_v28 = vsel %vm395_vm2, %v2351_v18, %v2355_v23  ;;  %v8269_v19 = vld [vmem:[%s10735_s5 + $0x280] ss:$16 sps:$4 sm:$0xff]   ;;  %v8272_v20 = vld [vmem:[%s10735_s5 + $0x288] ss:$16 sps:$4 sm:$0xff]   ;;  %v8277_v21 = vld [vmem:[%s10735_s5 + $0x264] ss:$16 sps:$4 sm:$0xff]  }
 0x7e5   : > { %2597 = vmatmul.mubr.bf16.vlgmr.msra.gmra.mxu1 %v2356_v28  ;;  %2650 = vmatmul.mubr.bf16.vlgmr.msra.gmra.mxu0 %v2356_v28  ;;  %v2368_v49 = vsel %vm395_vm2, %v2363_v43, %v2367_v46  ;;  %v8275_v24 = vld [vmem:[%s10735_s5 + $0x260] ss:$16 sps:$4 sm:$0xff]   ;;  %v8286_v18 = vld [vmem:[%s10735_s5 + $0x24c] ss:$16 sps:$4 sm:$0xff]  }
 0x7e6   : > { %2831 = vmatpush1.bf16.msra.mxu1 %v8203_v33  ;;  %2884 = vmatpush1.bf16.msra.mxu0 %v8206_v26  ;;  %v8278_v33 = vld [vmem:[%s10735_s5 + $0x268] ss:$16 sps:$4 sm:$0xff]   ;;  %v8283_v26 = vld [vmem:[%s10735_s5 + $0x244] ss:$16 sps:$4 sm:$0xff]   ;;  %v8281_v23 = vld [vmem:[%s10735_s5 + $0x240] ss:$16 sps:$4 sm:$0xff]  }
 0x7e7   : > { %2832 = vmatprep.subr.bf16.mxu1 %v8211_v29  ;;  %2885 = vmatprep.subr.bf16.mxu0 %v8214_v25  ;;  %v8284_v29 = vld [vmem:[%s10735_s5 + $0x248] ss:$16 sps:$4 sm:$0xff]   ;;  %v8289_v25 = vld [vmem:[%s10735_s5 + $0x224] ss:$16 sps:$4 sm:$0xff]   ;;  %v8292_v28 = vld [vmem:[%s10735_s5 + $0x22c] ss:$16 sps:$4 sm:$0xff]  }
 0x7e8   : > { %2606 = vmatprep.mubr.bf16.mxu1 %v8678_v27  ;;  %2659 = vmatprep.mubr.bf16.mxu0 %v8678_v27  ;;  %v8287_v36 = vld [vmem:[%s10735_s5 + $0x220] ss:$16 sps:$4 sm:$0xff]   ;;  %v8298_v39 = vld [vmem:[%s10735_s5 + $0x20c] ss:$16 sps:$4 sm:$0xff]  }
 0x7e9   : > { %v8293_v40 = vld [vmem:[%s10735_s5 + $0x200] ss:$16 sps:$4 sm:$0xff]   ;;  %v8305_v46 = vld [vmem:[%s10731_s1 + $0x68] sm:$0xff]  }
 0x7ea   : > { %2833 = vmatpush1.bf16.msra.mxu1 %v8209_v37  ;;  %2886 = vmatpush1.bf16.msra.mxu0 %v8212_v38  ;;  %v8290_v37 = vld [vmem:[%s10735_s5 + $0x228] ss:$16 sps:$4 sm:$0xff]   ;;  %v8295_v38 = vld [vmem:[%s10735_s5 + $0x204] ss:$16 sps:$4 sm:$0xff]  }
 0x7eb   : > { %2834 = vmatprep.subr.bf16.mxu1 %v8217_v41  ;;  %2887 = vmatprep.subr.bf16.mxu0 %v8220_v42  ;;  %v8296_v41 = vld [vmem:[%s10735_s5 + $0x208] ss:$16 sps:$4 sm:$0xff]   ;;  %v8300_v43 = vld [vmem:[%s10731_s1 + $0x30] sm:$0xff]  }
 0x7ec   : > { %v8299_v42 = vld [vmem:[%s10731_s1 + $0x38] sm:$0xff]  }
 0x7ed   : > { %2607 = vmatmul.mubr.bf16.gmra.mxu1 %v2368_v49  ;;  %2660 = vmatmul.mubr.bf16.gmra.mxu0 %v2368_v49  ;;  %v8308_v49 = vld [vmem:[%s10731_s1 + $0x10] sm:$0xff]  }
 0x7ee   : > { %2835 = vmatpush1.bf16.msra.mxu1 %v8215_v44  ;;  %2888 = vmatpush1.bf16.msra.mxu0 %v8218_v45  ;;  %v8303_v44 = vld [vmem:[%s10731_s1 + $0x70] sm:$0xff]   ;;  %v8304_v45 = vld [vmem:[%s10731_s1 + $0x20] sm:$0xff]  }
 0x7ef   : > { %2836 = vmatprep.subr.bf16.mxu1 %v8223_v47  ;;  %2889 = vmatprep.subr.bf16.mxu0 %v8226_v48  ;;  %v8306_v47 = vld [vmem:[%s10731_s1 + $0x18] sm:$0xff]   ;;  %v8307_v48 = vld [vmem:[%s10731_s1 + $0x60] sm:$0xff]  }
 0x7f0   : > { %2862 = vmatprep.mubr.bf16.mxu1 %v8678_v27  ;;  %2915 = vmatprep.mubr.bf16.mxu0 %v8678_v27 }
 0x7f2   : > { %2837 = vmatpush1.bf16.msra.mxu1 %v8221_v50  ;;  %2890 = vmatpush1.bf16.msra.mxu0 %v8224_v51  ;;  %v8309_v50 = vld [vmem:[%s10731_s1 + $0x58] sm:$0xff]   ;;  %v8310_v51 = vld [vmem:[%s10731_s1 + $0x8] sm:$0xff]  }
 0x7f3   : > { %2838 = vmatprep.subr.bf16.mxu1 %v8229_v52  ;;  %2891 = vmatprep.subr.bf16.mxu0 %v8232_v53  ;;  %v8311_v52 = vld [vmem:[%s10731_s1 + $0x50] sm:$0xff]   ;;  %v8312_v53 = vld [vmem:[%s10731_s1] sm:$0xff]  }
 0x7f6   : > { %2839 = vmatpush1.bf16.msra.mxu1 %v8227_v54  ;;  %2892 = vmatpush1.bf16.msra.mxu0 %v8230_v55  ;;  %v8313_v54 = vld [vmem:[%s10731_s1 + $0x48] sm:$0xff]  }
 0x7f7   : > { %2840 = vmatprep.subr.bf16.mxu1 %v8235_v57  ;;  %2893 = vmatprep.subr.bf16.mxu0 %v8238_v58  ;;  %v8314_v58 = vld [vmem:[%s10731_s1 + $0x40] sm:$0xff]  }
 0x7fa   : > { %2841 = vmatpush1.bf16.msra.mxu1 %v8233_v59  ;;  %2894 = vmatpush1.bf16.msra.mxu0 %v8236_v30 }
 0x7fb   : > { %2842 = vmatprep.subr.bf16.mxu1 %v8241_v60  ;;  %2895 = vmatprep.subr.bf16.mxu0 %v8244_v34  ;;  %v9714_v60 = vld [vmem:[%s10731_s1 + $0xb8] sm:$0xff]  }
 0x7fe   : > { %2843 = vmatpush1.bf16.msra.mxu1 %v8239_v61  ;;  %2896 = vmatpush1.bf16.msra.mxu0 %v8242_v22 }
 0x7ff   : > { %2844 = vmatprep.subr.bf16.mxu1 %v8247_v62  ;;  %2897 = vmatprep.subr.bf16.mxu0 %v8250_v35 }
 0x802   : > { %2845 = vmatpush1.bf16.msra.mxu1 %v8245_v63  ;;  %2898 = vmatpush1.bf16.msra.mxu0 %v8248_v0 }
 0x803   : > { %3141 = vmatprep.subr.bf16.mxu1 %v8253_v1  ;;  %3194 = vmatprep.subr.bf16.mxu0 %v8256_v2 }
 0x805   : > { %2863 = vmatmul.mubr.bf16.vlgmr.msra.gmra.mxu1 %v9438_v4  ;;  %2916 = vmatmul.mubr.bf16.vlgmr.msra.gmra.mxu0 %v9438_v4  ;;  %v8268_v4 = vld [vmem:[%s10735_s5 + $0x2ac] ss:$16 sps:$4 sm:$0xff]  }
 0x806   : > { %3142 = vmatpush1.bf16.msra.mxu1 %v8251_v3  ;;  %3195 = vmatpush1.bf16.msra.mxu0 %v8254_v5 }
 0x807   : > { %3143 = vmatprep.subr.bf16.mxu1 %v8259_v6  ;;  %3196 = vmatprep.subr.bf16.mxu0 %v8262_v7 }
 0x808   : > { %2872 = vmatprep.mubr.bf16.mxu1 %v8678_v27  ;;  %2925 = vmatprep.mubr.bf16.mxu0 %v8678_v27 }
 0x80a   : > { %3144 = vmatpush1.bf16.msra.mxu1 %v8257_v8  ;;  %3197 = vmatpush1.bf16.msra.mxu0 %v8260_v10 }
 0x80b   : > { %3145 = vmatprep.subr.bf16.mxu1 %v8265_v11  ;;  %3198 = vmatprep.subr.bf16.mxu0 %v8268_v4 }
 0x80d   : > { %2873 = vmatmul.mubr.bf16.gmra.mxu1 %v9440_v9  ;;  %2926 = vmatmul.mubr.bf16.gmra.mxu0 %v9440_v9  ;;  %v8280_v9 = vld [vmem:[%s10735_s5 + $0x26c] ss:$16 sps:$4 sm:$0xff]  }
 0x80e   : > { %3146 = vmatpush1.bf16.msra.mxu1 %v8263_v12  ;;  %3199 = vmatpush1.bf16.msra.mxu0 %v8266_v14 }
 0x80f   : > { %3147 = vmatprep.subr.bf16.mxu1 %v8271_v16  ;;  %3200 = vmatprep.subr.bf16.mxu0 %v8274_v17 }
 0x810   : > { %3173 = vmatprep.mubr.bf16.mxu1 %v8678_v27  ;;  %3226 = vmatprep.mubr.bf16.mxu0 %v8678_v27 }
 0x812   : > { %3148 = vmatpush1.bf16.msra.mxu1 %v8269_v19  ;;  %3201 = vmatpush1.bf16.msra.mxu0 %v8272_v20 }
 0x813   : > { %3149 = vmatprep.subr.bf16.mxu1 %v8277_v21  ;;  %3202 = vmatprep.subr.bf16.mxu0 %v8280_v9 }
 0x816   : > { %3150 = vmatpush1.bf16.msra.mxu1 %v8275_v24  ;;  %3203 = vmatpush1.bf16.msra.mxu0 %v8278_v33 }
 0x817   : > { %3151 = vmatprep.subr.bf16.mxu1 %v8283_v26  ;;  %3204 = vmatprep.subr.bf16.mxu0 %v8286_v18 }
 0x81a   : > { %3152 = vmatpush1.bf16.msra.mxu1 %v8281_v23  ;;  %3205 = vmatpush1.bf16.msra.mxu0 %v8284_v29  ;;  %v3263_v29 = vld [vmem:[%s8735_s12] sm:$0xff] }
 0x81b   : > { %3153 = vmatprep.subr.bf16.mxu1 %v8289_v25  ;;  %3206 = vmatprep.subr.bf16.mxu0 %v8292_v28 }
 0x81e   : > { %3154 = vmatpush1.bf16.msra.mxu1 %v8287_v36  ;;  %3207 = vmatpush1.bf16.msra.mxu0 %v8290_v37 }
 0x81f   : > { %3155 = vmatprep.subr.bf16.mxu1 %v8295_v38  ;;  %3208 = vmatprep.subr.bf16.mxu0 %v8298_v39  ;;  %v3264_v38 = vld [vmem:[%s8735_s12 + $0x8] sm:$0xff] }
 0x822   : > { %3156 = vmatpush1.bf16.msra.mxu1 %v8293_v40  ;;  %3209 = vmatpush1.bf16.msra.mxu0 %v8296_v41 }
 0x823   : > { %7791 = vmatprep.subr.bf16.mxu0 %v8299_v42 }
 0x825   : > { %3174 = vmatmul.mubr.bf16.vlgmr.msra.gmra.mxu1 %v9448_v32  ;;  %3227 = vmatmul.mubr.bf16.vlgmr.msra.gmra.mxu0 %v9448_v32  ;;  %v8301_v32 = vld [vmem:[%s10731_s1 + $0x78] sm:$0xff]  }
 0x826   : > { %3183 = vmatprep.mubr.bf16.mxu1 %v8678_v27  ;;  %3236 = vmatprep.mubr.bf16.mxu0 %v8678_v27 }
 0x827   : > { %7792 = vmatpush3.bf16.msra.mxu0 %v8299_v42  ;;  %7771 = vmatprep.subr.bf16.mxu1 %v8301_v32 }
 0x828   : > { %7793 = vmatprep.subr.bf16.mxu0 %v8300_v43  ;;  %7772 = vmatpush3.bf16.msra.mxu1 %v8301_v32 }
 0x829   : > { %7773 = vmatprep.subr.bf16.mxu1 %v8303_v44 }
 0x82b   : > { %7794 = vmatpush3.bf16.msra.mxu0 %v8300_v43 }
 0x82c   : > { %7774 = vmatpush3.bf16.msra.mxu1 %v8303_v44 }
 0x82d   : > { %3184 = vmatmul.mubr.bf16.gmra.mxu1 %v9457_v31  ;;  %3237 = vmatmul.mubr.bf16.gmra.mxu0 %v9457_v31  ;;  %v8302_v31 = vld [vmem:[%s10731_s1 + $0x28] sm:$0xff]  }
 0x82e   : > { %7795 = vmatprep.subr.bf16.mxu0 %v8302_v31  ;;  %7775 = vmatprep.subr.bf16.mxu1 %v8305_v46 }
 0x82f   : > { %7796 = vmatpush3.bf16.msra.mxu0 %v8302_v31 }
 0x830   : > { %7797 = vmatprep.subr.bf16.mxu0 %v8304_v45  ;;  %7776 = vmatpush3.bf16.msra.mxu1 %v8305_v46 }
 0x831   : > { %7777 = vmatprep.subr.bf16.mxu1 %v8307_v48 }
 0x833   : > { %7798 = vmatpush3.bf16.msra.mxu0 %v8304_v45 }
 0x834   : > { %7799 = vmatprep.subr.bf16.mxu0 %v8306_v47  ;;  %7778 = vmatpush3.bf16.msra.mxu1 %v8307_v48  ;;  %v3267_v48 = vld [vmem:[%s8735_s12 + $0x20] sm:$0xff] }
 0x835   : > { %7779 = vmatprep.subr.bf16.mxu1 %v8309_v50 }
 0x837   : > { %7800 = vmatpush3.bf16.msra.mxu0 %v8306_v47 }
 0x838   : > { %7801 = vmatprep.subr.bf16.mxu0 %v8308_v49  ;;  %7780 = vmatpush3.bf16.msra.mxu1 %v8309_v50 }
 0x839   : > { %7781 = vmatprep.subr.bf16.mxu1 %v8311_v52 }
 0x83b   : > { %7802 = vmatpush3.bf16.msra.mxu0 %v8308_v49  ;;  %v3266_v49 = vld [vmem:[%s8735_s12 + $0x18] sm:$0xff] }
 0x83c   : > { %7803 = vmatprep.subr.bf16.mxu0 %v8310_v51  ;;  %7782 = vmatpush3.bf16.msra.mxu1 %v8311_v52  ;;  %v3268_v52 = vld [vmem:[%s8735_s12 + $0x28] sm:$0xff] }
 0x83d   : > { %7783 = vmatprep.subr.bf16.mxu1 %v8313_v54 }
 0x83f   : > { %7804 = vmatpush3.bf16.msra.mxu0 %v8310_v51 }
 0x840   : > { %7805 = vmatprep.subr.bf16.mxu0 %v8312_v53  ;;  %7784 = vmatpush3.bf16.msra.mxu1 %v8313_v54 }
 0x841   : > { %7785 = vmatprep.subr.bf16.mxu1 %v8314_v58 }
 0x843   : > { %7806 = vmatpush3.bf16.msra.mxu0 %v8312_v53 }
 0x844   : > { %7831 = vmatprep.subr.mxu0 %v8676_v56  ;;  %7786 = vmatpush3.bf16.msra.mxu1 %v8314_v58 }
 0x845   : > { %7811 = vmatprep.subr.bf16.mxu1 %v9714_v60 }
 0x8a5   : > { %v2598_v55 = vpop.f32.mrf.mxu1  ;;  %v9705_v57 = vpop.f32.mrf.mxu0 }
 0x8a7   : > { %v2600_v59 = vpop.f32.mrf.mxu1  ;;  %v2653_v30 = vpop.f32.mrf.mxu0 }
 0x8a9   : > { %v2602_v34 = vpop.f32.mrf.mxu1  ;;  %v9716_v61 = vpop.f32.mrf.mxu0 }
 0x8ab   : > { %v2604_v22 = vpop.f32.mrf.mxu1  ;;  %v2657_v62 = vpop.f32.mrf.mxu0 }
 0x8ad   : > { %v2608_v35 = vpop.f32.mrf.mxu1  ;;  %v9719_v63 = vpop.f32.mrf.mxu0 }
 0x8af   : > { %v2610_v0 = vpop.f32.mrf.mxu1  ;;  %v2663_v1 = vpop.f32.mrf.mxu0 }
 0x8b1   : > { %v9721_v2 = vpop.f32.mrf.mxu1  ;;  %v9723_v3 = vpop.f32.mrf.mxu0 }
 0x8b3   : > { %v9725_v5 = vpop.f32.mrf.mxu1  ;;  %v9727_v6 = vpop.f32.mrf.mxu0 }
 0x8c5   : > { %v2864_v7 = vpop.f32.mrf.mxu1  ;;  %v2917_v8 = vpop.f32.mrf.mxu0 }
 0x8c6   : > { %v2865_v18 = vadd.f32 %v2864_v7, %v2598_v55 }
 0x8c7   : > { %v2866_v10 = vpop.f32.mrf.mxu1  ;;  %v2919_v11 = vpop.f32.mrf.mxu0 }
 0x8c8   : > { %v2867_v28 = vadd.f32 %v2866_v10, %v2600_v59  ;;  %v2920_v40 = vadd.f32 %v2919_v11, %v2653_v30  ;;  %v2918_v59 = vadd.f32 %v2917_v8, %v9705_v57  ;;  %v3271_v10 = vld [vmem:[%s8735_s12 + $0x40] sm:$0xff]  ;;  %v3272_v57 = vld [vmem:[%s8735_s12 + $0x48] sm:$0xff] }
 0x8c9   : > { %v2868_v4 = vpop.f32.mrf.mxu1  ;;  %v9729_v12 = vpop.f32.mrf.mxu0 }
 0x8ca   : > { %v2869_v43 = vadd.f32 %v2868_v4, %v2602_v34 }
 0x8cb   : > { %v2870_v14 = vpop.f32.mrf.mxu1  ;;  %v2923_v16 = vpop.f32.mrf.mxu0 }
 0x8cc   : > { %v2871_v44 = vadd.f32 %v2870_v14, %v2604_v22  ;;  %v2924_v30 = vadd.f32 %v2923_v16, %v2657_v62 }
 0x8cd   : > { %v2874_v17 = vpop.f32.mrf.mxu1  ;;  %v9731_v19 = vpop.f32.mrf.mxu0 }
 0x8ce   : > { %v2875_v54 = vadd.f32 %v2874_v17, %v2608_v35 }
 0x8cf   : > { %v2876_v20 = vpop.f32.mrf.mxu1  ;;  %v2929_v21 = vpop.f32.mrf.mxu0 }
 0x8d0   : > { %v2877_v34 = vadd.f32 %v2876_v20, %v2610_v0  ;;  %v3265_v0 = vld [vmem:[%s8735_s12 + $0x10] sm:$0xff]  ;;  %v3270_v20 = vld [vmem:[%s8735_s12 + $0x38] sm:$0xff] }
 0x8d1   : > { %v2878_v9 = vpop.f32.mrf.mxu1  ;;  %v9733_v24 = vpop.f32.mrf.mxu0 }
 0x8d2   : > { %v2879_v62 = vadd.f32 %v2878_v9, %v9721_v2  ;;  %v3274_v9 = vld [vmem:[%s8735_s12 + $0x58] sm:$0xff] }
 0x8d3   : > { %v2880_v33 = vpop.f32.mrf.mxu1  ;;  %v9735_v26 = vpop.f32.mrf.mxu0 }
 0x8e5   : > { %v3175_v23 = vpop.f32.mrf.mxu1  ;;  %v3228_v25 = vpop.f32.mrf.mxu0 }
 0x8e6   : > { %v3247_v36 = vadd.f32 %v3175_v23, %v2865_v18  ;;  %v2930_v23 = vadd.f32 %v2929_v21, %v2663_v1  ;;  %v3249_v35 = vadd.f32 %v3228_v25, %v2918_v59  ;;  %v2881_v1 = vadd.f32 %v2880_v33, %v9725_v5  ;;  %v3276_v5 = vld [vmem:[%s8735_s12 + $0x68] sm:$0xff] }
 0x8e7   : > { %v3177_v37 = vpop.f32.mrf.mxu1  ;;  %v3230_v39 = vpop.f32.mrf.mxu0 }
 0x8e8   : > { %v3279_v41 = vadd.f32 %v3263_v29, %v3247_v36  ;;  %v3248_v42 = vadd.f32 %v3177_v37, %v2867_v28  ;;  %v3250_v47 = vadd.f32 %v3230_v39, %v2920_v40  ;;  %v3275_v39 = vld [vmem:[%s8735_s12 + $0x60] sm:$0xff] }
 0x8e9   : > { %v3179_v32 = vpop.f32.mrf.mxu1  ;;  %v9739_v31 = vpop.f32.mrf.mxu0 }
 0x8ea   : > { %v3295_v45 = vmul.f32 0.5, %v3279_v41  ;;  %v3280_v46 = vadd.f32 %v3264_v38, %v3248_v42  ;;  %v3251_v50 = vadd.f32 %v3179_v32, %v2869_v43  ;;  %v3282_v4 = vadd.f32 %v3266_v49, %v3250_v47 }
 0x8eb   : > { %v3181_v51 = vpop.f32.mrf.mxu1  ;;  %v3234_v53 = vpop.f32.mrf.mxu0  ;;  %v2922_v38 = vadd.f32 %v9729_v12, %v9716_v61  ;;  %v2934_v43 = vadd.f32 %v9735_v26, %v9727_v6  ;;  %v3281_v32 = vadd.f32 %v3265_v0, %v3249_v35  ;;  %v2928_v47 = vadd.f32 %v9731_v19, %v9719_v63 }
 0x8ec   : > { %8523 = vtanh.f32 %v3295_v45  ;;  %v3311_v55 = vmul.f32 0.5, %v3280_v46  ;;  %v3252_v58 = vadd.f32 %v3181_v51, %v2871_v44  ;;  %v3283_v22 = vadd.f32 %v3267_v48, %v3251_v50  ;;  %v3269_v50 = vld [vmem:[%s8735_s12 + $0x30] sm:$0xff] }
 0x8ed   : > { %v3185_v7 = vpop.f32.mrf.mxu1  ;;  %v3238_v11 = vpop.f32.mrf.mxu0  ;;  %v3254_v29 = vadd.f32 %v3234_v53, %v2924_v30  ;;  %v3253_v48 = vadd.f32 %v9739_v31, %v2922_v38  ;;  %v3278_v53 = vld [vmem:[%s8735_s12 + $0x78] sm:$0xff]  ;;  %v2932_v63 = vadd.f32 %v9733_v24, %v9723_v3 }
 0x8ee   : > { %8525 = vtanh.f32 %v3311_v55  ;;  %v3284_v14 = vadd.f32 %v3268_v52, %v3252_v58  ;;  %v3255_v18 = vadd.f32 %v3185_v7, %v2875_v54  ;;  %v3296_v17 = vmul.f32 0.5, %v3283_v22  ;;  %v3273_v55 = vld [vmem:[%s8735_s12 + $0x50] sm:$0xff] }
 0x8ef   : > { %v3187_v28 = vpop.f32.mrf.mxu1  ;;  %v3240_v8 = vpop.f32.mrf.mxu0  ;;  %v3286_v61 = vadd.f32 %v3270_v20, %v3254_v29  ;;  %v3257_v52 = vadd.f32 %v3238_v11, %v2928_v47  ;;  %v3327_v54 = vmul.f32 0.5, %v3281_v32  ;;  %v3285_v19 = vadd.f32 %v3269_v50, %v3253_v48  ;;  %v3350_v48 = vld [vmem:[#allocation3 + $0x10] sm:$0xff] }
 0x8f0   : > { %v3312_v16 = vmul.f32 0.5, %v3284_v14  ;;  %v3287_v36 = vadd.f32 %v3271_v10, %v3255_v18  ;;  %v3256_v37 = vadd.f32 %v3187_v28, %v2877_v34  ;;  %8527 = vtanh.f32 %v3296_v17  ;;  %v3347_v14 = vld [vmem:[#allocation3] sm:$0xff] }
 0x8f1   : > { %v3258_v21 = vadd.f32 %v3240_v8, %v2930_v23  ;;  %v3189_v25 = vpop.f32.mrf.mxu1  ;;  %v3242_v40 = vpop.f32.mrf.mxu0  ;;  %8529 = vtanh.f32 %v3282_v4  ;;  %v3289_v22 = vadd.f32 %v3273_v55, %v3257_v52  ;;  %v3277_v4 = vld [vmem:[%s8735_s12 + $0x70] sm:$0xff]  ;;  %v3328_v18 = vmul.f32 0.5, %v3285_v19 }
 0x8f2   : > { %v3297_v41 = vmul.f32 0.5, %v3287_v36  ;;  %v3288_v2 = vadd.f32 %v3272_v57, %v3256_v37  ;;  %v3259_v42 = vadd.f32 %v3189_v25, %v2879_v62  ;;  %8531 = vtanh.f32 %v3312_v16  ;;  %v3348_v36 = vld [vmem:[#allocation3 + $0x18] sm:$0xff] }
 0x8f3   : > { %v3191_v12 = vpop.f32.mrf.mxu1  ;;  %v3244_v33 = vpop.f32.mrf.mxu0  ;;  %v3290_v49 = vadd.f32 %v3274_v9, %v3258_v21  ;;  %v3261_v7 = vadd.f32 %v3242_v40, %v2932_v63  ;;  %v3329_v3 = vmul.f32 0.5, %v3289_v22 }
 0x8f4   : > { %8533 = vtanh.f32 %v3297_v41  ;;  %v3313_v44 = vmul.f32 0.5, %v3288_v2  ;;  %v3291_v45 = vadd.f32 %v3275_v39, %v3259_v42  ;;  %v3260_v46 = vadd.f32 %v3191_v12, %v2881_v1  ;;  %v3349_v42 = vld [vmem:[#allocation3 + $0x8] sm:$0xff] }
 0x8f5   : > { %v3262_v51 = vadd.f32 %v3244_v33, %v2934_v43  ;;  %v3293_v24 = vadd.f32 %v3277_v4, %v3261_v7 }
 0x8f6   : > { %8535 = vtanh.f32 %v3313_v44  ;;  %v3298_v6 = vmul.f32 0.5, %v3291_v45  ;;  %v3292_v26 = vadd.f32 %v3276_v5, %v3260_v46 }
 0x8f7   : > { %8537 = vtanh.f32 %v3286_v61  ;;  %v3294_v30 = vadd.f32 %v3278_v53, %v3262_v51  ;;  %v3330_v21 = vmul.f32 0.5, %v3293_v24 }
 0x8f8   : > { %8539 = vtanh.f32 %v3298_v6  ;;  %v3314_v58 = vmul.f32 0.5, %v3292_v26 }
 0x8f9   : > { %v8524_v59 = vpop.eup %8523  ;;  %8541 = vtanh.f32 %v3290_v49 }
 0x8fa   : > { %v3303_v31 = vadd.f32 1.0, %v8524_v59  ;;  %8543 = vtanh.f32 %v3314_v58 }
 0x8fb   : > { %v8526_v34 = vpop.eup %8525  ;;  %8545 = vtanh.f32 %v3327_v54 }
 0x8fc   : > { %v3307_v10 = vmul.f32 0.5, %v3303_v31  ;;  %v3319_v11 = vadd.f32 1.0, %v8526_v34  ;;  %8547 = vtanh.f32 %v3294_v30 }
 0x8fd   : > { %v8528_v23 = vpop.eup %8527  ;;  %8549 = vtanh.f32 %v3328_v18 }
 0x8fe   : > { %v3323_v35 = vmul.f32 0.5, %v3319_v11  ;;  %v8530_v17 = vpop.eup %8529  ;;  %v3304_v29 = vadd.f32 1.0, %v8528_v23  ;;  %8551 = vtanh.f32 %v3329_v3 }
 0x8ff   : > { %v8532_v28 = vpop.eup %8531  ;;  %v3355_v8 = vmul.f32 %v8530_v17, %v3307_v10 }
 0x900   : > { %v3351_v57 = vmul.f32 %v3347_v14, %v3323_v35  ;;  %v3308_v0 = vmul.f32 0.5, %v3304_v29  ;;  %v3320_v16 = vadd.f32 1.0, %v8532_v28 }
 0x901   : > { %v8534_v62 = vpop.eup %8533 }
 0x902   : > { %v3359_v20 = vadd.f32 %v3355_v8, %v3351_v57  ;;  %v3305_v37 = vadd.f32 1.0, %v8534_v62  ;;  %v3324_v1 = vmul.f32 0.5, %v3320_v16 }
 0x903   : > { %v8536_v38 = vpop.eup %8535 }
 0x904   : > { %v8538_v25 = vpop.eup %8537  ;;  %8553 = vtanh.f32 %v3359_v20  ;;  %3371 = vst [vmem:[#allocation3] sm:$0xff] %v3359_v20  ;;  %v3309_v39 = vmul.f32 0.5, %v3305_v37  ;;  %v3321_v40 = vadd.f32 1.0, %v8536_v38  ;;  %v3352_v2 = vmul.f32 %v3348_v36, %v3324_v1 }
 0x905   : > { %v8540_v41 = vpop.eup %8539  ;;  %v3356_v9 = vmul.f32 %v8538_v25, %v3308_v0  ;;  %8555 = vtanh.f32 %v3330_v21 }
 0x906   : > { %v8542_v43 = vpop.eup %8541  ;;  %v3325_v32 = vmul.f32 0.5, %v3321_v40  ;;  %v3306_v61 = vadd.f32 1.0, %v8540_v41  ;;  %v8627_v41 = vld [vmem:[%s10736_s6 + $0x78] sm:$0xff] }
 0x907   : > { %v8544_v12 = vpop.eup %8543  ;;  %v3360_v5 = vadd.f32 %v3356_v9, %v3352_v2  ;;  %v3357_v44 = vmul.f32 %v8542_v43, %v3309_v39 }
 0x908   : > { %v3353_v33 = vmul.f32 %v3349_v42, %v3325_v32  ;;  %v3310_v45 = vmul.f32 0.5, %v3306_v61  ;;  %v3322_v46 = vadd.f32 1.0, %v8544_v12  ;;  %v8546_v47 = vpop.eup %8545  ;;  %v8628_v32 = vld [vmem:[%s10736_s6 + $0x70] sm:$0xff] }
 0x909   : > { %8557 = vtanh.f32 %v3360_v5  ;;  %3372 = vst [vmem:[#allocation3 + $0x18] sm:$0xff] %v3360_v5  ;;  %v8548_v6 = vpop.eup %8547  ;;  %v3335_v26 = vadd.f32 1.0, %v8546_v47  ;;  %v8316_v5 = vld [vmem:[%s10731_s1 + $0xb0] sm:$0xff]   ;;  %v8317_v47 = vld [vmem:[%s10731_s1 + $0xa8] sm:$0xff]  }
 0x90a   : > { %v3361_v49 = vadd.f32 %v3357_v44, %v3353_v33  ;;  %v3326_v50 = vmul.f32 0.5, %v3322_v46  ;;  %v3358_v52 = vmul.f32 %v8548_v6, %v3310_v45  ;;  %v8550_v53 = vpop.eup %8549  ;;  %v8629_v33 = vld [vmem:[%s10736_s6 + $0x68] sm:$0xff]  ;;  %v8630_v46 = vld [vmem:[%s10736_s6 + $0x60] sm:$0xff] }
 0x90b   : > { %v8552_v55 = vpop.eup %8551  ;;  %v3339_v58 = vmul.f32 0.5, %v3335_v26  ;;  %v3336_v63 = vadd.f32 1.0, %v8550_v53  ;;  %v8634_v6 = vld [vmem:[%s10736_s6 + $0x40] sm:$0xff]  ;;  %v8319_v26 = vld [vmem:[%s10731_s1 + $0x98] sm:$0xff]   ;;  %v8320_v53 = vld [vmem:[%s10731_s1 + $0x90] sm:$0xff]  }
 0x90c   : > { %8559 = vtanh.f32 %v3361_v49  ;;  %3373 = vst [vmem:[#allocation3 + $0x8] sm:$0xff] %v3361_v49  ;;  %v3354_v51 = vmul.f32 %v3350_v48, %v3326_v50  ;;  %v3337_v30 = vadd.f32 1.0, %v8552_v55  ;;  %v8631_v48 = vld [vmem:[%s10736_s6 + $0x58] sm:$0xff]  ;;  %v8318_v49 = vld [vmem:[%s10731_s1 + $0xa0] sm:$0xff]   ;;  %v8633_v50 = vld [vmem:[%s10736_s6 + $0x48] sm:$0xff] }
 0x90d   : > { %v3340_v34 = vmul.f32 0.5, %v3336_v63  ;;  %v8638_v55 = vld [vmem:[%s10736_s6 + $0x20] sm:$0xff]  ;;  %v8640_v63 = vld [vmem:[%s10736_s6 + $0x10] sm:$0xff] }
 0x90e   : > { %v3362_v54 = vadd.f32 %v3358_v52, %v3354_v51  ;;  %v3341_v10 = vmul.f32 0.5, %v3337_v30  ;;  %v8635_v51 = vld [vmem:[%s10736_s6 + $0x38] sm:$0xff]  ;;  %v8636_v52 = vld [vmem:[%s10736_s6 + $0x30] sm:$0xff]  ;;  %v8642_v30 = vld [vmem:[%s10736_s6] sm:$0xff] }
 0x910   : > { %8561 = vtanh.f32 %v3362_v54  ;;  %3374 = vst [vmem:[#allocation3 + $0x10] sm:$0xff] %v3362_v54  ;;  %v8637_v54 = vld [vmem:[%s10736_s6 + $0x28] sm:$0xff] }
 0x911   : > { %v8554_v59 = vpop.eup %8553 }
 0x912   : > { %v3367_v19 = vmul.f32 %v8554_v59, %v3339_v58  ;;  %v8556_v31 = vpop.eup %8555  ;;  %v8321_v58 = vld [vmem:[%s10731_s1 + $0x88] sm:$0xff]   ;;  %v8639_v59 = vld [vmem:[%s10736_s6 + $0x18] sm:$0xff] }
 0x913   : > { %v3338_v11 = vadd.f32 1.0, %v8556_v31  ;;  %v8641_v31 = vld [vmem:[%s10736_s6 + $0x8] sm:$0xff] }
 0x914   : > { %3375 = vst [vmem:[#allocation2 + $0x10] sm:$0xff] %v3367_v19  ;;  %3383 = vst [vmem:[%s8740_s15] sm:$0xff] %v3367_v19 }
 0x915   : > { %3379 = vst [vmem:[#allocation4 + $0x1] sm:$0xff] %v3367_v19  ;;  %v3342_v18 = vmul.f32 0.5, %v3338_v11  ;;  %v8322_v19 = vld [vmem:[%s10731_s1 + $0x80] sm:$0xff]  }
 0x916   : > { %v8558_v22 = vpop.eup %8557 }
 0x917   : > { %v3368_v7 = vmul.f32 %v8558_v22, %v3340_v34 }
 0x919   : > { %v8560_v4 = vpop.eup %8559  ;;  %3376 = vst [vmem:[#allocation2] sm:$0xff] %v3368_v7  ;;  %3384 = vst [vmem:[%s8740_s15 + $0x8] sm:$0xff] %v3368_v7 }
 0x91a   : > { %3380 = vst [vmem:[#allocation4 + $0x9] sm:$0xff] %v3368_v7  ;;  %v3369_v14 = vmul.f32 %v8560_v4, %v3341_v10 }
 0x91c   : > { %3377 = vst [vmem:[#allocation2 + $0x18] sm:$0xff] %v3369_v14  ;;  %3385 = vst [vmem:[%s8740_s15 + $0x10] sm:$0xff] %v3369_v14  ;;  %v3391_v17 = vld [vmem:[#allocation4] sm:$0xff] }
 0x91d   : > { %3381 = vst [vmem:[#allocation4 + $0x19] sm:$0xff] %v3369_v14  ;;  %v8562_v23 = vpop.eup %8561 }
 0x91e   : > { %v3370_v35 = vmul.f32 %v8562_v23, %v3342_v18 }
 0x920   : > { %3378 = vst [vmem:[#allocation2 + $0x8] sm:$0xff] %v3370_v35  ;;  %3386 = vst [vmem:[%s8740_s15 + $0x18] sm:$0xff] %v3370_v35 }
 0x921   : > { %3382 = vst [vmem:[#allocation4 + $0x21] sm:$0xff] %v3370_v35  ;;  %v3392_v29 = vld [vmem:[#allocation4 + $0x8] sm:$0xff]  ;;  %v3393_v3 = vld [vmem:[#allocation4 + $0x10] sm:$0x3] }
 0x922   : > { %v3397_v24 = vpack.c.bf16 %v3392_v29, %v3391_v17  ;;  %v3398_v28 = vpack.c.bf16 %v3393_v3, %v3393_v3 }
 0x924   : > { %7807 = vmatprep.mubr.bf16.mxu0 %v3397_v24  ;;  %v3420_v57 = vshll.u32 %v3397_v24, 16  ;;  %v3425_v8 = vshll.u32 %v3398_v28, 16  ;;  %v3418_v62 = vshrl.u32 %v3397_v24, 16  ;;  %v3394_v36 = vld [vmem:[#allocation4 + $0x18] sm:$0xff]  ;;  %v3657_v42 = vrot.slane %v3397_v24, 1 }
 0x925   : > { %v3658_v43 = vrot.slane %v3398_v28, 1 }
 0x926   : > { %v3422_v0 = vrot.slane %v3420_v57, 1  ;;  %v3427_v20 = vrot.slane %v3425_v8, 1 }
 0x927   : > { %v3659_v45 = vsel %vm637_vm3, %v3657_v42, %v3658_v43 }
 0x928   : > { %v3423_v16 = vor.u32 %v3422_v0, %v3418_v62  ;;  %v3395_v37 = vld [vmem:[#allocation4 + $0x20] sm:$0xff]  ;;  %v3396_v38 = vld [vmem:[#allocation4 + $0x28] sm:$0x3] }
 0x929   : > { %v9771_v1 = vpack.c.bf16 %v3395_v37, %v3394_v36  ;;  %v9773_v21 = vpack.c.bf16 %v3396_v38, %v3396_v38 }
 0x92a   : > { %v3428_v25 = vsel %vm395_vm2, %v3423_v16, %v3427_v20 }
 0x92b   : > { %7787 = vmatprep.mubr.bf16.mxu1 %v3428_v25  ;;  %7808 = vmatmul.mubr.bf16.vlgmr.msra.gmra.mxu0 %v9771_v1  ;;  %v3432_v39 = vshll.u32 %v9771_v1, 16  ;;  %v3437_v40 = vshll.u32 %v9773_v21, 16  ;;  %v3430_v2 = vshrl.u32 %v9771_v1, 16  ;;  %v3660_v34 = vrot.slane %v9771_v1, 1 }
 0x92c   : > { %7832 = vmatpush3.msra.mxu0 %v8627_v41  ;;  %7863 = vmatprep.mubr.msk.f32.mxu0 %vm8677_vm4, %v8676_v56  ;;  %v3661_v22 = vrot.slane %v9773_v21, 1 }
 0x92d   : > { %v3434_v9 = vrot.slane %v3432_v39, 1  ;;  %7833 = vmatprep.subr.mxu0 %v8676_v56  ;;  %v3439_v12 = vrot.slane %v3437_v40, 1 }
 0x92e   : > { %7834 = vmatpush3.msra.mxu0 %v8628_v32  ;;  %v3662_v7 = vsel %vm637_vm3, %v3660_v34, %v3661_v22  ;;  %v8337_v34 = vld [vmem:[%s10732_s2 + $0x48] sm:$0xff]   ;;  %v8338_v22 = vld [vmem:[%s10732_s2 + $0x40] sm:$0xff]  }
 0x92f   : > { %v3435_v61 = vor.u32 %v3434_v9, %v3430_v2  ;;  %7835 = vmatprep.subr.mxu0 %v8676_v56 }
 0x930   : > { %7836 = vmatpush3.msra.mxu0 %v8629_v33 }
 0x931   : > { %v3440_v44 = vsel %vm395_vm2, %v3435_v61, %v3439_v12  ;;  %7837 = vmatprep.subr.mxu0 %v8676_v56 }
 0x932   : > { %7788 = vmatmul.mubr.bf16.vlgmr.msra.gmra.mxu1 %v3440_v44  ;;  %7838 = vmatpush3.msra.mxu0 %v8630_v46 }
 0x933   : > { %7812 = vmatpush3.bf16.msra.mxu1 %v9714_v60  ;;  %7827 = vmatprep.mubr.bf16.mxu1 %v3659_v45  ;;  %v8632_v60 = vld [vmem:[%s10736_s6 + $0x50] sm:$0xff] }
 0x934   : > { %7813 = vmatprep.subr.bf16.mxu1 %v8316_v5  ;;  %7839 = vmatprep.subr.mxu0 %v8676_v56 }
 0x935   : > { %7840 = vmatpush3.msra.mxu0 %v8631_v48 }
 0x936   : > { %7841 = vmatprep.subr.mxu0 %v8676_v56 }
 0x937   : > { %7814 = vmatpush3.bf16.msra.mxu1 %v8316_v5  ;;  %7842 = vmatpush3.msra.mxu0 %v8632_v60 }
 0x938   : > { %7815 = vmatprep.subr.bf16.mxu1 %v8317_v47  ;;  %7843 = vmatprep.subr.mxu0 %v8676_v56 }
 0x939   : > { %7844 = vmatpush3.msra.mxu0 %v8633_v50  ;;  %v8323_v50 = vld [vmem:[%s10732_s2 + $0x38] sm:$0xff]  }
 0x93a   : > { %7845 = vmatprep.subr.mxu0 %v8676_v56 }
 0x93b   : > { %7816 = vmatpush3.bf16.msra.mxu1 %v8317_v47  ;;  %7846 = vmatpush3.msra.mxu0 %v8634_v6  ;;  %v8324_v6 = vld [vmem:[%s10732_s2 + $0x30] sm:$0xff]  }
 0x93c   : > { %7817 = vmatprep.subr.bf16.mxu1 %v8318_v49  ;;  %7847 = vmatprep.subr.mxu0 %v8676_v56 }
 0x93d   : > { %7848 = vmatpush3.msra.mxu0 %v8635_v51  ;;  %v8326_v51 = vld [vmem:[%s10732_s2 + $0x28] sm:$0xff]  }
 0x93e   : > { %7849 = vmatprep.subr.mxu0 %v8676_v56 }
 0x93f   : > { %7818 = vmatpush3.bf16.msra.mxu1 %v8318_v49  ;;  %7850 = vmatpush3.msra.mxu0 %v8636_v52  ;;  %v8327_v52 = vld [vmem:[%s10732_s2 + $0x70] sm:$0xff]  }
 0x940   : > { %7819 = vmatprep.subr.bf16.mxu1 %v8319_v26  ;;  %7851 = vmatprep.subr.mxu0 %v8676_v56 }
 0x941   : > { %7852 = vmatpush3.msra.mxu0 %v8637_v54  ;;  %v8329_v54 = vld [vmem:[%s10732_s2 + $0x68] sm:$0xff]  }
 0x942   : > { %7853 = vmatprep.subr.mxu0 %v8676_v56 }
 0x943   : > { %7820 = vmatpush3.bf16.msra.mxu1 %v8319_v26  ;;  %7854 = vmatpush3.msra.mxu0 %v8638_v55  ;;  %v8325_v26 = vld [vmem:[%s10732_s2 + $0x78] sm:$0xff]  }
 0x944   : > { %7821 = vmatprep.subr.bf16.mxu1 %v8320_v53  ;;  %7855 = vmatprep.subr.mxu0 %v8676_v56  ;;  %v8330_v55 = vld [vmem:[%s10732_s2 + $0x18] sm:$0xff]  }
 0x945   : > { %7856 = vmatpush3.msra.mxu0 %v8639_v59  ;;  %v8332_v59 = vld [vmem:[%s10732_s2 + $0x10] sm:$0xff]  }
 0x946   : > { %7857 = vmatprep.subr.mxu0 %v8676_v56 }
 0x947   : > { %7822 = vmatpush3.bf16.msra.mxu1 %v8320_v53  ;;  %7858 = vmatpush3.msra.mxu0 %v8640_v63  ;;  %v8328_v53 = vld [vmem:[%s10732_s2 + $0x20] sm:$0xff]   ;;  %v8333_v63 = vld [vmem:[%s10732_s2 + $0x58] sm:$0xff]  }
 0x948   : > { %7823 = vmatprep.subr.bf16.mxu1 %v8321_v58  ;;  %7859 = vmatprep.subr.mxu0 %v8676_v56 }
 0x949   : > { %7860 = vmatpush3.msra.mxu0 %v8641_v31  ;;  %v8335_v31 = vld [vmem:[%s10732_s2 + $0x50] sm:$0xff]  }
 0x94a   : > { %7861 = vmatprep.subr.mxu0 %v8676_v56 }
 0x94b   : > { %7824 = vmatpush3.bf16.msra.mxu1 %v8321_v58  ;;  %7862 = vmatpush3.msra.mxu0 %v8642_v30  ;;  %v8331_v58 = vld [vmem:[%s10732_s2 + $0x60] sm:$0xff]  }
 0x94c   : > { %7825 = vmatprep.subr.bf16.mxu1 %v8322_v19  ;;  %7886 = vmatprep.subr.bf16.mxu0 %v8323_v50  ;;  %v8336_v30 = vld [vmem:[%s10732_s2] sm:$0xff]  }
 0x94f   : > { %7826 = vmatpush3.bf16.msra.mxu1 %v8322_v19  ;;  %v8334_v19 = vld [vmem:[%s10732_s2 + $0x8] sm:$0xff]  }
 0x950   : > { %7866 = vmatprep.subr.bf16.mxu1 %v8325_v26 }
 0x952   : > { %7828 = vmatmul.mubr.bf16.vlgmr.msra.gmra.mxu1 %v3662_v7  ;;  %v9945_v7 = vld [vmem:[%s10732_s2 + $0xb8] sm:$0xff]  }
 0x953   : > { %7867 = vmatpush3.bf16.msra.mxu1 %v8325_v26 }
 0x954   : > { %7868 = vmatprep.subr.bf16.mxu1 %v8327_v52 }
 0x957   : > { %7869 = vmatpush3.bf16.msra.mxu1 %v8327_v52 }
 0x958   : > { %7870 = vmatprep.subr.bf16.mxu1 %v8329_v54 }
 0x95b   : > { %7871 = vmatpush3.bf16.msra.mxu1 %v8329_v54  ;;  %v9985_v54 = vld [vmem:[%s10737_s7 + $0x28] sm:$0xff] }
 0x95c   : > { %7872 = vmatprep.subr.bf16.mxu1 %v8331_v58 }
 0x95f   : > { %7873 = vmatpush3.bf16.msra.mxu1 %v8331_v58 }
 0x960   : > { %7874 = vmatprep.subr.bf16.mxu1 %v8333_v63 }
 0x963   : > { %7875 = vmatpush3.bf16.msra.mxu1 %v8333_v63  ;;  %v8341_v63 = vld [vmem:[%s10732_s2 + $0xa8] sm:$0xff]  }
 0x964   : > { %7876 = vmatprep.subr.bf16.mxu1 %v8335_v31 }
 0x967   : > { %7877 = vmatpush3.bf16.msra.mxu1 %v8335_v31  ;;  %v10012_v31 = vld [vmem:[%s10737_s7 + $0x10] sm:$0xff] }
 0x968   : > { %7878 = vmatprep.subr.bf16.mxu1 %v8337_v34 }
 0x96b   : > { %7879 = vmatpush3.bf16.msra.mxu1 %v8337_v34  ;;  %v10022_v34 = vld [vmem:[%s10737_s7 + $0x8] sm:$0xff] }
 0x96c   : > { %7880 = vmatprep.subr.bf16.mxu1 %v8338_v22 }
 0x96f   : > { %7881 = vmatpush3.bf16.msra.mxu1 %v8338_v22  ;;  %v10029_v22 = vld [vmem:[%s10737_s7] sm:$0xff] }
 0x970   : > { %7906 = vmatprep.subr.bf16.mxu1 %v9945_v7 }
 0x9eb   : > { %v7809_v4 = vpop.f32.mrf.mxu0 }
 0x9ed   : > { %v3638_v18 = vpop.f32.mrf.mxu0 }
 0x9ef   : > { %v7810_v35 = vpop.f32.mrf.mxu0 }
 0x9f1   : > { %v3641_v24 = vpop.f32.mrf.mxu0 }
 0x9f2   : > { %v7789_v10 = vpop.f32.mrf.mxu1 }
 0x9f3   : > { %v3647_v57 = vadd.f32 %v7809_v4, %v7789_v10 }
 0x9f4   : > { %v3541_v11 = vpop.f32.mrf.mxu1 }
 0x9f5   : > { %v3639_v3 = vadd.f32 %v3638_v18, %v3541_v11 }
 0x9f6   : > { %v7790_v14 = vpop.f32.mrf.mxu1 }
 0x9f7   : > { %v3650_v16 = vadd.f32 %v7810_v35, %v7790_v14 }
 0x9f8   : > { %v3544_v23 = vpop.f32.mrf.mxu1 }
 0x9f9   : > { %v3642_v8 = vadd.f32 %v3641_v24, %v3544_v23 }
 0xa12   : > { %v7829_v17 = vpop.f32.mrf.mxu1 }
 0xa13   : > { %v9874_v20 = vadd.f32 %v7829_v17, %v3647_v57 }
 0xa14   : > { %v3763_v29 = vpop.f32.mrf.mxu1 }
 0xa15   : > { %v9872_v62 = vadd.f32 %v3763_v29, %v3639_v3  ;;  %v3793_v25 = vmul.f32 %v9874_v20, %v9874_v20 }
 0xa16   : > { %v7830_v28 = vpop.f32.mrf.mxu1 }
 0xa17   : > { %v3791_v37 = vmul.f32 %v9872_v62, %v9872_v62  ;;  %v9880_v38 = vadd.f32 %v7830_v28, %v3650_v16 }
 0xa18   : > { %v3766_v0 = vpop.f32.mrf.mxu1 }
 0xa19   : > { %v9876_v36 = vadd.f32 %v3766_v0, %v3642_v8  ;;  %v3794_v41 = vmul.f32 %v9880_v38, %v9880_v38 }
 0xa1b   : > { %v3782_v1 = vadd.f32 %v9876_v36, %v9872_v62  ;;  %v3792_v21 = vmul.f32 %v9876_v36, %v9876_v36 }
 0xa1d   : > { %v3783_v39 = vadd.f32 %v3782_v1, %v9874_v20  ;;  %v3795_v40 = vadd.f32 %v3792_v21, %v3791_v37 }
 0xa1f   : > { %v3784_v2 = vadd.f32 %v3783_v39, %v9880_v38  ;;  %v3796_v9 = vadd.f32 %v3795_v40, %v3793_v25 }
 0xa21   : > { %v3785_v42 = vrot.slane %v3784_v2, 4  ;;  %v3797_v43 = vadd.f32 %v3796_v9, %v3794_v41 }
 0xa23   : > { %v3786_v32 = vadd.f32 %v3785_v42, %v3784_v2  ;;  %v3798_v61 = vrot.slane %v3797_v43, 4 }
 0xa25   : > { %v3787_v12 = vrot.slane %v3786_v32, 2  ;;  %v3799_v5 = vadd.f32 %v3798_v61, %v3797_v43 }
 0xa27   : > { %v3788_v33 = vadd.f32 %v3787_v12, %v3786_v32  ;;  %v3800_v44 = vrot.slane %v3799_v5, 2 }
 0xa29   : > { %v3789_v45 = vrot.slane %v3788_v33, 1  ;;  %v3801_v46 = vadd.f32 %v3800_v44, %v3799_v5 }
 0xa2b   : > { %v3802_v47 = vrot.slane %v3801_v46, 1  ;;  %v3790_v48 = vadd.f32 %v3789_v45, %v3788_v33  ;;  %v9964_v45 = vld [vmem:[%s10737_s7 + $0x38] sm:$0xff] }
 0xa2d   : > { %v3803_v60 = vadd.f32 %v3802_v47, %v3801_v46 }
 0xa2f   : > { %v3804_v49 = vsel %vm786_vm5, %v3790_v48, %v3803_v60 }
 0xa30   : > { %7864 = vmatmul.mubr.f32.vlgmr.msra.gmra.mxu0 %v3804_v49 }
 0xa31   : > { %7887 = vmatpush3.bf16.msra.mxu0 %v8323_v50 }
 0xa32   : > { %7888 = vmatprep.subr.bf16.mxu0 %v8324_v6 }
 0xa35   : > { %7889 = vmatpush3.bf16.msra.mxu0 %v8324_v6  ;;  %v9974_v6 = vld [vmem:[%s10737_s7 + $0x30] sm:$0xff] }
 0xa36   : > { %7890 = vmatprep.subr.bf16.mxu0 %v8326_v51 }
 0xa39   : > { %7891 = vmatpush3.bf16.msra.mxu0 %v8326_v51 }
 0xa3a   : > { %7892 = vmatprep.subr.bf16.mxu0 %v8328_v53 }
 0xa3d   : > { %7893 = vmatpush3.bf16.msra.mxu0 %v8328_v53  ;;  %v8340_v53 = vld [vmem:[%s10732_s2 + $0xb0] sm:$0xff]  }
 0xa3e   : > { %7894 = vmatprep.subr.bf16.mxu0 %v8330_v55 }
 0xa41   : > { %7895 = vmatpush3.bf16.msra.mxu0 %v8330_v55 }
 0xa42   : > { %7896 = vmatprep.subr.bf16.mxu0 %v8332_v59 }
 0xa45   : > { %7897 = vmatpush3.bf16.msra.mxu0 %v8332_v59  ;;  %v9994_v59 = vld [vmem:[%s10737_s7 + $0x20] sm:$0xff] }
 0xa46   : > { %7898 = vmatprep.subr.bf16.mxu0 %v8334_v19 }
 0xa49   : > { %7899 = vmatpush3.bf16.msra.mxu0 %v8334_v19  ;;  %v10005_v19 = vld [vmem:[%s10737_s7 + $0x18] sm:$0xff] }
 0xa4a   : > { %7900 = vmatprep.subr.bf16.mxu0 %v8336_v30 }
 0xa4d   : > { %7901 = vmatpush3.bf16.msra.mxu0 %v8336_v30  ;;  %v8342_v30 = vld [vmem:[%s10732_s2 + $0xa0] sm:$0xff]  }
 0xa4e   : > { %7926 = vmatprep.subr.mxu0 %v8676_v56 }
 0xaf0   : > { %v3871_v10 = vpop.f32.mrf.mxu0 }
 0xaf1   : > { %v3875_v11 = vmul.f32 %v3871_v10, %v3871_v10  ;;  %v3883_v35 = vrot.slane %v3871_v10, %v8976_v13 }
 0xaf2   : > { %v7865_v4 = vpop.f32.mrf.mxu0 }
 0xaf3   : > { %v3877_v14 = vrot.slane %v3875_v11, 7  ;;  %v3884_v29 = vsub.f32 %v9872_v62, %v3883_v35  ;;  %v3885_v3 = vsub.f32 %v9876_v36, %v3883_v35  ;;  %v3886_v24 = vsub.f32 %v9874_v20, %v3883_v35  ;;  %v8345_v11 = vld [vmem:[%s10732_s2 + $0x88] sm:$0xff]   ;;  %v8346_v4 = vld [vmem:[%s10732_s2 + $0x80] sm:$0xff]  }
 0xaf4   : > { %v3887_v28 = vsub.f32 %v9880_v38, %v3883_v35 }
 0xaf5   : > { %v3879_v18 = vsub.f32 %v3871_v10, %v3877_v14  ;;  %v8344_v10 = vld [vmem:[%s10732_s2 + $0x90] sm:$0xff]  }
 0xaf7   : > { %v3888_v23 = vadd.f32 1e-05, %v3879_v18 }
 0xaf9   : > { %8563 = vrsqrt.f32 %v3888_v23 }
 0xb06   : > { %v8564_v17 = vpop.eup %8563 }
 0xb07   : > { %v3893_v57 = vrot.slane %v8564_v17, %v8979_v15 }
 0xb09   : > { %v3894_v8 = vmul.f32 %v3893_v57, %v3884_v29  ;;  %v3895_v0 = vmul.f32 %v3893_v57, %v3885_v3  ;;  %v3896_v16 = vmul.f32 %v3893_v57, %v3886_v24  ;;  %v3897_v37 = vmul.f32 %v3893_v57, %v3887_v28 }
 0xb0b   : > { %v3898_v1 = vmax.f32 %v3894_v8, 0.0  ;;  %v3899_v21 = vmax.f32 %v3895_v0, 0.0  ;;  %v3900_v25 = vmax.f32 %v3896_v16, 0.0  ;;  %v3901_v39 = vmax.f32 %v3897_v37, 0.0 }
 0xb0d   : > { %3902 = vst [vmem:[#allocation4 + $0x1] sm:$0xff] %v3898_v1  ;;  %3903 = vst [vmem:[#allocation4 + $0x9] sm:$0xff] %v3899_v21 }
 0xb0e   : > { %3904 = vst [vmem:[#allocation4 + $0x19] sm:$0xff] %v3900_v25  ;;  %3905 = vst [vmem:[#allocation4 + $0x21] sm:$0xff] %v3901_v39 }
 0xb14   : > { %v3906_v62 = vld [vmem:[#allocation4] sm:$0xff]  ;;  %v3907_v36 = vld [vmem:[#allocation4 + $0x8] sm:$0xff]  ;;  %v3908_v38 = vld [vmem:[#allocation4 + $0x10] sm:$0x3] }
 0xb15   : > { %v3909_v40 = vld [vmem:[#allocation4 + $0x18] sm:$0xff]  ;;  %v3912_v20 = vpack.c.bf16 %v3907_v36, %v3906_v62  ;;  %v3910_v41 = vld [vmem:[#allocation4 + $0x20] sm:$0xff]  ;;  %v3911_v2 = vld [vmem:[#allocation4 + $0x28] sm:$0x3]  ;;  %v3913_v42 = vpack.c.bf16 %v3908_v38, %v3908_v38 }
 0xb16   : > { %v9954_v9 = vpack.c.bf16 %v3910_v41, %v3909_v40  ;;  %v9956_v43 = vpack.c.bf16 %v3911_v2, %v3911_v2 }
 0xb17   : > { %7902 = vmatprep.mubr.bf16.mxu0 %v3912_v20  ;;  %v3935_v32 = vshll.u32 %v3912_v20, 16  ;;  %v3940_v61 = vshll.u32 %v3913_v42, 16  ;;  %v3933_v33 = vshrl.u32 %v3912_v20, 16  ;;  %v4172_v49 = vrot.slane %v3912_v20, 1 }
 0xb18   : > { %7903 = vmatmul.mubr.bf16.vlgmr.msra.gmra.mxu0 %v9954_v9  ;;  %v3947_v12 = vshll.u32 %v9954_v9, 16  ;;  %v3952_v5 = vshll.u32 %v9956_v43, 16  ;;  %v3945_v46 = vshrl.u32 %v9954_v9, 16  ;;  %v4173_v50 = vrot.slane %v3913_v42, 1 }
 0xb19   : > { %v3937_v44 = vrot.slane %v3935_v32, 1  ;;  %7927 = vmatpush3.msra.mxu0 %v9964_v45  ;;  %7942 = vmatprep.mubr.msk.f32.mxu0 %vm8677_vm4, %v8676_v56  ;;  %v3942_v60 = vrot.slane %v3940_v61, 1  ;;  %v4175_v14 = vrot.slane %v9954_v9, 1  ;;  %v4176_v18 = vrot.slane %v9956_v43, 1 }
 0xb1a   : > { %v3949_v47 = vrot.slane %v3947_v12, 1  ;;  %7928 = vmatprep.subr.mxu0 %v8676_v56  ;;  %v3954_v51 = vrot.slane %v3952_v5, 1  ;;  %v4174_v58 = vsel %vm637_vm3, %v4172_v49, %v4173_v50 }
 0xb1b   : > { %v3938_v48 = vor.u32 %v3937_v44, %v3933_v33  ;;  %7929 = vmatpush3.msra.mxu0 %v9974_v6  ;;  %v4177_v23 = vsel %vm637_vm3, %v4175_v14, %v4176_v18 }
 0xb1c   : > { %v3950_v26 = vor.u32 %v3949_v47, %v3945_v46  ;;  %7930 = vmatprep.subr.mxu0 %v8676_v56 }
 0xb1d   : > { %v3943_v52 = vsel %vm395_vm2, %v3938_v48, %v3942_v60  ;;  %7931 = vmatpush3.msra.mxu0 %v9985_v54 }
 0xb1e   : > { %7882 = vmatprep.mubr.bf16.mxu1 %v3943_v52  ;;  %v3955_v55 = vsel %vm395_vm2, %v3950_v26, %v3954_v51  ;;  %7932 = vmatprep.subr.mxu0 %v8676_v56 }
 0xb1f   : > { %7883 = vmatmul.mubr.bf16.vlgmr.msra.gmra.mxu1 %v3955_v55  ;;  %7933 = vmatpush3.msra.mxu0 %v9994_v59 }
 0xb20   : > { %7907 = vmatpush3.bf16.msra.mxu1 %v9945_v7  ;;  %7922 = vmatprep.mubr.bf16.mxu1 %v4174_v58  ;;  %v8343_v7 = vld [vmem:[%s10732_s2 + $0x98] sm:$0xff]  }
 0xb21   : > { %7908 = vmatprep.subr.bf16.mxu1 %v8340_v53  ;;  %7934 = vmatprep.subr.mxu0 %v8676_v56 }
 0xb22   : > { %7935 = vmatpush3.msra.mxu0 %v10005_v19 }
 0xb23   : > { %7936 = vmatprep.subr.mxu0 %v8676_v56 }
 0xb24   : > { %7909 = vmatpush3.bf16.msra.mxu1 %v8340_v53  ;;  %7937 = vmatpush3.msra.mxu0 %v10012_v31 }
 0xb25   : > { %7910 = vmatprep.subr.bf16.mxu1 %v8341_v63  ;;  %7938 = vmatprep.subr.mxu0 %v8676_v56 }
 0xb26   : > { %7939 = vmatpush3.msra.mxu0 %v10022_v34 }
 0xb27   : > { %7940 = vmatprep.subr.mxu0 %v8676_v56 }
 0xb28   : > { %7911 = vmatpush3.bf16.msra.mxu1 %v8341_v63  ;;  %7941 = vmatpush3.msra.mxu0 %v10029_v22 }
 0xb29   : > { %7912 = vmatprep.subr.bf16.mxu1 %v8342_v30 }
 0xb2c   : > { %7913 = vmatpush3.bf16.msra.mxu1 %v8342_v30 }
 0xb2d   : > { %7914 = vmatprep.subr.bf16.mxu1 %v8343_v7 }
 0xb30   : > { %7915 = vmatpush3.bf16.msra.mxu1 %v8343_v7 }
 0xb31   : > { %7916 = vmatprep.subr.bf16.mxu1 %v8344_v10 }
 0xb34   : > { %7917 = vmatpush3.bf16.msra.mxu1 %v8344_v10 }
 0xb35   : > { %7918 = vmatprep.subr.bf16.mxu1 %v8345_v11 }
 0xb38   : > { %7919 = vmatpush3.bf16.msra.mxu1 %v8345_v11 }
 0xb39   : > { %7920 = vmatprep.subr.bf16.mxu1 %v8346_v4 }
 0xb3c   : > { %7921 = vmatpush3.bf16.msra.mxu1 %v8346_v4 }
 0xb3f   : > { %7923 = vmatmul.mubr.bf16.vlgmr.msra.gmra.mxu1 %v4177_v23  ;;  %v8347_v23 = vld [vmem:[%s10733_s3 + $0x18] sm:$0xff]  }
 0xb40   : > { %7957 = vmatprep.subr.bf16.mxu0 %v8347_v23 }
 0xbd8   : > { %v7904_v29 = vpop.f32.mrf.mxu0 }
 0xbda   : > { %v4153_v24 = vpop.f32.mrf.mxu0 }
 0xbdc   : > { %v7905_v57 = vpop.f32.mrf.mxu0 }
 0xbde   : > { %v4156_v21 = vpop.f32.mrf.mxu0 }
 0xbdf   : > { %v7884_v35 = vpop.f32.mrf.mxu1 }
 0xbe0   : > { %v4162_v37 = vadd.f32 %v7904_v29, %v7884_v35  ;;  %v8348_v35 = vld [vmem:[%s10733_s3 + $0x10] sm:$0xff]   ;;  %v8350_v29 = vld [vmem:[%s10733_s3 + $0x8] sm:$0xff]  }
 0xbe1   : > { %v4056_v17 = vpop.f32.mrf.mxu1 }
 0xbe2   : > { %v4154_v0 = vadd.f32 %v4153_v24, %v4056_v17  ;;  %v8349_v17 = vld [vmem:[%s10733_s3 + $0x38] sm:$0xff]   ;;  %v8352_v24 = vld [vmem:[%s10733_s3] sm:$0xff]  }
 0xbe3   : > { %v7885_v3 = vpop.f32.mrf.mxu1  ;;  %7945 = vmatprep.subr.bf16.mxu1 %v8349_v17 }
 0xbe4   : > { %v4165_v39 = vadd.f32 %v7905_v57, %v7885_v3  ;;  %v8351_v3 = vld [vmem:[%s10733_s3 + $0x30] sm:$0xff]   ;;  %7946 = vmatpush3.bf16.msra.mxu1 %v8349_v17  ;;  %v8354_v57 = vld [vmem:[%s10733_s3 + $0x20] sm:$0xff]  }
 0xbe5   : > { %v4059_v28 = vpop.f32.mrf.mxu1  ;;  %7947 = vmatprep.subr.bf16.mxu1 %v8351_v3 }
 0xbe6   : > { %v4157_v62 = vadd.f32 %v4156_v21, %v4059_v28  ;;  %v8353_v28 = vld [vmem:[%s10733_s3 + $0x28] sm:$0xff]  }
 0xbe8   : > { %7948 = vmatpush3.bf16.msra.mxu1 %v8351_v3 }
 0xbe9   : > { %7949 = vmatprep.subr.bf16.mxu1 %v8353_v28 }
 0xbec   : > { %7950 = vmatpush3.bf16.msra.mxu1 %v8353_v28 }
 0xbed   : > { %7951 = vmatprep.subr.bf16.mxu1 %v8354_v57 }
 0xbf0   : > { %7952 = vmatpush3.bf16.msra.mxu1 %v8354_v57 }
 0xbff   : > { %v7924_v8 = vpop.f32.mrf.mxu1 }
 0xc00   : > { %v10049_v36 = vadd.f32 %v7924_v8, %v4162_v37  ;;  %v10105_v8 = vld [vmem:[%s10733_s3 + $0x58] sm:$0xff]  }
 0xc01   : > { %v4278_v16 = vpop.f32.mrf.mxu1  ;;  %7969 = vmatprep.subr.bf16.mxu1 %v10105_v8 }
 0xc02   : > { %v10047_v1 = vadd.f32 %v4278_v16, %v4154_v0  ;;  %v4312_v2 = vmul.f32 %v10049_v36, %v10049_v36  ;;  %v4300_v61 = vsel %vm1282_vm6, %v10049_v36, 0.0 }
 0xc03   : > { %v7925_v25 = vpop.f32.mrf.mxu1 }
 0xc04   : > { %v4310_v20 = vmul.f32 %v10047_v1, %v10047_v1  ;;  %v10053_v41 = vadd.f32 %v7925_v25, %v4165_v39  ;;  %v4297_v9 = vsel %vm1282_vm6, %v10047_v1, 0.0  ;;  %v4317_v47 = vsel %vm1282_vm6, %v4312_v2, 0.0 }
 0xc05   : > { %v4281_v40 = vpop.f32.mrf.mxu1 }
 0xc06   : > { %v10055_v38 = vadd.f32 %v4281_v40, %v4157_v62  ;;  %v4314_v12 = vsel %vm1282_vm6, %v4310_v20, 0.0  ;;  %v4313_v5 = vmul.f32 %v10053_v41, %v10053_v41  ;;  %v4302_v48 = vsel %vm1282_vm6, %v10053_v41, 0.0 }
 0xc08   : > { %v4298_v42 = vsel %vm1282_vm6, %v10055_v38, 0.0  ;;  %v4311_v43 = vmul.f32 %v10055_v38, %v10055_v38  ;;  %v4319_v50 = vsel %vm1282_vm6, %v4313_v5, 0.0 }
 0xc09   : > { %v4299_v32 = vadd.f32 %v4298_v42, %v4297_v9 }
 0xc0a   : > { %v4315_v33 = vsel %vm1282_vm6, %v4311_v43, 0.0 }
 0xc0b   : > { %v4301_v44 = vadd.f32 %v4300_v61, %v4299_v32  ;;  %v4316_v46 = vadd.f32 %v4315_v33, %v4314_v12 }
 0xc0d   : > { %v4303_v60 = vadd.f32 %v4302_v48, %v4301_v44  ;;  %v4318_v49 = vadd.f32 %v4317_v47, %v4316_v46 }
 0xc0f   : > { %v4304_v26 = vrot.slane %v4303_v60, 4  ;;  %v4320_v51 = vadd.f32 %v4319_v50, %v4318_v49 }
 0xc11   : > { %v4305_v52 = vadd.f32 %v4304_v26, %v4303_v60  ;;  %v4321_v53 = vrot.slane %v4320_v51, 4 }
 0xc13   : > { %v4306_v55 = vrot.slane %v4305_v52, 2  ;;  %v4322_v58 = vadd.f32 %v4321_v53, %v4320_v51 }
 0xc15   : > { %v4307_v63 = vadd.f32 %v4306_v55, %v4305_v52  ;;  %v4323_v30 = vrot.slane %v4322_v58, 2 }
 0xc17   : > { %v4308_v7 = vrot.slane %v4307_v63, 1  ;;  %v4324_v10 = vadd.f32 %v4323_v30, %v4322_v58 }
 0xc19   : > { %v4325_v11 = vrot.slane %v4324_v10, 1  ;;  %v4309_v4 = vadd.f32 %v4308_v7, %v4307_v63 }
 0xc1b   : > { %v4326_v14 = vadd.f32 %v4325_v11, %v4324_v10 }
 0xc1d   : > { %v4327_v18 = vsel %vm786_vm5, %v4309_v4, %v4326_v14 }
 0xc1e   : > { %7943 = vmatmul.mubr.msk.f32.vlgmr.msra.gmra.mxu0 %vm1282_vm6, %v4327_v18 }
 0xc1f   : > { %7958 = vmatpush3.bf16.msra.mxu0 %v8347_v23 }
 0xc20   : > { %7959 = vmatprep.subr.bf16.mxu0 %v8348_v35 }
 0xc23   : > { %7960 = vmatpush3.bf16.msra.mxu0 %v8348_v35 }
 0xc24   : > { %7961 = vmatprep.subr.bf16.mxu0 %v8350_v29 }
 0xc27   : > { %7962 = vmatpush3.bf16.msra.mxu0 %v8350_v29 }
 0xc28   : > { %7963 = vmatprep.subr.bf16.mxu0 %v8352_v24 }
 0xc2b   : > { %7964 = vmatpush3.bf16.msra.mxu0 %v8352_v24 }
 0xc2c   : > { %7981 = vmatprep.subr.mxu0 %v8676_v56 }
 0xcde   : > { %v4397_v0 = vpop.f32.mrf.mxu0 }
 0xcdf   : > { %v4401_v16 = vmul.f32 %v4397_v0, %v4397_v0  ;;  %v4409_v62 = vrot.slane %v4397_v0, %v8976_v13 }
 0xce0   : > { %v7944_v37 = vpop.f32.mrf.mxu0 }
 0xce1   : > { %v4403_v21 = vrot.slane %v4401_v16, 7  ;;  %v4410_v20 = vsub.f32 %v10047_v1, %v4409_v62  ;;  %v4411_v2 = vsub.f32 %v10055_v38, %v4409_v62  ;;  %v4412_v9 = vsub.f32 %v10049_v36, %v4409_v62 }
 0xce2   : > { %v4413_v42 = vsub.f32 %v10053_v41, %v4409_v62 }
 0xce3   : > { %v4405_v25 = vsub.f32 %v4397_v0, %v4403_v21 }
 0xce5   : > { %v4414_v39 = vadd.f32 1e-05, %v4405_v25 }
 0xce7   : > { %8565 = vrsqrt.f32 %v4414_v39 }
 0xcf4   : > { %v8566_v40 = vpop.eup %8565 }
 0xcf5   : > { %v4419_v43 = vrot.slane %v8566_v40, %v8979_v15 }
 0xcf7   : > { %v4420_v32 = vmul.f32 %v4419_v43, %v4410_v20  ;;  %v4421_v61 = vmul.f32 %v4419_v43, %v4411_v2  ;;  %v4422_v12 = vmul.f32 %v4419_v43, %v4412_v9  ;;  %v4423_v5 = vmul.f32 %v4419_v43, %v4413_v42 }
 0xcf9   : > { %v4424_v33 = vmax.f32 %v4420_v32, 0.0  ;;  %v4425_v44 = vmax.f32 %v4421_v61, 0.0  ;;  %v4426_v46 = vmax.f32 %v4422_v12, 0.0  ;;  %v4427_v47 = vmax.f32 %v4423_v5, 0.0 }
 0xcfb   : > { %4428 = vst.msk [vmem:[#allocation5 + $0x1] sm:$0xff] %vm1282_vm6, %v4424_v33  ;;  %4429 = vst.msk [vmem:[#allocation5 + $0x9] sm:$0xff] %vm1282_vm6, %v4425_v44 }
 0xcfc   : > { %4430 = vst.msk [vmem:[#allocation5 + $0x19] sm:$0xff] %vm1282_vm6, %v4426_v46  ;;  %4431 = vst.msk [vmem:[#allocation5 + $0x21] sm:$0xff] %vm1282_vm6, %v4427_v47 }
 0xd02   : > { %v4432_v1 = vld [vmem:[#allocation5] sm:$0xff]  ;;  %v4433_v36 = vld [vmem:[#allocation5 + $0x8] sm:$0xff]  ;;  %v4434_v60 = vld [vmem:[#allocation5 + $0x10] sm:$0x3] }
 0xd03   : > { %v4435_v41 = vld [vmem:[#allocation5 + $0x18] sm:$0xff]  ;;  %v4438_v38 = vpack.c.bf16 %v4433_v36, %v4432_v1  ;;  %v4436_v48 = vld [vmem:[#allocation5 + $0x20] sm:$0xff]  ;;  %v4437_v49 = vld [vmem:[#allocation5 + $0x28] sm:$0x3]  ;;  %v4439_v26 = vpack.c.bf16 %v4434_v60, %v4434_v60 }
 0xd04   : > { %v4440_v50 = vpack.c.bf16 %v4436_v48, %v4435_v41  ;;  %v4441_v51 = vpack.c.bf16 %v4437_v49, %v4437_v49 }
 0xd05   : > { %7965 = vmatprep.mubr.msk.bf16.mxu0 %vm1282_vm6, %v4438_v38  ;;  %v4453_v52 = vshll.u32 %v4438_v38, 16  ;;  %v4458_v53 = vshll.u32 %v4439_v26, 16  ;;  %v4451_v63 = vshrl.u32 %v4438_v38, 16  ;;  %v4642_v14 = vrot.slane %v4438_v38, 1 }
 0xd06   : > { %7966 = vmatmul.mubr.msk.bf16.vlgmr.msra.gmra.mxu0 %vm1282_vm6, %v4440_v50  ;;  %v4465_v55 = vshll.u32 %v4440_v50, 16  ;;  %v4470_v58 = vshll.u32 %v4441_v51, 16  ;;  %v4463_v7 = vshrl.u32 %v4440_v50, 16  ;;  %v4643_v18 = vrot.slane %v4439_v26, 1 }
 0xd07   : > { %v4455_v30 = vrot.slane %v4453_v52, 1  ;;  %7982 = vmatpush3.msra.mxu0 %v9964_v45  ;;  %7997 = vmatprep.mubr.msk.f32.mxu0 %vm8677_vm4, %v8676_v56  ;;  %v4460_v4 = vrot.slane %v4458_v53, 1  ;;  %v8356_v45 = vld [vmem:[%s10733_s3 + $0x50] sm:$0xff]   ;;  %v4646_v3 = vrot.slane %v4441_v51, 1 }
 0xd08   : > { %v4467_v10 = vrot.slane %v4465_v55, 1  ;;  %7983 = vmatprep.subr.mxu0 %v8676_v56  ;;  %v4472_v35 = vrot.slane %v4470_v58, 1 }
 0xd09   : > { %v4456_v11 = vor.u32 %v4455_v30, %v4451_v63  ;;  %7984 = vmatpush3.msra.mxu0 %v9974_v6  ;;  %v4644_v6 = vsel %vm637_vm3, %v4642_v14, %v4643_v18 }
 0xd0a   : > { %v4468_v23 = vor.u32 %v4467_v10, %v4463_v7  ;;  %7985 = vmatprep.subr.mxu0 %v8676_v56 }
 0xd0b   : > { %v4461_v17 = vsel %vm395_vm2, %v4456_v11, %v4460_v4  ;;  %7986 = vmatpush3.msra.mxu0 %v9985_v54  ;;  %v8357_v54 = vld [vmem:[%s10733_s3 + $0x48] sm:$0xff]  }
 0xd0c   : > { %7953 = vmatprep.mubr.msk.bf16.mxu1 %vm1282_vm6, %v4461_v17  ;;  %v4473_v29 = vsel %vm395_vm2, %v4468_v23, %v4472_v35  ;;  %7987 = vmatprep.subr.mxu0 %v8676_v56  ;;  %v8359_v17 = vld [vmem:[%s10734_s4 + $0x18] sm:$0xff]  }
 0xd0d   : > { %7954 = vmatmul.mubr.msk.bf16.vlgmr.msra.gmra.mxu1 %vm1282_vm6, %v4473_v29  ;;  %7988 = vmatpush3.msra.mxu0 %v9994_v59  ;;  %v8358_v59 = vld [vmem:[%s10733_s3 + $0x40] sm:$0xff]   ;;  %v8361_v29 = vld [vmem:[%s10734_s4 + $0x38] sm:$0xff]  }
 0xd0e   : > { %7970 = vmatpush3.bf16.msra.mxu1 %v10105_v8  ;;  %7977 = vmatprep.mubr.msk.bf16.mxu1 %vm1282_vm6, %v4644_v6  ;;  %v8362_v6 = vld [vmem:[%s10734_s4 + $0x8] sm:$0xff]  }
 0xd0f   : > { %7971 = vmatprep.subr.bf16.mxu1 %v8356_v45  ;;  %7989 = vmatprep.subr.mxu0 %v8676_v56 }
 0xd10   : > { %7990 = vmatpush3.msra.mxu0 %v10005_v19  ;;  %v4645_v19 = vrot.slane %v4440_v50, 1 }
 0xd11   : > { %7991 = vmatprep.subr.mxu0 %v8676_v56 }
 0xd12   : > { %7972 = vmatpush3.bf16.msra.mxu1 %v8356_v45  ;;  %7992 = vmatpush3.msra.mxu0 %v10012_v31  ;;  %v4647_v31 = vsel %vm637_vm3, %v4645_v19, %v4646_v3  ;;  %v8360_v45 = vld [vmem:[%s10734_s4 + $0x10] sm:$0xff]   ;;  %v8365_v19 = vld [vmem:[%s10734_s4 + $0x28] sm:$0xff]   ;;  %v8366_v3 = vld [vmem:[%s10734_s4 + $0x20] sm:$0xff]  }
 0xd13   : > { %7973 = vmatprep.subr.bf16.mxu1 %v8357_v54  ;;  %7993 = vmatprep.subr.mxu0 %v8676_v56 }
 0xd14   : > { %7994 = vmatpush3.msra.mxu0 %v10022_v34 }
 0xd15   : > { %7995 = vmatprep.subr.mxu0 %v8676_v56 }
 0xd16   : > { %7974 = vmatpush3.bf16.msra.mxu1 %v8357_v54  ;;  %7996 = vmatpush3.msra.mxu0 %v10029_v22  ;;  %v8363_v54 = vld [vmem:[%s10734_s4 + $0x30] sm:$0xff]  }
 0xd17   : > { %7975 = vmatprep.subr.bf16.mxu1 %v8358_v59  ;;  %8012 = vmatprep.subr.bf16.mxu0 %v8359_v17 }
 0xd1a   : > { %7976 = vmatpush3.bf16.msra.mxu1 %v8358_v59  ;;  %v8364_v59 = vld [vmem:[%s10734_s4] sm:$0xff]  }
 0xd1b   : > { %8000 = vmatprep.subr.bf16.mxu1 %v8361_v29 }
 0xd1d   : > { %7978 = vmatmul.mubr.msk.bf16.vlgmr.msra.gmra.mxu1 %vm1282_vm6, %v4647_v31  ;;  %v10213_v31 = vld [vmem:[%s10734_s4 + $0x58] sm:$0xff]  }
 0xd1e   : > { %8001 = vmatpush3.bf16.msra.mxu1 %v8361_v29  ;;  %v8369_v29 = vld [vmem:[%s10734_s4 + $0x48] sm:$0xff]  }
 0xd1f   : > { %8002 = vmatprep.subr.bf16.mxu1 %v8363_v54 }
 0xd22   : > { %8003 = vmatpush3.bf16.msra.mxu1 %v8363_v54  ;;  %v8656_v54 = vld [vmem:[%s10736_s6 + $0x50] sm:$0xff] }
 0xd23   : > { %8004 = vmatprep.subr.bf16.mxu1 %v8365_v19 }
 0xd26   : > { %8005 = vmatpush3.bf16.msra.mxu1 %v8365_v19  ;;  %v8657_v19 = vld [vmem:[%s10736_s6 + $0x48] sm:$0xff] }
 0xd27   : > { %8006 = vmatprep.subr.bf16.mxu1 %v8366_v3 }
 0xd2a   : > { %8007 = vmatpush3.bf16.msra.mxu1 %v8366_v3  ;;  %v8658_v3 = vld [vmem:[%s10736_s6 + $0x40] sm:$0xff] }
 0xd2b   : > { %8024 = vmatprep.subr.bf16.mxu1 %v10213_v31 }
 0xdc6   : > { %v7967_v57 = vpop.f32.mrf.mxu0 }
 0xdc8   : > { %v4623_v0 = vpop.f32.mrf.mxu0 }
 0xdca   : > { %v7968_v34 = vpop.f32.mrf.mxu0 }
 0xdcc   : > { %v4626_v62 = vpop.f32.mrf.mxu0 }
 0xdcd   : > { %v7955_v24 = vpop.f32.mrf.mxu1 }
 0xdce   : > { %v4632_v39 = vadd.f32 %v7967_v57, %v7955_v24 }
 0xdcf   : > { %v4546_v28 = vpop.f32.mrf.mxu1 }
 0xdd0   : > { %v4624_v21 = vadd.f32 %v4623_v0, %v4546_v28 }
 0xdd1   : > { %v7956_v8 = vpop.f32.mrf.mxu1 }
 0xdd2   : > { %v4635_v20 = vadd.f32 %v7968_v34, %v7956_v8 }
 0xdd3   : > { %v4549_v16 = vpop.f32.mrf.mxu1 }
 0xdd4   : > { %v4627_v2 = vadd.f32 %v4626_v62, %v4549_v16 }
 0xddd   : > { %v7979_v37 = vpop.f32.mrf.mxu1 }
 0xdde   : > { %v10157_v9 = vadd.f32 %v7979_v37, %v4632_v39 }
 0xddf   : > { %v4720_v25 = vpop.f32.mrf.mxu1 }
 0xde0   : > { %v10155_v22 = vadd.f32 %v4720_v25, %v4624_v21  ;;  %v4754_v12 = vmul.f32 %v10157_v9, %v10157_v9  ;;  %v4742_v47 = vsel %vm1282_vm6, %v10157_v9, 0.0 }
 0xde1   : > { %v7980_v40 = vpop.f32.mrf.mxu1 }
 0xde2   : > { %v4752_v43 = vmul.f32 %v10155_v22, %v10155_v22  ;;  %v10161_v32 = vadd.f32 %v7980_v40, %v4635_v20  ;;  %v4739_v5 = vsel %vm1282_vm6, %v10155_v22, 0.0  ;;  %v4759_v60 = vsel %vm1282_vm6, %v4754_v12, 0.0 }
 0xde3   : > { %v4723_v42 = vpop.f32.mrf.mxu1 }
 0xde4   : > { %v10163_v61 = vadd.f32 %v4723_v42, %v4627_v2  ;;  %v4756_v1 = vsel %vm1282_vm6, %v4752_v43, 0.0  ;;  %v4755_v36 = vmul.f32 %v10161_v32, %v10161_v32  ;;  %v4744_v49 = vsel %vm1282_vm6, %v10161_v32, 0.0 }
 0xde6   : > { %v4740_v33 = vsel %vm1282_vm6, %v10163_v61, 0.0  ;;  %v4753_v44 = vmul.f32 %v10163_v61, %v10163_v61  ;;  %v4761_v51 = vsel %vm1282_vm6, %v4755_v36, 0.0 }
 0xde7   : > { %v4741_v46 = vadd.f32 %v4740_v33, %v4739_v5 }
 0xde8   : > { %v4757_v41 = vsel %vm1282_vm6, %v4753_v44, 0.0 }
 0xde9   : > { %v4743_v38 = vadd.f32 %v4742_v47, %v4741_v46  ;;  %v4758_v48 = vadd.f32 %v4757_v41, %v4756_v1 }
 0xdeb   : > { %v4745_v50 = vadd.f32 %v4744_v49, %v4743_v38  ;;  %v4760_v26 = vadd.f32 %v4759_v60, %v4758_v48 }
 0xded   : > { %v4746_v52 = vrot.slane %v4745_v50, 4  ;;  %v4762_v53 = vadd.f32 %v4761_v51, %v4760_v26 }
 0xdef   : > { %v4747_v55 = vadd.f32 %v4746_v52, %v4745_v50  ;;  %v4763_v58 = vrot.slane %v4762_v53, 4  ;;  %v8651_v52 = vld [vmem:[%s10736_s6 + $0x78] sm:$0xff] }
 0xdf1   : > { %v4748_v63 = vrot.slane %v4747_v55, 2  ;;  %v4764_v30 = vadd.f32 %v4763_v58, %v4762_v53 }
 0xdf3   : > { %v4749_v7 = vadd.f32 %v4748_v63, %v4747_v55  ;;  %v4765_v10 = vrot.slane %v4764_v30, 2 }
 0xdf5   : > { %v4750_v11 = vrot.slane %v4749_v7, 1  ;;  %v4766_v4 = vadd.f32 %v4765_v10, %v4764_v30  ;;  %v8652_v10 = vld [vmem:[%s10736_s6 + $0x70] sm:$0xff] }
 0xdf7   : > { %v4767_v14 = vrot.slane %v4766_v4, 1  ;;  %v4751_v18 = vadd.f32 %v4750_v11, %v4749_v7 }
 0xdf9   : > { %v4768_v23 = vadd.f32 %v4767_v14, %v4766_v4 }
 0xdfb   : > { %v4769_v35 = vsel %vm786_vm5, %v4751_v18, %v4768_v23  ;;  %v8368_v18 = vld [vmem:[%s10734_s4 + $0x50] sm:$0xff]   ;;  %v8653_v23 = vld [vmem:[%s10736_s6 + $0x68] sm:$0xff] }
 0xdfc   : > { %7998 = vmatmul.mubr.msk.f32.vlgmr.msra.gmra.mxu0 %vm1282_vm6, %v4769_v35 }
 0xdfd   : > { %8013 = vmatpush3.bf16.msra.mxu0 %v8359_v17 }
 0xdfe   : > { %8014 = vmatprep.subr.bf16.mxu0 %v8360_v45 }
 0xe01   : > { %8015 = vmatpush3.bf16.msra.mxu0 %v8360_v45  ;;  %v8654_v45 = vld [vmem:[%s10736_s6 + $0x60] sm:$0xff] }
 0xe02   : > { %8016 = vmatprep.subr.bf16.mxu0 %v8362_v6 }
 0xe05   : > { %8017 = vmatpush3.bf16.msra.mxu0 %v8362_v6  ;;  %v8655_v6 = vld [vmem:[%s10736_s6 + $0x58] sm:$0xff] }
 0xe06   : > { %8018 = vmatprep.subr.bf16.mxu0 %v8364_v59 }
 0xe09   : > { %8019 = vmatpush3.bf16.msra.mxu0 %v8364_v59  ;;  %v8370_v59 = vld [vmem:[%s10734_s4 + $0x40] sm:$0xff]  }
 0xe0a   : > { %8036 = vmatprep.subr.mxu0 %v8676_v56 }
 0xebc   : > { %v4839_v24 = vpop.f32.mrf.mxu0 }
 0xebd   : > { %v4843_v28 = vmul.f32 %v4839_v24, %v4839_v24  ;;  %v4851_v34 = vrot.slane %v4839_v24, %v8976_v13 }
 0xebe   : > { %v7999_v57 = vpop.f32.mrf.mxu0 }
 0xebf   : > { %v4845_v8 = vrot.slane %v4843_v28, 7  ;;  %v4852_v21 = vsub.f32 %v10155_v22, %v4851_v34  ;;  %v4853_v25 = vsub.f32 %v10163_v61, %v4851_v34  ;;  %v4854_v39 = vsub.f32 %v10157_v9, %v4851_v34  ;;  %v8659_v28 = vld [vmem:[%s10736_s6 + $0x38] sm:$0xff]  ;;  %v8660_v57 = vld [vmem:[%s10736_s6 + $0x30] sm:$0xff] }
 0xec0   : > { %v4855_v62 = vsub.f32 %v10161_v32, %v4851_v34  ;;  %v8663_v34 = vld [vmem:[%s10736_s6 + $0x18] sm:$0xff] }
 0xec1   : > { %v4847_v0 = vsub.f32 %v4839_v24, %v4845_v8 }
 0xec3   : > { %v4856_v16 = vadd.f32 1e-05, %v4847_v0  ;;  %v8661_v0 = vld [vmem:[%s10736_s6 + $0x28] sm:$0xff] }
 0xec5   : > { %8567 = vrsqrt.f32 %v4856_v16  ;;  %v8662_v16 = vld [vmem:[%s10736_s6 + $0x20] sm:$0xff] }
 0xed2   : > { %v8568_v37 = vpop.eup %8567 }
 0xed3   : > { %v4861_v40 = vrot.slane %v8568_v37, %v8979_v15  ;;  %v8664_v37 = vld [vmem:[%s10736_s6 + $0x10] sm:$0xff] }
 0xed5   : > { %v4862_v20 = vmul.f32 %v4861_v40, %v4852_v21  ;;  %v4863_v2 = vmul.f32 %v4861_v40, %v4853_v25  ;;  %v4864_v42 = vmul.f32 %v4861_v40, %v4854_v39  ;;  %v4865_v43 = vmul.f32 %v4861_v40, %v4855_v62  ;;  %v8665_v21 = vld [vmem:[%s10736_s6 + $0x8] sm:$0xff]  ;;  %v8666_v25 = vld [vmem:[%s10736_s6] sm:$0xff] }
 0xed7   : > { %v4866_v12 = vmax.f32 %v4862_v20, 0.0  ;;  %v4867_v5 = vmax.f32 %v4863_v2, 0.0  ;;  %v4868_v33 = vmax.f32 %v4864_v42, 0.0  ;;  %v4869_v44 = vmax.f32 %v4865_v43, 0.0 }
 0xed9   : > { %4870 = vst.msk [vmem:[#allocation5 + $0x1] sm:$0xff] %vm1282_vm6, %v4866_v12  ;;  %4871 = vst.msk [vmem:[#allocation5 + $0x9] sm:$0xff] %vm1282_vm6, %v4867_v5 }
 0xeda   : > { %4872 = vst.msk [vmem:[#allocation5 + $0x19] sm:$0xff] %vm1282_vm6, %v4868_v33  ;;  %4873 = vst.msk [vmem:[#allocation5 + $0x21] sm:$0xff] %vm1282_vm6, %v4869_v44 }
 0xee0   : > { %v4874_v22 = vld [vmem:[#allocation5] sm:$0xff]  ;;  %v4875_v9 = vld [vmem:[#allocation5 + $0x8] sm:$0xff]  ;;  %v4876_v47 = vld [vmem:[#allocation5 + $0x10] sm:$0x3] }
 0xee1   : > { %v4877_v32 = vld [vmem:[#allocation5 + $0x18] sm:$0xff]  ;;  %v4880_v61 = vpack.c.bf16 %v4875_v9, %v4874_v22  ;;  %v4878_v46 = vld [vmem:[#allocation5 + $0x20] sm:$0xff]  ;;  %v4879_v1 = vld [vmem:[#allocation5 + $0x28] sm:$0x3]  ;;  %v4881_v41 = vpack.c.bf16 %v4876_v47, %v4876_v47 }
 0xee2   : > { %v10226_v36 = vpack.c.bf16 %v4878_v46, %v4877_v32  ;;  %v10228_v38 = vpack.c.bf16 %v4879_v1, %v4879_v1 }
 0xee3   : > { %8020 = vmatprep.mubr.msk.bf16.mxu0 %vm1282_vm6, %v4880_v61  ;;  %v4895_v48 = vshll.u32 %v4880_v61, 16  ;;  %v4900_v60 = vshll.u32 %v4881_v41, 16  ;;  %v4893_v26 = vshrl.u32 %v4880_v61, 16  ;;  %v5084_v30 = vrot.slane %v4880_v61, 1 }
 0xee4   : > { %8021 = vmatmul.mubr.msk.bf16.vlgmr.msra.gmra.mxu0 %vm1282_vm6, %v10226_v36  ;;  %v4907_v49 = vshll.u32 %v10226_v36, 16  ;;  %v4912_v50 = vshll.u32 %v10228_v38, 16  ;;  %v4905_v53 = vshrl.u32 %v10226_v36, 16  ;;  %v5085_v7 = vrot.slane %v4881_v41, 1 }
 0xee5   : > { %v4897_v51 = vrot.slane %v4895_v48, 1  ;;  %8037 = vmatpush3.msra.mxu0 %v8651_v52  ;;  %8068 = vmatprep.mubr.msk.f32.mxu0 %vm8677_vm4, %v8676_v56  ;;  %v4902_v63 = vrot.slane %v4900_v60, 1  ;;  %v5088_v24 = vrot.slane %v10228_v38, 1 }
 0xee6   : > { %v4909_v55 = vrot.slane %v4907_v49, 1  ;;  %8038 = vmatprep.subr.mxu0 %v8676_v56  ;;  %v4914_v4 = vrot.slane %v4912_v50, 1  ;;  %v5086_v17 = vsel %vm637_vm3, %v5084_v30, %v5085_v7 }
 0xee7   : > { %v4898_v58 = vor.u32 %v4897_v51, %v4893_v26  ;;  %8039 = vmatpush3.msra.mxu0 %v8652_v10 }
 0xee8   : > { %v4910_v11 = vor.u32 %v4909_v55, %v4905_v53  ;;  %8040 = vmatprep.subr.mxu0 %v8676_v56 }
 0xee9   : > { %v4903_v14 = vsel %vm395_vm2, %v4898_v58, %v4902_v63  ;;  %8041 = vmatpush3.msra.mxu0 %v8653_v23 }
 0xeea   : > { %8008 = vmatprep.mubr.msk.bf16.mxu1 %vm1282_vm6, %v4903_v14  ;;  %v4915_v35 = vsel %vm395_vm2, %v4910_v11, %v4914_v4  ;;  %8042 = vmatprep.subr.mxu0 %v8676_v56 }
 0xeeb   : > { %8009 = vmatmul.mubr.msk.bf16.vlgmr.msra.gmra.mxu1 %vm1282_vm6, %v4915_v35  ;;  %8043 = vmatpush3.msra.mxu0 %v8654_v45  ;;  %v8373_v45 = vld [vmem:[%s10735_s5 + $0x1e4] ss:$16 sps:$4 sm:$0xff]  }
 0xeec   : > { %8025 = vmatpush3.bf16.msra.mxu1 %v10213_v31  ;;  %8032 = vmatprep.mubr.msk.bf16.mxu1 %vm1282_vm6, %v5086_v17  ;;  %v5087_v31 = vrot.slane %v10226_v36, 1 }
 0xeed   : > { %8026 = vmatprep.subr.bf16.mxu1 %v8368_v18  ;;  %8044 = vmatprep.subr.mxu0 %v8676_v56 }
 0xeee   : > { %8045 = vmatpush3.msra.mxu0 %v8655_v6  ;;  %v5089_v8 = vsel %vm637_vm3, %v5087_v31, %v5088_v24  ;;  %v8371_v6 = vld [vmem:[%s10735_s5 + $0x1e0] ss:$16 sps:$4 sm:$0xff]   ;;  %v8380_v31 = vld [vmem:[%s10735_s5 + $0x1c8] ss:$16 sps:$4 sm:$0xff]   ;;  %v8385_v24 = vld [vmem:[%s10735_s5 + $0x1a4] ss:$16 sps:$4 sm:$0xff]  }
 0xeef   : > { %8046 = vmatprep.subr.mxu0 %v8676_v56 }
 0xef0   : > { %8027 = vmatpush3.bf16.msra.mxu1 %v8368_v18  ;;  %8047 = vmatpush3.msra.mxu0 %v8656_v54  ;;  %v8374_v54 = vld [vmem:[%s10735_s5 + $0x1e8] ss:$16 sps:$4 sm:$0xff]  }
 0xef1   : > { %8028 = vmatprep.subr.bf16.mxu1 %v8369_v29  ;;  %8048 = vmatprep.subr.mxu0 %v8676_v56 }
 0xef2   : > { %8049 = vmatpush3.msra.mxu0 %v8657_v19  ;;  %v8382_v19 = vld [vmem:[%s10735_s5 + $0x1cc] ss:$16 sps:$4 sm:$0xff]  }
 0xef3   : > { %8050 = vmatprep.subr.mxu0 %v8676_v56 }
 0xef4   : > { %8029 = vmatpush3.bf16.msra.mxu1 %v8369_v29  ;;  %8051 = vmatpush3.msra.mxu0 %v8658_v3  ;;  %v8376_v29 = vld [vmem:[%s10735_s5 + $0x1ec] ss:$16 sps:$4 sm:$0xff]   ;;  %v8377_v3 = vld [vmem:[%s10735_s5 + $0x1c0] ss:$16 sps:$4 sm:$0xff]  }
 0xef5   : > { %8030 = vmatprep.subr.bf16.mxu1 %v8370_v59  ;;  %8052 = vmatprep.subr.mxu0 %v8676_v56 }
 0xef6   : > { %8053 = vmatpush3.msra.mxu0 %v8659_v28  ;;  %v8388_v28 = vld [vmem:[%s10735_s5 + $0x1ac] ss:$16 sps:$4 sm:$0xff]  }
 0xef7   : > { %8054 = vmatprep.subr.mxu0 %v8676_v56 }
 0xef8   : > { %8031 = vmatpush3.bf16.msra.mxu1 %v8370_v59  ;;  %8055 = vmatpush3.msra.mxu0 %v8660_v57  ;;  %v8379_v59 = vld [vmem:[%s10735_s5 + $0x1c4] ss:$16 sps:$4 sm:$0xff]   ;;  %v8383_v57 = vld [vmem:[%s10735_s5 + $0x1a0] ss:$16 sps:$4 sm:$0xff]  }
 0xef9   : > { %8056 = vmatprep.subr.mxu0 %v8676_v56  ;;  %5573 = vmatprep.subr.bf16.mxu1 %v8373_v45 }
 0xefa   : > { %8057 = vmatpush3.msra.mxu0 %v8661_v0  ;;  %v8391_v0 = vld [vmem:[%s10735_s5 + $0x184] ss:$16 sps:$4 sm:$0xff]  }
 0xefb   : > { %8033 = vmatmul.mubr.msk.bf16.vlgmr.msra.gmra.mxu1 %vm1282_vm6, %v5089_v8  ;;  %8058 = vmatprep.subr.mxu0 %v8676_v56  ;;  %v8386_v8 = vld [vmem:[%s10735_s5 + $0x1a8] ss:$16 sps:$4 sm:$0xff]  }
 0xefc   : > { %8059 = vmatpush3.msra.mxu0 %v8662_v16  ;;  %5605 = vmatprep.mubr.bf16.mxu1 %v8678_v27  ;;  %v8394_v16 = vld [vmem:[%s10735_s5 + $0x18c] ss:$16 sps:$4 sm:$0xff]  }
 0xefd   : > { %8060 = vmatprep.subr.mxu0 %v8676_v56  ;;  %5574 = vmatpush1.bf16.msra.mxu1 %v8371_v6 }
 0xefe   : > { %8061 = vmatpush3.msra.mxu0 %v8663_v34  ;;  %5575 = vmatprep.subr.bf16.mxu1 %v8379_v59  ;;  %v8389_v34 = vld [vmem:[%s10735_s5 + $0x180] ss:$16 sps:$4 sm:$0xff]  }
 0xeff   : > { %8062 = vmatprep.subr.mxu0 %v8676_v56 }
 0xf00   : > { %8063 = vmatpush3.msra.mxu0 %v8664_v37  ;;  %v8392_v37 = vld [vmem:[%s10735_s5 + $0x188] ss:$16 sps:$4 sm:$0xff]  }
 0xf01   : > { %8064 = vmatprep.subr.mxu0 %v8676_v56  ;;  %5576 = vmatpush1.bf16.msra.mxu1 %v8377_v3 }
 0xf02   : > { %8065 = vmatpush3.msra.mxu0 %v8665_v21  ;;  %5577 = vmatprep.subr.bf16.mxu1 %v8385_v24  ;;  %v8397_v21 = vld [vmem:[%s10735_s5 + $0x164] ss:$16 sps:$4 sm:$0xff]  }
 0xf03   : > { %8066 = vmatprep.subr.mxu0 %v8676_v56 }
 0xf04   : > { %8067 = vmatpush3.msra.mxu0 %v8666_v25  ;;  %v8400_v25 = vld [vmem:[%s10735_s5 + $0x16c] ss:$16 sps:$4 sm:$0xff]  }
 0xf05   : > { %5626 = vmatprep.subr.bf16.mxu0 %v8376_v29  ;;  %5578 = vmatpush1.bf16.msra.mxu1 %v8383_v57  ;;  %v3389_v29 = vld [vmem:[#allocation2 + $0x18] sm:$0xff] }
 0xf06   : > { %5579 = vmatprep.subr.bf16.mxu1 %v8391_v0 }
 0xf09   : > { %5580 = vmatpush1.bf16.msra.mxu1 %v8389_v34 }
 0xf0a   : > { %5581 = vmatprep.subr.bf16.mxu1 %v8397_v21 }
 0xfa4   : > { %v8022_v40 = vpop.f32.mrf.mxu0 }
 0xfa6   : > { %v5065_v2 = vpop.f32.mrf.mxu0 }
 0xfa8   : > { %v8023_v43 = vpop.f32.mrf.mxu0 }
 0xfaa   : > { %v5068_v44 = vpop.f32.mrf.mxu0 }
 0xfab   : > { %v8010_v39 = vpop.f32.mrf.mxu1 }
 0xfac   : > { %v5074_v9 = vadd.f32 %v8022_v40, %v8010_v39  ;;  %v8395_v39 = vld [vmem:[%s10735_s5 + $0x160] ss:$16 sps:$4 sm:$0xff]   ;;  %v8403_v40 = vld [vmem:[%s10735_s5 + $0x144] ss:$16 sps:$4 sm:$0xff]  }
 0xfad   : > { %v4988_v62 = vpop.f32.mrf.mxu1  ;;  %5582 = vmatpush1.bf16.msra.mxu1 %v8395_v39 }
 0xfae   : > { %v5066_v33 = vadd.f32 %v5065_v2, %v4988_v62  ;;  %v8398_v62 = vld [vmem:[%s10735_s5 + $0x168] ss:$16 sps:$4 sm:$0xff]   ;;  %v8401_v2 = vld [vmem:[%s10735_s5 + $0x140] ss:$16 sps:$4 sm:$0xff]   ;;  %5583 = vmatprep.subr.bf16.mxu1 %v8403_v40 }
 0xfaf   : > { %v8011_v20 = vpop.f32.mrf.mxu1 }
 0xfb0   : > { %v5077_v46 = vadd.f32 %v8023_v43, %v8011_v20  ;;  %v8406_v20 = vld [vmem:[%s10735_s5 + $0x14c] ss:$16 sps:$4 sm:$0xff]   ;;  %v8409_v43 = vld [vmem:[%s10735_s5 + $0x124] ss:$16 sps:$4 sm:$0xff]  }
 0xfb1   : > { %v4991_v42 = vpop.f32.mrf.mxu1  ;;  %5584 = vmatpush1.bf16.msra.mxu1 %v8401_v2 }
 0xfb2   : > { %v5069_v32 = vadd.f32 %v5068_v44, %v4991_v42  ;;  %v8404_v42 = vld [vmem:[%s10735_s5 + $0x148] ss:$16 sps:$4 sm:$0xff]   ;;  %5585 = vmatprep.subr.bf16.mxu1 %v8409_v43  ;;  %v8415_v44 = vld [vmem:[%s10735_s5 + $0x104] ss:$16 sps:$4 sm:$0xff]   ;;  %v8419_v43 = vld [vmem:[%s10735_s5 + $0xe0] ss:$16 sps:$4 sm:$0xff]  }
 0xfbb   : > { %v8034_v12 = vpop.f32.mrf.mxu1 }
 0xfbc   : > { %v10324_v47 = vadd.f32 %v8034_v12, %v5074_v9  ;;  %v8412_v12 = vld [vmem:[%s10735_s5 + $0x12c] ss:$16 sps:$4 sm:$0xff]   ;;  %v8413_v9 = vld [vmem:[%s10735_s5 + $0x100] ss:$16 sps:$4 sm:$0xff]  }
 0xfbd   : > { %v5162_v5 = vpop.f32.mrf.mxu1 }
 0xfbe   : > { %v10322_v56 = vadd.f32 %v5162_v5, %v5066_v33  ;;  %v5192_v60 = vmul.f32 %v10324_v47, %v10324_v47  ;;  %v8407_v5 = vld [vmem:[%s10735_s5 + $0x120] ss:$16 sps:$4 sm:$0xff]   ;;  %v8410_v33 = vld [vmem:[%s10735_s5 + $0x128] ss:$16 sps:$4 sm:$0xff]  }
 0xfbf   : > { %v8035_v22 = vpop.f32.mrf.mxu1  ;;  %5586 = vmatpush1.bf16.msra.mxu1 %v8407_v5 }
 0xfc0   : > { %v5190_v36 = vmul.f32 %v10322_v56, %v10322_v56  ;;  %v10330_v41 = vadd.f32 %v8035_v22, %v5077_v46  ;;  %v8418_v22 = vld [vmem:[%s10735_s5 + $0x10c] ss:$16 sps:$4 sm:$0xff]   ;;  %5587 = vmatprep.subr.bf16.mxu1 %v8415_v44 }
 0xfc1   : > { %v5165_v61 = vpop.f32.mrf.mxu1  ;;  %v8424_v46 = vld [vmem:[%s10735_s5 + $0xec] ss:$16 sps:$4 sm:$0xff]  }
 0xfc2   : > { %v10326_v1 = vadd.f32 %v5165_v61, %v5069_v32  ;;  %v5193_v26 = vmul.f32 %v10330_v41, %v10330_v41  ;;  %v8416_v32 = vld [vmem:[%s10735_s5 + $0x108] ss:$16 sps:$4 sm:$0xff]   ;;  %v8421_v61 = vld [vmem:[%s10735_s5 + $0xe4] ss:$16 sps:$4 sm:$0xff]  }
 0xfc3   : > { %5588 = vmatpush1.bf16.msra.mxu1 %v8413_v9  ;;  %v8430_v9 = vld [vmem:[%s10735_s5 + $0xcc] ss:$16 sps:$4 sm:$0xff]  }
 0xfc4   : > { %v5181_v38 = vadd.f32 %v10326_v1, %v10322_v56  ;;  %v5191_v48 = vmul.f32 %v10326_v1, %v10326_v1  ;;  %5839 = vmatprep.subr.bf16.mxu1 %v8421_v61 }
 0xfc6   : > { %v5182_v49 = vadd.f32 %v5181_v38, %v10324_v47  ;;  %v5194_v50 = vadd.f32 %v5191_v48, %v5190_v36 }
 0xfc8   : > { %v5183_v51 = vadd.f32 %v5182_v49, %v10330_v41  ;;  %v5195_v52 = vadd.f32 %v5194_v50, %v5192_v60 }
 0xfca   : > { %v5184_v53 = vrot.slane %v5183_v51, 4  ;;  %v5196_v55 = vadd.f32 %v5195_v52, %v5193_v26 }
 0xfcc   : > { %v5185_v58 = vadd.f32 %v5184_v53, %v5183_v51  ;;  %v5197_v63 = vrot.slane %v5196_v55, 4 }
 0xfce   : > { %v5186_v30 = vrot.slane %v5185_v58, 2  ;;  %v5198_v7 = vadd.f32 %v5197_v63, %v5196_v55 }
 0xfd0   : > { %v5187_v10 = vadd.f32 %v5186_v30, %v5185_v58  ;;  %v5199_v11 = vrot.slane %v5198_v7, 2 }
 0xfd2   : > { %v5188_v4 = vrot.slane %v5187_v10, 1  ;;  %v5200_v14 = vadd.f32 %v5199_v11, %v5198_v7 }
 0xfd4   : > { %v5201_v18 = vrot.slane %v5200_v14, 1  ;;  %v5189_v23 = vadd.f32 %v5188_v4, %v5187_v10 }
 0xfd6   : > { %v5202_v35 = vadd.f32 %v5201_v18, %v5200_v14 }
 0xfd8   : > { %v5203_v17 = vsel %vm786_vm5, %v5189_v23, %v5202_v35 }
 0xfd9   : > { %8069 = vmatmul.mubr.f32.vlgmr.msra.gmra.mxu0 %v5203_v17 }
 0xfda   : > { %5658 = vmatprep.mubr.bf16.mxu0 %v8678_v27  ;;  %5627 = vmatpush1.bf16.msra.mxu0 %v8374_v54 }
 0xfdb   : > { %5628 = vmatprep.subr.bf16.mxu0 %v8382_v19 }
 0xfde   : > { %5629 = vmatpush1.bf16.msra.mxu0 %v8380_v31 }
 0xfdf   : > { %5630 = vmatprep.subr.bf16.mxu0 %v8388_v28 }
 0xfe2   : > { %5631 = vmatpush1.bf16.msra.mxu0 %v8386_v8 }
 0xfe3   : > { %5632 = vmatprep.subr.bf16.mxu0 %v8394_v16 }
 0xfe6   : > { %5633 = vmatpush1.bf16.msra.mxu0 %v8392_v37 }
 0xfe7   : > { %5634 = vmatprep.subr.bf16.mxu0 %v8400_v25 }
 0xfea   : > { %5635 = vmatpush1.bf16.msra.mxu0 %v8398_v62 }
 0xfeb   : > { %5636 = vmatprep.subr.bf16.mxu0 %v8406_v20 }
 0xfee   : > { %5637 = vmatpush1.bf16.msra.mxu0 %v8404_v42 }
 0xfef   : > { %5638 = vmatprep.subr.bf16.mxu0 %v8412_v12  ;;  %v8422_v12 = vld [vmem:[%s10735_s5 + $0xe8] ss:$16 sps:$4 sm:$0xff]  }
 0xff2   : > { %5639 = vmatpush1.bf16.msra.mxu0 %v8410_v33 }
 0xff3   : > { %5640 = vmatprep.subr.bf16.mxu0 %v8418_v22  ;;  %v8427_v22 = vld [vmem:[%s10735_s5 + $0xc4] ss:$16 sps:$4 sm:$0xff]  }
 0xff6   : > { %5641 = vmatpush1.bf16.msra.mxu0 %v8416_v32 }
 0xff7   : > { %5892 = vmatprep.subr.bf16.mxu0 %v8424_v46  ;;  %v8425_v46 = vld [vmem:[%s10735_s5 + $0xc0] ss:$16 sps:$4 sm:$0xff]  }
0x1099   : > { %v5270_v36 = vpop.f32.mrf.mxu0 }
0x109a   : > { %v5274_v38 = vmul.f32 %v5270_v36, %v5270_v36  ;;  %v5282_v26 = vrot.slane %v5270_v36, %v8976_v13  ;;  %v3387_v13 = vld [vmem:[#allocation2 + $0x10] sm:$0xff] }
0x109b   : > { %v8070_v48 = vpop.f32.mrf.mxu0 }
0x109c   : > { %v5276_v60 = vrot.slane %v5274_v38, 7  ;;  %v5283_v52 = vsub.f32 %v10322_v56, %v5282_v26  ;;  %v5284_v53 = vsub.f32 %v10326_v1, %v5282_v26  ;;  %v5285_v55 = vsub.f32 %v10324_v47, %v5282_v26  ;;  %v3388_v1 = vld [vmem:[#allocation2] sm:$0xff]  ;;  %v3390_v47 = vld [vmem:[#allocation2 + $0x8] sm:$0xff] }
0x109d   : > { %v5286_v58 = vsub.f32 %v10330_v41, %v5282_v26  ;;  %v8431_v26 = vld [vmem:[%s10735_s5 + $0xa0] ss:$16 sps:$4 sm:$0xff]  }
0x109e   : > { %v5278_v49 = vsub.f32 %v5270_v36, %v5276_v60  ;;  %v8428_v36 = vld [vmem:[%s10735_s5 + $0xc8] ss:$16 sps:$4 sm:$0xff]   ;;  %v8433_v60 = vld [vmem:[%s10735_s5 + $0xa4] ss:$16 sps:$4 sm:$0xff]  }
0x10a0   : > { %v5287_v50 = vadd.f32 1e-05, %v5278_v49  ;;  %v8436_v49 = vld [vmem:[%s10735_s5 + $0xac] ss:$16 sps:$4 sm:$0xff]  }
0x10a2   : > { %8569 = vrsqrt.f32 %v5287_v50 }
0x10af   : > { %v8570_v51 = vpop.eup %8569 }
0x10b0   : > { %v5292_v63 = vrot.slane %v8570_v51, %v8979_v15  ;;  %v8434_v51 = vld [vmem:[%s10735_s5 + $0xa8] ss:$16 sps:$4 sm:$0xff]  }
0x10b2   : > { %v5293_v30 = vmul.f32 %v5292_v63, %v5283_v52  ;;  %v5294_v7 = vmul.f32 %v5292_v63, %v5284_v53  ;;  %v5295_v10 = vmul.f32 %v5292_v63, %v5285_v55  ;;  %v5296_v11 = vmul.f32 %v5292_v63, %v5286_v58  ;;  %v8439_v53 = vld [vmem:[%s10735_s5 + $0x84] ss:$16 sps:$4 sm:$0xff]   ;;  %v8442_v55 = vld [vmem:[%s10735_s5 + $0x8c] ss:$16 sps:$4 sm:$0xff]   ;;  %v8437_v63 = vld [vmem:[%s10735_s5 + $0x80] ss:$16 sps:$4 sm:$0xff]  }
0x10b4   : > { %v5297_v4 = vmax.f32 %v5293_v30, 0.0  ;;  %v5298_v14 = vmax.f32 %v5294_v7, 0.0  ;;  %v5299_v18 = vmax.f32 %v5295_v10, 0.0  ;;  %v5300_v23 = vmax.f32 %v5296_v11, 0.0  ;;  %v8440_v30 = vld [vmem:[%s10735_s5 + $0x88] ss:$16 sps:$4 sm:$0xff]  }
0x10b5   : > { %v8445_v7 = vld [vmem:[%s10735_s5 + $0x64] ss:$16 sps:$4 sm:$0xff]   ;;  %v8448_v10 = vld [vmem:[%s10735_s5 + $0x6c] ss:$16 sps:$4 sm:$0xff]   ;;  %v8443_v11 = vld [vmem:[%s10735_s5 + $0x60] ss:$16 sps:$4 sm:$0xff]  }
0x10b6   : > { %v5301_v35 = vmul.f32 0.25, %v5297_v4  ;;  %v5302_v17 = vmul.f32 0.25, %v5298_v14  ;;  %v5303_v56 = vmul.f32 0.25, %v5299_v18  ;;  %v5304_v45 = vmul.f32 0.25, %v5300_v23  ;;  %v8446_v4 = vld [vmem:[%s10735_s5 + $0x68] ss:$16 sps:$4 sm:$0xff]  }
0x10b7   : > { %v8451_v14 = vld [vmem:[%s10735_s5 + $0x44] ss:$16 sps:$4 sm:$0xff]   ;;  %v8454_v18 = vld [vmem:[%s10735_s5 + $0x4c] ss:$16 sps:$4 sm:$0xff]   ;;  %v8449_v23 = vld [vmem:[%s10735_s5 + $0x40] ss:$16 sps:$4 sm:$0xff]  }
0x10b8   : > { %v5305_v6 = vadd.f32 %v5301_v35, %v3387_v13  ;;  %v5306_v41 = vadd.f32 %v5302_v17, %v3388_v1  ;;  %v5307_v54 = vadd.f32 %v5303_v56, %v3389_v29  ;;  %v5308_v15 = vadd.f32 %v5304_v45, %v3390_v47  ;;  %v8452_v13 = vld [vmem:[%s10735_s5 + $0x48] ss:$16 sps:$4 sm:$0xff]   ;;  %v8457_v35 = vld [vmem:[%s10735_s5 + $0x24] ss:$16 sps:$4 sm:$0xff]   ;;  %v8460_v17 = vld [vmem:[%s10735_s5 + $0x2c] ss:$16 sps:$4 sm:$0xff]  }
0x10b9   : > { %v8455_v56 = vld [vmem:[%s10735_s5 + $0x20] ss:$16 sps:$4 sm:$0xff]   ;;  %v8458_v45 = vld [vmem:[%s10735_s5 + $0x28] ss:$16 sps:$4 sm:$0xff]   ;;  %v8463_v1 = vld [vmem:[%s10735_s5 + $0x4] ss:$16 sps:$4 sm:$0xff]  }
0x10ba   : > { %5309 = vst [vmem:[#allocation4 + $0x1] sm:$0xff] %v5305_v6  ;;  %5310 = vst [vmem:[#allocation4 + $0x9] sm:$0xff] %v5306_v41  ;;  %v8466_v29 = vld [vmem:[%s10735_s5 + $0xc] ss:$16 sps:$4 sm:$0xff]   ;;  %v8461_v47 = vld [vmem:[%s10735_s5] ss:$16 sps:$4 sm:$0xff]  }
0x10bb   : > { %5311 = vst [vmem:[#allocation4 + $0x19] sm:$0xff] %v5307_v54  ;;  %5312 = vst [vmem:[#allocation4 + $0x21] sm:$0xff] %v5308_v15  ;;  %v8464_v6 = vld [vmem:[%s10735_s5 + $0x8] ss:$16 sps:$4 sm:$0xff]   ;;  %v8469_v41 = vld [vmem:[%s10735_s5 + $0x2e4] ss:$16 sps:$4 sm:$0xff]  }
0x10bc   : > { %v8472_v54 = vld [vmem:[%s10735_s5 + $0x2ec] ss:$16 sps:$4 sm:$0xff]   ;;  %v8467_v15 = vld [vmem:[%s10735_s5 + $0x2e0] ss:$16 sps:$4 sm:$0xff]  }
0x10c1   : > { %v5313_v59 = vld [vmem:[#allocation4] sm:$0xff]  ;;  %v5314_v19 = vld [vmem:[#allocation4 + $0x8] sm:$0xff]  ;;  %v5315_v3 = vld [vmem:[#allocation4 + $0x10] sm:$0x3] }
0x10c2   : > { %v10452_v31 = vpack.c.bf16 %v5314_v19, %v5313_v59  ;;  %v5320_v24 = vpack.c.bf16 %v5315_v3, %v5315_v3  ;;  %v5316_v28 = vld [vmem:[#allocation4 + $0x18] sm:$0xff]  ;;  %v5317_v57 = vld [vmem:[#allocation4 + $0x20] sm:$0xff]  ;;  %v5318_v8 = vld [vmem:[#allocation4 + $0x28] sm:$0x3] }
0x10c3   : > { %v10454_v0 = vpack.c.bf16 %v5317_v57, %v5316_v28  ;;  %v5322_v16 = vpack.c.bf16 %v5318_v8, %v5318_v8  ;;  %v8470_v59 = vld [vmem:[%s10735_s5 + $0x2e8] ss:$16 sps:$4 sm:$0xff]   ;;  %v8475_v19 = vld [vmem:[%s10735_s5 + $0x2c4] ss:$16 sps:$4 sm:$0xff]   ;;  %v8478_v3 = vld [vmem:[%s10735_s5 + $0x2cc] ss:$16 sps:$4 sm:$0xff]  }
0x10c4   : > { %v5358_v34 = vshll.u32 %v10452_v31, 16  ;;  %v5363_v37 = vshll.u32 %v5320_v24, 16  ;;  %v5949_v21 = vrot.slane %v10452_v31, 1  ;;  %v5356_v25 = vshrl.u32 %v10452_v31, 16  ;;  %v8476_v28 = vld [vmem:[%s10735_s5 + $0x2c8] ss:$16 sps:$4 sm:$0xff]  }
0x10c5   : > { %v5950_v39 = vrot.slane %v5320_v24, 1  ;;  %v5370_v40 = vshll.u32 %v10454_v0, 16  ;;  %v5952_v20 = vrot.slane %v10454_v0, 1  ;;  %v5953_v2 = vrot.slane %v5322_v16, 1  ;;  %v8473_v24 = vld [vmem:[%s10735_s5 + $0x2c0] ss:$16 sps:$4 sm:$0xff]  }
0x10c6   : > { %v5360_v62 = vrot.slane %v5358_v34, 1  ;;  %v5365_v33 = vrot.slane %v5363_v37, 1  ;;  %v5368_v38 = vshrl.u32 %v10454_v0, 16  ;;  %v5375_v48 = vshll.u32 %v5322_v16, 16  ;;  %v8481_v57 = vld [vmem:[%s10735_s5 + $0x2a4] ss:$16 sps:$4 sm:$0xff]  }
0x10c7   : > { %v10462_v42 = vsel %vm637_vm3, %v5949_v21, %v5950_v39  ;;  %v10471_v44 = vsel %vm637_vm3, %v5952_v20, %v5953_v2  ;;  %v5372_v61 = vrot.slane %v5370_v40, 1  ;;  %v8479_v8 = vld [vmem:[%s10735_s5 + $0x2a0] ss:$16 sps:$4 sm:$0xff]   ;;  %v8482_v16 = vld [vmem:[%s10735_s5 + $0x2a8] ss:$16 sps:$4 sm:$0xff]  }
0x10c8   : > { %v5361_v5 = vor.u32 %v5360_v62, %v5356_v25  ;;  %v5377_v52 = vrot.slane %v5375_v48, 1  ;;  %v8487_v34 = vld [vmem:[%s10735_s5 + $0x284] ss:$16 sps:$4 sm:$0xff]   ;;  %v8490_v37 = vld [vmem:[%s10735_s5 + $0x28c] ss:$16 sps:$4 sm:$0xff]  }
0x10c9   : > { %v5373_v50 = vor.u32 %v5372_v61, %v5368_v38  ;;  %v8485_v21 = vld [vmem:[%s10735_s5 + $0x280] ss:$16 sps:$4 sm:$0xff]   ;;  %v8488_v25 = vld [vmem:[%s10735_s5 + $0x288] ss:$16 sps:$4 sm:$0xff]   ;;  %v8493_v39 = vld [vmem:[%s10735_s5 + $0x264] ss:$16 sps:$4 sm:$0xff]  }
0x10ca   : > { %v5366_v32 = vsel %vm395_vm2, %v5361_v5, %v5365_v33  ;;  %v8491_v62 = vld [vmem:[%s10735_s5 + $0x260] ss:$16 sps:$4 sm:$0xff]   ;;  %v8494_v40 = vld [vmem:[%s10735_s5 + $0x268] ss:$16 sps:$4 sm:$0xff]   ;;  %v8499_v20 = vld [vmem:[%s10735_s5 + $0x244] ss:$16 sps:$4 sm:$0xff]  }
0x10cb   : > { %5606 = vmatmul.mubr.bf16.vlgmr.msra.gmra.mxu1 %v5366_v32  ;;  %5659 = vmatmul.mubr.bf16.vlgmr.msra.gmra.mxu0 %v5366_v32  ;;  %v5378_v58 = vsel %vm395_vm2, %v5373_v50, %v5377_v52  ;;  %v8502_v2 = vld [vmem:[%s10735_s5 + $0x24c] ss:$16 sps:$4 sm:$0xff]   ;;  %v8505_v5 = vld [vmem:[%s10735_s5 + $0x224] ss:$16 sps:$4 sm:$0xff]  }
0x10cc   : > { %5840 = vmatpush1.bf16.msra.mxu1 %v8419_v43  ;;  %5893 = vmatpush1.bf16.msra.mxu0 %v8422_v12  ;;  %v8497_v43 = vld [vmem:[%s10735_s5 + $0x240] ss:$16 sps:$4 sm:$0xff]   ;;  %v8500_v12 = vld [vmem:[%s10735_s5 + $0x248] ss:$16 sps:$4 sm:$0xff]   ;;  %v8508_v33 = vld [vmem:[%s10735_s5 + $0x22c] ss:$16 sps:$4 sm:$0xff]  }
0x10cd   : > { %5841 = vmatprep.subr.bf16.mxu1 %v8427_v22  ;;  %5894 = vmatprep.subr.bf16.mxu0 %v8430_v9  ;;  %v8503_v22 = vld [vmem:[%s10735_s5 + $0x220] ss:$16 sps:$4 sm:$0xff]   ;;  %v8506_v9 = vld [vmem:[%s10735_s5 + $0x228] ss:$16 sps:$4 sm:$0xff]   ;;  %v8511_v32 = vld [vmem:[%s10735_s5 + $0x204] ss:$16 sps:$4 sm:$0xff]  }
0x10ce   : > { %5615 = vmatprep.mubr.bf16.mxu1 %v8678_v27  ;;  %5668 = vmatprep.mubr.bf16.mxu0 %v8678_v27  ;;  %v8514_v61 = vld [vmem:[%s10735_s5 + $0x20c] ss:$16 sps:$4 sm:$0xff]  }
0x10d0   : > { %5842 = vmatpush1.bf16.msra.mxu1 %v8425_v46  ;;  %5895 = vmatpush1.bf16.msra.mxu0 %v8428_v36  ;;  %v8509_v46 = vld [vmem:[%s10735_s5 + $0x200] ss:$16 sps:$4 sm:$0xff]   ;;  %v8512_v36 = vld [vmem:[%s10735_s5 + $0x208] ss:$16 sps:$4 sm:$0xff]  }
0x10d1   : > { %5843 = vmatprep.subr.bf16.mxu1 %v8433_v60  ;;  %5896 = vmatprep.subr.bf16.mxu0 %v8436_v49 }
0x10d3   : > { %5616 = vmatmul.mubr.bf16.gmra.mxu1 %v5378_v58  ;;  %5669 = vmatmul.mubr.bf16.gmra.mxu0 %v5378_v58 }
0x10d4   : > { %5844 = vmatpush1.bf16.msra.mxu1 %v8431_v26  ;;  %5897 = vmatpush1.bf16.msra.mxu0 %v8434_v51 }
0x10d5   : > { %5845 = vmatprep.subr.bf16.mxu1 %v8439_v53  ;;  %5898 = vmatprep.subr.bf16.mxu0 %v8442_v55 }
0x10d6   : > { %5871 = vmatprep.mubr.bf16.mxu1 %v8678_v27  ;;  %5924 = vmatprep.mubr.bf16.mxu0 %v8678_v27 }
0x10d8   : > { %5846 = vmatpush1.bf16.msra.mxu1 %v8437_v63  ;;  %5899 = vmatpush1.bf16.msra.mxu0 %v8440_v30 }
0x10d9   : > { %5847 = vmatprep.subr.bf16.mxu1 %v8445_v7  ;;  %5900 = vmatprep.subr.bf16.mxu0 %v8448_v10 }
0x10dc   : > { %5848 = vmatpush1.bf16.msra.mxu1 %v8443_v11  ;;  %5901 = vmatpush1.bf16.msra.mxu0 %v8446_v4 }
0x10dd   : > { %5849 = vmatprep.subr.bf16.mxu1 %v8451_v14  ;;  %5902 = vmatprep.subr.bf16.mxu0 %v8454_v18 }
0x10e0   : > { %5850 = vmatpush1.bf16.msra.mxu1 %v8449_v23  ;;  %5903 = vmatpush1.bf16.msra.mxu0 %v8452_v13 }
0x10e1   : > { %5851 = vmatprep.subr.bf16.mxu1 %v8457_v35  ;;  %5904 = vmatprep.subr.bf16.mxu0 %v8460_v17 }
0x10e4   : > { %5852 = vmatpush1.bf16.msra.mxu1 %v8455_v56  ;;  %5905 = vmatpush1.bf16.msra.mxu0 %v8458_v45 }
0x10e5   : > { %5853 = vmatprep.subr.bf16.mxu1 %v8463_v1  ;;  %5906 = vmatprep.subr.bf16.mxu0 %v8466_v29 }
0x10e8   : > { %5854 = vmatpush1.bf16.msra.mxu1 %v8461_v47  ;;  %5907 = vmatpush1.bf16.msra.mxu0 %v8464_v6 }
0x10e9   : > { %6149 = vmatprep.subr.bf16.mxu1 %v8469_v41  ;;  %6202 = vmatprep.subr.bf16.mxu0 %v8472_v54 }
0x10eb   : > { %5872 = vmatmul.mubr.bf16.vlgmr.msra.gmra.mxu1 %v10452_v31  ;;  %5925 = vmatmul.mubr.bf16.vlgmr.msra.gmra.mxu0 %v10452_v31  ;;  %v8484_v31 = vld [vmem:[%s10735_s5 + $0x2ac] ss:$16 sps:$4 sm:$0xff]  }
0x10ec   : > { %6150 = vmatpush1.bf16.msra.mxu1 %v8467_v15  ;;  %6203 = vmatpush1.bf16.msra.mxu0 %v8470_v59  ;;  %v7151_v15 = vld [vmem:[%s8735_s12 + $0x80] sm:$0xff] }
0x10ed   : > { %6151 = vmatprep.subr.bf16.mxu1 %v8475_v19  ;;  %6204 = vmatprep.subr.bf16.mxu0 %v8478_v3 }
0x10ee   : > { %5881 = vmatprep.mubr.bf16.mxu1 %v8678_v27  ;;  %5934 = vmatprep.mubr.bf16.mxu0 %v8678_v27 }
0x10f0   : > { %6152 = vmatpush1.bf16.msra.mxu1 %v8473_v24  ;;  %6205 = vmatpush1.bf16.msra.mxu0 %v8476_v28  ;;  %v7152_v28 = vld [vmem:[%s8735_s12 + $0x88] sm:$0xff] }
0x10f1   : > { %6153 = vmatprep.subr.bf16.mxu1 %v8481_v57  ;;  %6206 = vmatprep.subr.bf16.mxu0 %v8484_v31 }
0x10f3   : > { %5882 = vmatmul.mubr.bf16.gmra.mxu1 %v10454_v0  ;;  %5935 = vmatmul.mubr.bf16.gmra.mxu0 %v10454_v0  ;;  %v8496_v0 = vld [vmem:[%s10735_s5 + $0x26c] ss:$16 sps:$4 sm:$0xff]  }
0x10f4   : > { %6154 = vmatpush1.bf16.msra.mxu1 %v8479_v8  ;;  %6207 = vmatpush1.bf16.msra.mxu0 %v8482_v16 }
0x10f5   : > { %6155 = vmatprep.subr.bf16.mxu1 %v8487_v34  ;;  %6208 = vmatprep.subr.bf16.mxu0 %v8490_v37 }
0x10f6   : > { %6181 = vmatprep.mubr.bf16.mxu1 %v8678_v27  ;;  %6234 = vmatprep.mubr.bf16.mxu0 %v8678_v27 }
0x10f8   : > { %6156 = vmatpush1.bf16.msra.mxu1 %v8485_v21  ;;  %6209 = vmatpush1.bf16.msra.mxu0 %v8488_v25 }
0x10f9   : > { %6157 = vmatprep.subr.bf16.mxu1 %v8493_v39  ;;  %6210 = vmatprep.subr.bf16.mxu0 %v8496_v0 }
0x10fc   : > { %6158 = vmatpush1.bf16.msra.mxu1 %v8491_v62  ;;  %6211 = vmatpush1.bf16.msra.mxu0 %v8494_v40  ;;  %v7155_v40 = vld [vmem:[%s8735_s12 + $0xa0] sm:$0xff] }
0x10fd   : > { %6159 = vmatprep.subr.bf16.mxu1 %v8499_v20  ;;  %6212 = vmatprep.subr.bf16.mxu0 %v8502_v2  ;;  %v7154_v20 = vld [vmem:[%s8735_s12 + $0x98] sm:$0xff] }
0x1100   : > { %6160 = vmatpush1.bf16.msra.mxu1 %v8497_v43  ;;  %6213 = vmatpush1.bf16.msra.mxu0 %v8500_v12  ;;  %v7156_v12 = vld [vmem:[%s8735_s12 + $0xa8] sm:$0xff] }
0x1101   : > { %6161 = vmatprep.subr.bf16.mxu1 %v8505_v5  ;;  %6214 = vmatprep.subr.bf16.mxu0 %v8508_v33 }
0x1104   : > { %6162 = vmatpush1.bf16.msra.mxu1 %v8503_v22  ;;  %6215 = vmatpush1.bf16.msra.mxu0 %v8506_v9 }
0x1105   : > { %6163 = vmatprep.subr.bf16.mxu1 %v8511_v32  ;;  %6216 = vmatprep.subr.bf16.mxu0 %v8514_v61 }
0x1108   : > { %6164 = vmatpush1.bf16.msra.mxu1 %v8509_v46  ;;  %6217 = vmatpush1.bf16.msra.mxu0 %v8512_v36 }
0x110b   : > { %6182 = vmatmul.mubr.bf16.vlgmr.msra.gmra.mxu1 %v10462_v42  ;;  %6235 = vmatmul.mubr.bf16.vlgmr.msra.gmra.mxu0 %v10462_v42 }
0x110c   : > { %6191 = vmatprep.mubr.bf16.mxu1 %v8678_v27  ;;  %6244 = vmatprep.mubr.bf16.mxu0 %v8678_v27 }
0x1113   : > { %6192 = vmatmul.mubr.bf16.gmra.mxu1 %v10471_v44  ;;  %6245 = vmatmul.mubr.bf16.gmra.mxu0 %v10471_v44 }
0x118b   : > { %v5607_v38 = vpop.f32.mrf.mxu1  ;;  %v5660_v48 = vpop.f32.mrf.mxu0 }
0x118d   : > { %v5609_v60 = vpop.f32.mrf.mxu1  ;;  %v5662_v49 = vpop.f32.mrf.mxu0 }
0x118f   : > { %v5611_v50 = vpop.f32.mrf.mxu1  ;;  %v10674_v26 = vpop.f32.mrf.mxu0 }
0x1191   : > { %v5613_v51 = vpop.f32.mrf.mxu1  ;;  %v5666_v52 = vpop.f32.mrf.mxu0 }
0x1193   : > { %v5617_v53 = vpop.f32.mrf.mxu1  ;;  %v10676_v55 = vpop.f32.mrf.mxu0 }
0x1195   : > { %v5619_v42 = vpop.f32.mrf.mxu1  ;;  %v5672_v58 = vpop.f32.mrf.mxu0 }
0x1197   : > { %v10678_v63 = vpop.f32.mrf.mxu1  ;;  %v10680_v27 = vpop.f32.mrf.mxu0 }
0x1199   : > { %v10682_v30 = vpop.f32.mrf.mxu1  ;;  %v10684_v44 = vpop.f32.mrf.mxu0 }
0x11ab   : > { %v5873_v7 = vpop.f32.mrf.mxu1  ;;  %v5926_v10 = vpop.f32.mrf.mxu0 }
0x11ac   : > { %v5874_v41 = vadd.f32 %v5873_v7, %v5607_v38  ;;  %v5927_v32 = vadd.f32 %v5926_v10, %v5660_v48  ;;  %v7160_v48 = vld [vmem:[%s8735_s12 + $0xc8] sm:$0xff] }
0x11ad   : > { %v5875_v11 = vpop.f32.mrf.mxu1  ;;  %v5928_v4 = vpop.f32.mrf.mxu0 }
0x11ae   : > { %v5876_v19 = vadd.f32 %v5875_v11, %v5609_v60  ;;  %v5929_v31 = vadd.f32 %v5928_v4, %v5662_v49  ;;  %v7159_v60 = vld [vmem:[%s8735_s12 + $0xc0] sm:$0xff] }
0x11af   : > { %v5877_v14 = vpop.f32.mrf.mxu1  ;;  %v10686_v18 = vpop.f32.mrf.mxu0 }
0x11b0   : > { %v5878_v34 = vadd.f32 %v5877_v14, %v5611_v50 }
0x11b1   : > { %v5879_v23 = vpop.f32.mrf.mxu1  ;;  %v5932_v13 = vpop.f32.mrf.mxu0 }
0x11b2   : > { %v5880_v25 = vadd.f32 %v5879_v23, %v5613_v51  ;;  %v5933_v61 = vadd.f32 %v5932_v13, %v5666_v52 }
0x11b3   : > { %v5883_v35 = vpop.f32.mrf.mxu1  ;;  %v10688_v17 = vpop.f32.mrf.mxu0 }
0x11b4   : > { %v5884_v33 = vadd.f32 %v5883_v35, %v5617_v53  ;;  %v7158_v35 = vld [vmem:[%s8735_s12 + $0xb8] sm:$0xff] }
0x11b5   : > { %v5885_v56 = vpop.f32.mrf.mxu1  ;;  %v5938_v45 = vpop.f32.mrf.mxu0 }
0x11b6   : > { %v5886_v46 = vadd.f32 %v5885_v56, %v5619_v42  ;;  %v5939_v11 = vadd.f32 %v5938_v45, %v5672_v58  ;;  %v7153_v42 = vld [vmem:[%s8735_s12 + $0x90] sm:$0xff] }
0x11b7   : > { %v5887_v1 = vpop.f32.mrf.mxu1  ;;  %v10690_v29 = vpop.f32.mrf.mxu0 }
0x11b8   : > { %v5888_v52 = vadd.f32 %v5887_v1, %v10678_v63  ;;  %v7162_v1 = vld [vmem:[%s8735_s12 + $0xd8] sm:$0xff] }
0x11b9   : > { %v5889_v47 = vpop.f32.mrf.mxu1  ;;  %v10692_v6 = vpop.f32.mrf.mxu0 }
0x11ba   : > { %v5890_v58 = vadd.f32 %v5889_v47, %v10682_v30  ;;  %v7164_v30 = vld [vmem:[%s8735_s12 + $0xe8] sm:$0xff] }
0x11cb   : > { %v6183_v54 = vpop.f32.mrf.mxu1  ;;  %v6236_v59 = vpop.f32.mrf.mxu0 }
0x11cc   : > { %v6255_v3 = vadd.f32 %v6183_v54, %v5874_v41  ;;  %v6257_v4 = vadd.f32 %v6236_v59, %v5927_v32  ;;  %v5931_v54 = vadd.f32 %v10686_v18, %v10674_v26  ;;  %v7163_v59 = vld [vmem:[%s8735_s12 + $0xe0] sm:$0xff] }
0x11cd   : > { %v6185_v24 = vpop.f32.mrf.mxu1  ;;  %v6238_v57 = vpop.f32.mrf.mxu0 }
0x11ce   : > { %v6288_v8 = vadd.f32 %v7151_v15, %v6255_v3  ;;  %v6256_v16 = vadd.f32 %v6185_v24, %v5876_v19  ;;  %v6258_v62 = vadd.f32 %v6238_v57, %v5929_v31  ;;  %v6290_v57 = vadd.f32 %v7153_v42, %v6257_v4 }
0x11cf   : > { %v6187_v37 = vpop.f32.mrf.mxu1  ;;  %v10696_v21 = vpop.f32.mrf.mxu0 }
0x11d0   : > { %v6304_v39 = vmul.f32 0.5, %v6288_v8  ;;  %v6289_v0 = vadd.f32 %v7152_v28, %v6256_v16  ;;  %v6259_v2 = vadd.f32 %v6187_v37, %v5878_v34  ;;  %v6291_v50 = vadd.f32 %v7154_v20, %v6258_v62 }
0x11d1   : > { %v6189_v43 = vpop.f32.mrf.mxu1  ;;  %v6242_v5 = vpop.f32.mrf.mxu0  ;;  %v5943_v28 = vadd.f32 %v10692_v6, %v10684_v44  ;;  %v5937_v34 = vadd.f32 %v10688_v17, %v10676_v55  ;;  %v6261_v37 = vadd.f32 %v10696_v21, %v5931_v54  ;;  %v6336_v20 = vmul.f32 0.5, %v6290_v57 }
0x11d2   : > { %8571 = vtanh.f32 %v6304_v39  ;;  %v6320_v22 = vmul.f32 0.5, %v6289_v0  ;;  %v6260_v9 = vadd.f32 %v6189_v43, %v5880_v25  ;;  %v6292_v36 = vadd.f32 %v7155_v40, %v6259_v2  ;;  %v7157_v39 = vld [vmem:[%s8735_s12 + $0xb0] sm:$0xff]  ;;  %v7166_v40 = vld [vmem:[%s8735_s12 + $0xf8] sm:$0xff] }
0x11d3   : > { %v6193_v38 = vpop.f32.mrf.mxu1  ;;  %v6246_v49 = vpop.f32.mrf.mxu0  ;;  %v6262_v14 = vadd.f32 %v6242_v5, %v5933_v61  ;;  %v7161_v2 = vld [vmem:[%s8735_s12 + $0xd0] sm:$0xff]  ;;  %v5941_v55 = vadd.f32 %v10690_v29, %v10680_v27  ;;  %v6294_v17 = vadd.f32 %v7157_v39, %v6261_v37 }
0x11d4   : > { %8573 = vtanh.f32 %v6320_v22  ;;  %v6293_v51 = vadd.f32 %v7156_v12, %v6260_v9  ;;  %v6263_v7 = vadd.f32 %v6193_v38, %v5884_v33  ;;  %v6305_v53 = vmul.f32 0.5, %v6292_v36 }
0x11d5   : > { %v6195_v23 = vpop.f32.mrf.mxu1  ;;  %v6248_v10 = vpop.f32.mrf.mxu0  ;;  %v6295_v26 = vadd.f32 %v7158_v35, %v6262_v14  ;;  %v6265_v62 = vadd.f32 %v6246_v49, %v5937_v34  ;;  %v6337_v36 = vmul.f32 0.5, %v6294_v17 }
0x11d6   : > { %v6321_v13 = vmul.f32 0.5, %v6293_v51  ;;  %v6296_v56 = vadd.f32 %v7159_v60, %v6263_v7  ;;  %v6264_v41 = vadd.f32 %v6195_v23, %v5886_v46  ;;  %8575 = vtanh.f32 %v6305_v53  ;;  %v7165_v46 = vld [vmem:[%s8735_s12 + $0xf0] sm:$0xff] }
0x11d7   : > { %v6266_v45 = vadd.f32 %v6248_v10, %v5939_v11  ;;  %v6197_v15 = vpop.f32.mrf.mxu1  ;;  %v6250_v19 = vpop.f32.mrf.mxu0  ;;  %8577 = vtanh.f32 %v6291_v50  ;;  %v6298_v22 = vadd.f32 %v7161_v2, %v6265_v62  ;;  %v6356_v50 = vld [vmem:[#allocation3] sm:$0xff] }
0x11d8   : > { %v6306_v3 = vmul.f32 0.5, %v6296_v56  ;;  %v6297_v63 = vadd.f32 %v7160_v48, %v6264_v41  ;;  %v6267_v24 = vadd.f32 %v6197_v15, %v5888_v52  ;;  %8579 = vtanh.f32 %v6321_v13  ;;  %v6357_v56 = vld [vmem:[#allocation3 + $0x18] sm:$0xff] }
0x11d9   : > { %v6199_v18 = vpop.f32.mrf.mxu1  ;;  %v6252_v47 = vpop.f32.mrf.mxu0  ;;  %v6299_v25 = vadd.f32 %v7162_v1, %v6266_v45  ;;  %v6269_v9 = vadd.f32 %v6250_v19, %v5941_v55  ;;  %v6338_v27 = vmul.f32 0.5, %v6298_v22 }
0x11da   : > { %8581 = vtanh.f32 %v6306_v3  ;;  %v6322_v31 = vmul.f32 0.5, %v6297_v63  ;;  %v6300_v8 = vadd.f32 %v7163_v59, %v6267_v24  ;;  %v6268_v16 = vadd.f32 %v6199_v18, %v5890_v58  ;;  %v6358_v24 = vld [vmem:[#allocation3 + $0x8] sm:$0xff] }
0x11db   : > { %v6270_v0 = vadd.f32 %v6252_v47, %v5943_v28  ;;  %v6302_v29 = vadd.f32 %v7165_v46, %v6269_v9 }
0x11dc   : > { %8583 = vtanh.f32 %v6322_v31  ;;  %v6307_v44 = vmul.f32 0.5, %v6300_v8  ;;  %v6301_v6 = vadd.f32 %v7164_v30, %v6268_v16  ;;  %v6359_v16 = vld [vmem:[#allocation3 + $0x10] sm:$0xff] }
0x11dd   : > { %8585 = vtanh.f32 %v6295_v26  ;;  %v6303_v5 = vadd.f32 %v7166_v40, %v6270_v0  ;;  %v6339_v13 = vmul.f32 0.5, %v6302_v29 }
0x11de   : > { %8587 = vtanh.f32 %v6307_v44  ;;  %v6323_v43 = vmul.f32 0.5, %v6301_v6 }
0x11df   : > { %v8572_v12 = vpop.eup %8571  ;;  %8589 = vtanh.f32 %v6299_v25 }
0x11e0   : > { %v6312_v21 = vadd.f32 1.0, %v8572_v12  ;;  %8591 = vtanh.f32 %v6323_v43 }
0x11e1   : > { %v8574_v33 = vpop.eup %8573  ;;  %8593 = vtanh.f32 %v6336_v20 }
0x11e2   : > { %v6316_v32 = vmul.f32 0.5, %v6312_v21  ;;  %v6328_v61 = vadd.f32 1.0, %v8574_v33  ;;  %8595 = vtanh.f32 %v6303_v5 }
0x11e3   : > { %v8576_v38 = vpop.eup %8575  ;;  %8597 = vtanh.f32 %v6337_v36 }
0x11e4   : > { %v6332_v60 = vmul.f32 0.5, %v6328_v61  ;;  %v8578_v49 = vpop.eup %8577  ;;  %v6313_v51 = vadd.f32 1.0, %v8576_v38  ;;  %8599 = vtanh.f32 %v6338_v27 }
0x11e5   : > { %v8580_v7 = vpop.eup %8579  ;;  %v6364_v4 = vmul.f32 %v8578_v49, %v6316_v32 }
0x11e6   : > { %v6360_v11 = vmul.f32 %v6356_v50, %v6332_v60  ;;  %v6317_v14 = vmul.f32 0.5, %v6313_v51  ;;  %v6329_v23 = vadd.f32 1.0, %v8580_v7 }
0x11e7   : > { %v8582_v53 = vpop.eup %8581 }
0x11e8   : > { %v6368_v48 = vadd.f32 %v6364_v4, %v6360_v11  ;;  %v6314_v10 = vadd.f32 1.0, %v8582_v53  ;;  %v6333_v42 = vmul.f32 0.5, %v6329_v23 }
0x11e9   : > { %v8584_v52 = vpop.eup %8583 }
0x11ea   : > { %v8586_v35 = vpop.eup %8585  ;;  %8601 = vtanh.f32 %v6368_v48  ;;  %6380 = vst [vmem:[#allocation3] sm:$0xff] %v6368_v48  ;;  %v6318_v41 = vmul.f32 0.5, %v6314_v10  ;;  %v6330_v54 = vadd.f32 1.0, %v8584_v52  ;;  %v6361_v45 = vmul.f32 %v6357_v56, %v6333_v42 }
0x11eb   : > { %v8588_v58 = vpop.eup %8587  ;;  %v6365_v15 = vmul.f32 %v8586_v35, %v6317_v14  ;;  %8603 = vtanh.f32 %v6339_v13 }
0x11ec   : > { %v8590_v59 = vpop.eup %8589  ;;  %v6334_v19 = vmul.f32 0.5, %v6330_v54  ;;  %v6315_v3 = vadd.f32 1.0, %v8588_v58 }
0x11ed   : > { %v8592_v63 = vpop.eup %8591  ;;  %v6369_v1 = vadd.f32 %v6365_v15, %v6361_v45  ;;  %v6366_v57 = vmul.f32 %v8590_v59, %v6318_v41 }
0x11ee   : > { %v6362_v28 = vmul.f32 %v6358_v24, %v6334_v19  ;;  %v6319_v26 = vmul.f32 0.5, %v6315_v3  ;;  %v6331_v18 = vadd.f32 1.0, %v8592_v63  ;;  %v8594_v30 = vpop.eup %8593 }
0x11ef   : > { %8605 = vtanh.f32 %v6369_v1  ;;  %6381 = vst [vmem:[#allocation3 + $0x18] sm:$0xff] %v6369_v1  ;;  %v8596_v8 = vpop.eup %8595  ;;  %v6344_v34 = vadd.f32 1.0, %v8594_v30 }
0x11f0   : > { %v6370_v47 = vadd.f32 %v6366_v57, %v6362_v28  ;;  %v6335_v31 = vmul.f32 0.5, %v6331_v18  ;;  %v6367_v25 = vmul.f32 %v8596_v8, %v6319_v26  ;;  %v8598_v39 = vpop.eup %8597 }
0x11f1   : > { %v8600_v6 = vpop.eup %8599  ;;  %v6348_v0 = vmul.f32 0.5, %v6344_v34  ;;  %v6345_v40 = vadd.f32 1.0, %v8598_v39 }
0x11f2   : > { %8607 = vtanh.f32 %v6370_v47  ;;  %6382 = vst [vmem:[#allocation3 + $0x8] sm:$0xff] %v6370_v47  ;;  %v6363_v37 = vmul.f32 %v6359_v16, %v6335_v31  ;;  %v6346_v43 = vadd.f32 1.0, %v8600_v6 }
0x11f3   : > { %v6349_v12 = vmul.f32 0.5, %v6345_v40 }
0x11f4   : > { %v6371_v44 = vadd.f32 %v6367_v25, %v6363_v37  ;;  %v6350_v21 = vmul.f32 0.5, %v6346_v43 }
0x11f6   : > { %8609 = vtanh.f32 %v6371_v44  ;;  %6383 = vst [vmem:[#allocation3 + $0x10] sm:$0xff] %v6371_v44 }
0x11f7   : > { %v8602_v62 = vpop.eup %8601 }
0x11f8   : > { %v6376_v20 = vmul.f32 %v8602_v62, %v6348_v0  ;;  %v8604_v2 = vpop.eup %8603 }
0x11f9   : > { %v6347_v5 = vadd.f32 1.0, %v8604_v2 }
0x11fa   : > { %6384 = vst [vmem:[#allocation2 + $0x10] sm:$0xff] %v6376_v20  ;;  %6388 = vst [vmem:[#allocation4 + $0x1] sm:$0xff] %v6376_v20 }
0x11fb   : > { %7167 = vst [vmem:[%s8740_s15 + $0x20] sm:$0xff] %v6376_v20  ;;  %v6351_v9 = vmul.f32 0.5, %v6347_v5 }
0x11fc   : > { %v8606_v55 = vpop.eup %8605 }
0x11fd   : > { %v6377_v17 = vmul.f32 %v8606_v55, %v6349_v12 }
0x11ff   : > { %v8608_v33 = vpop.eup %8607  ;;  %6385 = vst [vmem:[#allocation2] sm:$0xff] %v6377_v17  ;;  %6389 = vst [vmem:[#allocation4 + $0x9] sm:$0xff] %v6377_v17 }
0x1200   : > { %7168 = vst [vmem:[%s8740_s15 + $0x28] sm:$0xff] %v6377_v17  ;;  %v6378_v22 = vmul.f32 %v8608_v33, %v6350_v21 }
0x1202   : > { %6386 = vst [vmem:[#allocation2 + $0x18] sm:$0xff] %v6378_v22  ;;  %6390 = vst [vmem:[#allocation4 + $0x19] sm:$0xff] %v6378_v22 }
0x1203   : > { %7169 = vst [vmem:[%s8740_s15 + $0x30] sm:$0xff] %v6378_v22  ;;  %v8610_v32 = vpop.eup %8609 }
0x1204   : > { %v6379_v61 = vmul.f32 %v8610_v32, %v6351_v9 }
0x1206   : > { %6387 = vst [vmem:[#allocation2 + $0x8] sm:$0xff] %v6379_v61  ;;  %6391 = vst [vmem:[#allocation4 + $0x21] sm:$0xff] %v6379_v61 }
0x1207   : > { %7170 = vst [vmem:[%s8740_s15 + $0x38] sm:$0xff] %v6379_v61 }
0x1208 PF: > { %s18_s27 = sadd.s32 1, %s8673_s27  }
0x1209   : > { %p15_p5 = scmp.ge.s32.totalorder %s18_s27, 4  }
0x120b   :  { %17 = sbr.rel (!%p15_p5) target bundleno = 1 (0x1), region = 98 }

</bundles_post_ra>
